<compile_context>
chip_gen: v7x
topology: tpu7x:2x2x1
jax: 0.10.0
libtpu: 0.0.40
codegen_flags: <defaults>
</compile_context>

<pallas_src>
import functools

import jax
import jax.numpy as jnp
from jax import lax
from jax.experimental import pallas as pl
from jax.experimental.pallas import tpu as pltpu


_VMEM = pl.BlockSpec(memory_space=pltpu.MemorySpace.VMEM)


# ----------------------------------------------------------------------------
# Fused Pallas kernel: 4-chain packed biLSTM recurrence + MLP head
# ----------------------------------------------------------------------------
def _fused_kernel(x_ref, wx_ref, bx_ref, wr_ref, mf_ref, mcb_ref, mmb_ref,
                  start_ref, end_ref, w1_ref, b1_ref, w2_ref, b2_ref, out_ref,
                  *, t_code, t_comm):
    B = out_ref.shape[0]
    TB = x_ref.shape[0]
    T = TB // B                      # static python int
    H_TOT = wr_ref.shape[0]          # packed hidden width (all 4 chains)

    # Hoisted input projection: ONE bf16 MXU matmul for all timesteps, all
    # chains, all gates; f32 accumulation; bias folded in once.
    gx = (jnp.dot(x_ref[...], wx_ref[...], preferred_element_type=jnp.float32)
          + bx_ref[...])                                  # (T*B, 4*H_TOT) f32

    # Loop-invariant loads, hoisted out of the recurrence.
    w_r = wr_ref[...]                                     # (H_TOT, 4*H_TOT) f32
    start = start_ref[...]                                # (B, H_TOT) int32
    end = end_ref[...]                                    # (B, H_TOT) int32
    m_f = mf_ref[...]                                     # (1, 4*H_TOT) f32 {0,1}
    m_cb = mcb_ref[...]                                   # code-backward columns
    m_mb = mmb_ref[...]                                   # comm-backward columns

    h = jnp.zeros((B, H_TOT), jnp.float32)
    c = jnp.zeros((B, H_TOT), jnp.float32)

    # Fully unrolled time loop (T is small & static).  Forward chains read gx
    # at step t; backward chains read gx at the time-reversed index (clamped —
    # out-of-window steps are masked below anyway).  The blend is a constant
    # column-mask select, so each gate slab stays a full-width lane-aligned
    # 128-wide vector for the EUP activations.
    for t in range(T):
        i_cb = max(t_code - 1 - t, 0)
        i_mb = max(t_comm - 1 - t, 0)
        row_f = gx[t * B:(t + 1) * B, :]
        row_cb = gx[i_cb * B:(i_cb + 1) * B, :]
        row_mb = gx[i_mb * B:(i_mb + 1) * B, :]
        gx_t = row_f * m_f + row_cb * m_cb + row_mb * m_mb

        # TODO(synk): hold w_r in MXU weight staging across steps
        # (matmul_push_rhs before the loop) instead of re-feeding it here.
        gates = gx_t + jnp.dot(h, w_r, preferred_element_type=jnp.float32)
        i_g = jax.nn.sigmoid(gates[:, 0 * H_TOT:1 * H_TOT])
        f_g = jax.nn.sigmoid(gates[:, 1 * H_TOT:2 * H_TOT])
        g_g = jnp.tanh(gates[:, 2 * H_TOT:3 * H_TOT])
        o_g = jax.nn.sigmoid(gates[:, 3 * H_TOT:4 * H_TOT])
        c_new = f_g * c + i_g * g_g
        h_new = o_g * jnp.tanh(c_new)
        # Per-chain validity window [start, end) replaces the packed-sequence
        # bookkeeping; a boolean select keeps padded steps inert.
        valid = jnp.logical_and(start <= t, end > t)
        c = jnp.where(valid, c_new, c)
        h = jnp.where(valid, h_new, h)

    # h is already recurrent_vecs = [code_f | code_b | comm_f | comm_b].
    # Head dims are padded to 128 lanes by the wrapper -> unmasked stores.
    hid = jnp.dot(h, w1_ref[...], preferred_element_type=jnp.float32) + b1_ref[...]
    hid = jnp.maximum(hid, 0.0)
    out_ref[...] = (jnp.dot(hid, w2_ref[...], preferred_element_type=jnp.float32)
                    + b2_ref[...])


# ----------------------------------------------------------------------------
# Wrapper-side packing (plain JAX glue; would be precomputed in practice)
# ----------------------------------------------------------------------------
def _pack_bilstm_weights(code_lstm, comm_lstm):
    """Pack both biLSTMs into gate-major, chain-blocked weights (undoubled).

    Column layout of the packed gate axis (width 4*H_TOT):
      [ i-slab | f-slab | g-slab | o-slab ], each slab = [code_f|code_b|comm_f|comm_b].
    Row layout of wx (width E_code + E_comm): code features feed BOTH code
    chains, comm features feed BOTH comm chains (the time reversal for the
    backward chains is done by row indexing inside the kernel).
    """
    e_c, hc4 = code_lstm["wih_f"].shape
    e_m, hm4 = comm_lstm["wih_f"].shape
    h_c, h_m = hc4 // 4, hm4 // 4
    h_tot = 2 * h_c + 2 * h_m
    e_tot = e_c + e_m

    # (wih^T, whh^T, bias, H, state col offset, feature row offset)
    chains = [
        (code_lstm["wih_f"], code_lstm["whh_f"], code_lstm["b_f"], h_c, 0,             0),
        (code_lstm["wih_b"], code_lstm["whh_b"], code_lstm["b_b"], h_c, h_c,           0),
        (comm_lstm["wih_f"], comm_lstm["whh_f"], comm_lstm["b_f"], h_m, 2 * h_c,       e_c),
        (comm_lstm["wih_b"], comm_lstm["whh_b"], comm_lstm["b_b"], h_m, 2 * h_c + h_m, e_c),
    ]
    wx = jnp.zeros((e_tot, 4 * h_tot), jnp.float32)
    wr = jnp.zeros((h_tot, 4 * h_tot), jnp.float32)
    bx = jnp.zeros((1, 4 * h_tot), jnp.float32)
    for wih, whh, b, h, s, r in chains:
        e = wih.shape[0]
        for g in range(4):                       # torch gate order [i, f, g, o]
            col = g * h_tot + s
            wx = wx.at[r:r + e, col:col + h].set(wih[:, g * h:(g + 1) * h])
            wr = wr.at[s:s + h, col:col + h].set(whh[:, g * h:(g + 1) * h])
            bx = bx.at[0, col:col + h].set(b[0, g * h:(g + 1) * h])
    # wx in bf16 (non-recurrent path, halves DMA + single MXU pass); wr stays
    # f32 (recurrent path, tiny, and keeps per-step error from compounding).
    return wx.astype(jnp.bfloat16), wr, bx, (h_c, h_m, h_tot)


def _build_col_masks(h_c, h_m):
    """Constant per-chain column masks over the 4*H_TOT gate axis."""
    h_tot = 2 * h_c + 2 * h_m
    pos = jnp.arange(4 * h_tot, dtype=jnp.int32) % h_tot
    m_cb = jnp.logical_and(pos >= h_c, pos < 2 * h_c).astype(jnp.float32)[None, :]
    m_mb = (pos >= 2 * h_c + h_m).astype(jnp.float32)[None, :]
    m_f = 1.0 - m_cb - m_mb
    return m_f, m_cb, m_mb


def _build_windows(code_lengths, comm_lengths, t_code, t_comm, h_c, h_m, batch):
    """Per-chain valid-step windows [start, end), broadcast to (B, H_TOT).

    Assumes trailing padding (pack_padded_sequence semantics).
    """
    lc = code_lengths.astype(jnp.int32)
    lm = comm_lengths.astype(jnp.int32)
    zc = jnp.zeros((batch,), jnp.int32)

    def bcast(v, w):
        return jnp.broadcast_to(v[:, None], (batch, w))

    start = jnp.concatenate(
        [bcast(zc, h_c), bcast(t_code - lc, h_c),
         bcast(zc, h_m), bcast(t_comm - lm, h_m)], axis=1)
    end = jnp.concatenate(
        [bcast(lc, h_c), bcast(jnp.full((batch,), t_code, jnp.int32), h_c),
         bcast(lm, h_m), bcast(jnp.full((batch,), t_comm, jnp.int32), h_m)], axis=1)
    return start, end


def _build_xcat(code_x, comm_x, t_max):
    """Undoubled feature slab [code_x | comm_x], time-padded to t_max."""
    def pad_t(x):
        return jnp.pad(x, ((0, t_max - x.shape[0]), (0, 0), (0, 0)))
    return jnp.concatenate([pad_t(code_x), pad_t(comm_x)], axis=-1)


def _round_up(n, m):
    return ((n + m - 1) // m) * m


def code_comm_classifier_forward(params, code_tokens, code_lengths,
                                 comm_tokens, comm_lengths):
    """Forward pass of CodeCommClassifier (model_type='both').

    code_tokens: (T_code, B) int32, comm_tokens: (T_comm, B) int32 — the
    (seq, batch) convention of the PyTorch module before its transpose(0,1).
    Padding must be trailing (as pack_padded_sequence requires).
    """
    # Frozen embedding lookups (nn.Embedding.from_pretrained) — wrapper glue.
    code_x = params["cd_vecs"][code_tokens]            # (T_code, B, E_code)
    comm_x = params["cm_vecs"][comm_tokens]            # (T_comm, B, E_comm)
    t_code, batch, _ = code_x.shape
    t_comm = comm_x.shape[0]
    t_max = max(t_code, t_comm)

    wx, wr, bx, (h_c, h_m, h_tot) = _pack_bilstm_weights(
        params["code_lstm"], params["comm_lstm"])
    m_f, m_cb, m_mb = _build_col_masks(h_c, h_m)
    start, end = _build_windows(code_lengths, comm_lengths,
                                t_code, t_comm, h_c, h_m, batch)
    xcat = _build_xcat(code_x, comm_x, t_max)           # (T_max, B, E_TOT)
    x2d = xcat.reshape(t_max * batch, xcat.shape[-1]).astype(jnp.bfloat16)

    # Lane-pad the head (HID -> mult of 128, CLS -> mult of 128) so the final
    # matmuls and the output store are lane-dense; slice real classes below.
    hid_sz = params["w1"].shape[1]
    cls = params["w2"].shape[1]
    hid_p = _round_up(hid_sz, 128)
    cls_p = _round_up(cls, 128)
    w1p = jnp.pad(params["w1"], ((0, 0), (0, hid_p - hid_sz)))
    b1p = jnp.pad(params["b1"], ((0, 0), (0, hid_p - hid_sz)))
    w2p = jnp.pad(params["w2"], ((0, hid_p - hid_sz), (0, cls_p - cls)))
    b2p = jnp.pad(params["b2"], ((0, 0), (0, cls_p - cls)))

    kernel = functools.partial(_fused_kernel, t_code=t_code, t_comm=t_comm)
    out = pl.pallas_call(
        kernel,
        out_shape=jax.ShapeDtypeStruct((batch, cls_p), jnp.float32),
        in_specs=[_VMEM] * 13,
        out_specs=_VMEM,
        compiler_params=pltpu.CompilerParams(
            vmem_limit_bytes=32 * 1024 * 1024),
    )(x2d, wx, bx, wr, m_f, m_cb, m_mb, start, end, w1p, b1p, w2p, b2p)
    return out[:, :cls]


# ----------------------------------------------------------------------------
# Pure-JAX reference (mirrors the masked packed-sequence biLSTM semantics)
# ----------------------------------------------------------------------------
def _ref_lstm_dir(x, lengths, wih, whh, b, reverse):
    t_len, batch, _ = x.shape
    h_sz = whh.shape[0]
    h = jnp.zeros((batch, h_sz), jnp.float32)
    c = jnp.zeros((batch, h_sz), jnp.float32)
    order = range(t_len - 1, -1, -1) if reverse else range(t_len)
    for t in order:
        m = (t < lengths)[:, None]
        gates = (jnp.dot(x[t], wih, precision=lax.Precision.HIGHEST)
                 + jnp.dot(h, whh, precision=lax.Precision.HIGHEST) + b)
        i = jax.nn.sigmoid(gates[:, :h_sz])
        f = jax.nn.sigmoid(gates[:, h_sz:2 * h_sz])
        g = jnp.tanh(gates[:, 2 * h_sz:3 * h_sz])
        o = jax.nn.sigmoid(gates[:, 3 * h_sz:])
        c_new = f * c + i * g
        h_new = o * jnp.tanh(c_new)
        c = jnp.where(m, c_new, c)
        h = jnp.where(m, h_new, h)
    return h


def reference_forward(params, code_tokens, code_lengths, comm_tokens, comm_lengths):
    code_x = params["cd_vecs"][code_tokens]
    comm_x = params["cm_vecs"][comm_tokens]
    cl, ml = params["code_lstm"], params["comm_lstm"]
    hcf = _ref_lstm_dir(code_x, code_lengths, cl["wih_f"], cl["whh_f"], cl["b_f"], False)
    hcb = _ref_lstm_dir(code_x, code_lengths, cl["wih_b"], cl["whh_b"], cl["b_b"], True)
    hmf = _ref_lstm_dir(comm_x, comm_lengths, ml["wih_f"], ml["whh_f"], ml["b_f"], False)
    hmb = _ref_lstm_dir(comm_x, comm_lengths, ml["wih_b"], ml["whh_b"], ml["b_b"], True)
    rv = jnp.concatenate([hcf, hcb, hmf, hmb], axis=1)
    hid = jnp.maximum(
        jnp.dot(rv, params["w1"], precision=lax.Precision.HIGHEST) + params["b1"], 0.0)
    return jnp.dot(hid, params["w2"], precision=lax.Precision.HIGHEST) + params["b2"]


# ----------------------------------------------------------------------------
# Deterministic parameter construction + demo
# ----------------------------------------------------------------------------
def _nrm(key, shape, scale=0.1):
    return (scale * jax.random.normal(key, shape)).astype(jnp.float32)


def make_lstm_params(key, emb_dim, hidden):
    ks = jax.random.split(key, 6)
    return {
        # forward direction (W_ih^T, W_hh^T, b_ih + b_hh), torch gate order [i,f,g,o]
        "wih_f": _nrm(ks[0], (emb_dim, 4 * hidden)),
        "whh_f": _nrm(ks[1], (hidden, 4 * hidden)),
        "b_f":   _nrm(ks[2], (1, 4 * hidden)),
        # backward direction
        "wih_b": _nrm(ks[3], (emb_dim, 4 * hidden)),
        "whh_b": _nrm(ks[4], (hidden, 4 * hidden)),
        "b_b":   _nrm(ks[5], (1, 4 * hidden)),
    }


if __name__ == "__main__":
    key = jax.random.PRNGKey(0)

    # Small shapes consistent with the module (it is shape-generic).
    B = 8                     # batch (multiple of 8 to fill f32 sublanes)
    T_CODE, T_COMM = 10, 6
    V_CODE, V_COMM = 40, 30
    E_CODE, E_COMM = 32, 32   # pretrained embedding dims (cd_vecs / cm_vecs width)
    H = 32                    # cd_hd_sz == cm_hd_sz  -> packed state width 128
    HID = 64                  # hd_lyr_sz
    CLS = 1                   # cls_sz

    (k_cd_vec, k_cm_vec, k_cd_lstm, k_cm_lstm,
     k_w1, k_b1, k_w2, k_b2, k_cd_tok, k_cm_tok) = jax.random.split(key, 10)

    params = {
        "cd_vecs": _nrm(k_cd_vec, (V_CODE, E_CODE), scale=1.0),
        "cm_vecs": _nrm(k_cm_vec, (V_COMM, E_COMM), scale=1.0),
        "code_lstm": make_lstm_params(k_cd_lstm, E_CODE, H),
        "comm_lstm": make_lstm_params(k_cm_lstm, E_COMM, H),
        "w1": _nrm(k_w1, (4 * H, HID)),     # lstm2hidden (CONCAT_SIZE -> HIDDEN_SZ)
        "b1": _nrm(k_b1, (1, HID)),
        "w2": _nrm(k_w2, (HID, CLS)),       # hidden2label
        "b2": _nrm(k_b2, (1, CLS)),
    }

    code_tokens = jax.random.randint(k_cd_tok, (T_CODE, B), 0, V_CODE, dtype=jnp.int32)
    comm_tokens = jax.random.randint(k_cm_tok, (T_COMM, B), 0, V_COMM, dtype=jnp.int32)
    code_lengths = jnp.array([10, 7, 5, 9, 3, 10, 6, 8], dtype=jnp.int32)
    comm_lengths = jnp.array([6, 4, 6, 3, 5, 2, 6, 1], dtype=jnp.int32)

    fwd = jax.jit(code_comm_classifier_forward)
    y = fwd(params, code_tokens, code_lengths, comm_tokens, comm_lengths)
    y = jax.block_until_ready(y)
    assert y.shape == (B, CLS) and y.dtype == jnp.float32

    # Sanity check against a pure-JAX masked biLSTM reference (f32 HIGHEST);
    # kernel uses bf16 input projection + default MXU precision -> loose tol.
    y_ref = reference_forward(params, code_tokens, code_lengths,
                              comm_tokens, comm_lengths)
    assert bool(jnp.all(jnp.isfinite(y)))
    assert bool(jnp.allclose(y, y_ref, atol=5e-2, rtol=5e-2))

    # TODO(synk): a zero-length sequence yields a zero hidden state here,
    # whereas pack_padded_sequence would raise (benign divergence).
    print("KERNEL_OK")
</pallas_src>

<mosaic_0001>
module attributes {stable_mosaic.version = 11 : i64} {
  func.func @_fused_kernel(%arg0: memref<80x64xbf16, #tpu.memory_space<vmem>>, %arg1: memref<64x512xbf16, #tpu.memory_space<vmem>>, %arg2: memref<1x512xf32, #tpu.memory_space<vmem>>, %arg3: memref<128x512xf32, #tpu.memory_space<vmem>>, %arg4: memref<1x512xf32, #tpu.memory_space<vmem>>, %arg5: memref<1x512xf32, #tpu.memory_space<vmem>>, %arg6: memref<1x512xf32, #tpu.memory_space<vmem>>, %arg7: memref<8x128xi32, #tpu.memory_space<vmem>>, %arg8: memref<8x128xi32, #tpu.memory_space<vmem>>, %arg9: memref<128x128xf32, #tpu.memory_space<vmem>>, %arg10: memref<1x128xf32, #tpu.memory_space<vmem>>, %arg11: memref<128x128xf32, #tpu.memory_space<vmem>>, %arg12: memref<1x128xf32, #tpu.memory_space<vmem>>, %arg13: memref<8x128xf32, #tpu.memory_space<vmem>>) attributes {dimension_semantics = [], scalar_prefetch = 0 : i64, scratch_operands = 0 : i64, tpu.core_type = #tpu.core_type<tc>} {
    %c0 = arith.constant 0 : index
    %c0_0 = arith.constant 0 : index
    %0 = vector.load %arg0[%c0, %c0_0] : memref<80x64xbf16, #tpu.memory_space<vmem>>, vector<80x64xbf16>
    %c0_1 = arith.constant 0 : index
    %c0_2 = arith.constant 0 : index
    %1 = vector.load %arg1[%c0_1, %c0_2] : memref<64x512xbf16, #tpu.memory_space<vmem>>, vector<64x512xbf16>
    %cst = arith.constant dense<0.000000e+00> : vector<80x512xf32>
    %2 = tpu.matmul %0, %1, %cst {dimension_numbers = #tpu.dot_dimension_numbers<[1], [0], [0], [1], [0, 0, 1, 1], [], []>} : vector<80x64xbf16>, vector<64x512xbf16>, vector<80x512xf32> -> vector<80x512xf32>
    %c0_3 = arith.constant 0 : index
    %c0_4 = arith.constant 0 : index
    %3 = vector.load %arg2[%c0_3, %c0_4] : memref<1x512xf32, #tpu.memory_space<vmem>>, vector<1x512xf32>
    %4 = vector.broadcast %3 : vector<1x512xf32> to vector<80x512xf32>
    %5 = arith.addf %2, %4 : vector<80x512xf32>
    %c0_5 = arith.constant 0 : index
    %c0_6 = arith.constant 0 : index
    %6 = vector.load %arg3[%c0_5, %c0_6] : memref<128x512xf32, #tpu.memory_space<vmem>>, vector<128x512xf32>
    %c0_7 = arith.constant 0 : index
    %c0_8 = arith.constant 0 : index
    %7 = vector.load %arg7[%c0_7, %c0_8] : memref<8x128xi32, #tpu.memory_space<vmem>>, vector<8x128xi32>
    %c0_9 = arith.constant 0 : index
    %c0_10 = arith.constant 0 : index
    %8 = vector.load %arg8[%c0_9, %c0_10] : memref<8x128xi32, #tpu.memory_space<vmem>>, vector<8x128xi32>
    %c0_11 = arith.constant 0 : index
    %c0_12 = arith.constant 0 : index
    %9 = vector.load %arg4[%c0_11, %c0_12] : memref<1x512xf32, #tpu.memory_space<vmem>>, vector<1x512xf32>
    %c0_13 = arith.constant 0 : index
    %c0_14 = arith.constant 0 : index
    %10 = vector.load %arg5[%c0_13, %c0_14] : memref<1x512xf32, #tpu.memory_space<vmem>>, vector<1x512xf32>
    %c0_15 = arith.constant 0 : index
    %c0_16 = arith.constant 0 : index
    %11 = vector.load %arg6[%c0_15, %c0_16] : memref<1x512xf32, #tpu.memory_space<vmem>>, vector<1x512xf32>
    %cst_17 = arith.constant 0.000000e+00 : f32
    %12 = vector.broadcast %cst_17 : f32 to vector<8x128xf32>
    %cst_18 = arith.constant 0.000000e+00 : f32
    %13 = vector.broadcast %cst_18 : f32 to vector<8x128xf32>
    %14 = vector.extract_strided_slice %5 {offsets = [0, 0], sizes = [8, 512], strides = [1, 1]} : vector<80x512xf32> to vector<8x512xf32>
    %15 = vector.extract_strided_slice %5 {offsets = [72, 0], sizes = [8, 512], strides = [1, 1]} : vector<80x512xf32> to vector<8x512xf32>
    %16 = vector.extract_strided_slice %5 {offsets = [40, 0], sizes = [8, 512], strides = [1, 1]} : vector<80x512xf32> to vector<8x512xf32>
    %17 = vector.broadcast %9 : vector<1x512xf32> to vector<8x512xf32>
    %18 = arith.mulf %14, %17 : vector<8x512xf32>
    %19 = vector.broadcast %10 : vector<1x512xf32> to vector<8x512xf32>
    %20 = arith.mulf %15, %19 : vector<8x512xf32>
    %21 = arith.addf %18, %20 : vector<8x512xf32>
    %22 = vector.broadcast %11 : vector<1x512xf32> to vector<8x512xf32>
    %23 = arith.mulf %16, %22 : vector<8x512xf32>
    %24 = arith.addf %21, %23 : vector<8x512xf32>
    %cst_19 = arith.constant dense<0.000000e+00> : vector<8x512xf32>
    %25 = tpu.matmul %12, %6, %cst_19 {dimension_numbers = #tpu.dot_dimension_numbers<[1], [0], [0], [1], [0, 0, 1, 1], [], []>} : vector<8x128xf32>, vector<128x512xf32>, vector<8x512xf32> -> vector<8x512xf32>
    %26 = arith.addf %24, %25 : vector<8x512xf32>
    %27 = vector.extract_strided_slice %26 {offsets = [0, 0], sizes = [8, 128], strides = [1, 1]} : vector<8x512xf32> to vector<8x128xf32>
    %28 = arith.negf %27 : vector<8x128xf32>
    %29 = math.exp %28 : vector<8x128xf32>
    %cst_20 = arith.constant 1.000000e+00 : f32
    %30 = vector.broadcast %cst_20 : f32 to vector<8x128xf32>
    %31 = arith.addf %30, %29 : vector<8x128xf32>
    %32 = arith.divf %30, %31 : vector<8x128xf32>
    %33 = vector.extract_strided_slice %26 {offsets = [0, 128], sizes = [8, 128], strides = [1, 1]} : vector<8x512xf32> to vector<8x128xf32>
    %34 = arith.negf %33 : vector<8x128xf32>
    %35 = math.exp %34 : vector<8x128xf32>
    %cst_21 = arith.constant 1.000000e+00 : f32
    %36 = vector.broadcast %cst_21 : f32 to vector<8x128xf32>
    %37 = arith.addf %36, %35 : vector<8x128xf32>
    %38 = arith.divf %36, %37 : vector<8x128xf32>
    %39 = vector.extract_strided_slice %26 {offsets = [0, 256], sizes = [8, 128], strides = [1, 1]} : vector<8x512xf32> to vector<8x128xf32>
    %40 = math.tanh %39 : vector<8x128xf32>
    %41 = vector.extract_strided_slice %26 {offsets = [0, 384], sizes = [8, 128], strides = [1, 1]} : vector<8x512xf32> to vector<8x128xf32>
    %42 = arith.negf %41 : vector<8x128xf32>
    %43 = math.exp %42 : vector<8x128xf32>
    %cst_22 = arith.constant 1.000000e+00 : f32
    %44 = vector.broadcast %cst_22 : f32 to vector<8x128xf32>
    %45 = arith.addf %44, %43 : vector<8x128xf32>
    %46 = arith.divf %44, %45 : vector<8x128xf32>
    %47 = arith.mulf %38, %13 : vector<8x128xf32>
    %48 = arith.mulf %32, %40 : vector<8x128xf32>
    %49 = arith.addf %47, %48 : vector<8x128xf32>
    %50 = math.tanh %49 : vector<8x128xf32>
    %51 = arith.mulf %46, %50 : vector<8x128xf32>
    %c0_i32 = arith.constant 0 : i32
    %52 = vector.broadcast %c0_i32 : i32 to vector<8x128xi32>
    %53 = arith.cmpi sle, %7, %52 : vector<8x128xi32>
    %c0_i32_23 = arith.constant 0 : i32
    %54 = vector.broadcast %c0_i32_23 : i32 to vector<8x128xi32>
    %55 = arith.cmpi sgt, %8, %54 : vector<8x128xi32>
    %56 = arith.andi %53, %55 : vector<8x128xi1>
    %57 = arith.select %56, %49, %13 : vector<8x128xi1>, vector<8x128xf32>
    %58 = arith.select %56, %51, %12 : vector<8x128xi1>, vector<8x128xf32>
    %59 = vector.extract_strided_slice %5 {offsets = [8, 0], sizes = [8, 512], strides = [1, 1]} : vector<80x512xf32> to vector<8x512xf32>
    %60 = vector.extract_strided_slice %5 {offsets = [64, 0], sizes = [8, 512], strides = [1, 1]} : vector<80x512xf32> to vector<8x512xf32>
    %61 = vector.extract_strided_slice %5 {offsets = [32, 0], sizes = [8, 512], strides = [1, 1]} : vector<80x512xf32> to vector<8x512xf32>
    %62 = vector.broadcast %9 : vector<1x512xf32> to vector<8x512xf32>
    %63 = arith.mulf %59, %62 : vector<8x512xf32>
    %64 = vector.broadcast %10 : vector<1x512xf32> to vector<8x512xf32>
    %65 = arith.mulf %60, %64 : vector<8x512xf32>
    %66 = arith.addf %63, %65 : vector<8x512xf32>
    %67 = vector.broadcast %11 : vector<1x512xf32> to vector<8x512xf32>
    %68 = arith.mulf %61, %67 : vector<8x512xf32>
    %69 = arith.addf %66, %68 : vector<8x512xf32>
    %cst_24 = arith.constant dense<0.000000e+00> : vector<8x512xf32>
    %70 = tpu.matmul %58, %6, %cst_24 {dimension_numbers = #tpu.dot_dimension_numbers<[1], [0], [0], [1], [0, 0, 1, 1], [], []>} : vector<8x128xf32>, vector<128x512xf32>, vector<8x512xf32> -> vector<8x512xf32>
    %71 = arith.addf %69, %70 : vector<8x512xf32>
    %72 = vector.extract_strided_slice %71 {offsets = [0, 0], sizes = [8, 128], strides = [1, 1]} : vector<8x512xf32> to vector<8x128xf32>
    %73 = arith.negf %72 : vector<8x128xf32>
    %74 = math.exp %73 : vector<8x128xf32>
    %cst_25 = arith.constant 1.000000e+00 : f32
    %75 = vector.broadcast %cst_25 : f32 to vector<8x128xf32>
    %76 = arith.addf %75, %74 : vector<8x128xf32>
    %77 = arith.divf %75, %76 : vector<8x128xf32>
    %78 = vector.extract_strided_slice %71 {offsets = [0, 128], sizes = [8, 128], strides = [1, 1]} : vector<8x512xf32> to vector<8x128xf32>
    %79 = arith.negf %78 : vector<8x128xf32>
    %80 = math.exp %79 : vector<8x128xf32>
    %cst_26 = arith.constant 1.000000e+00 : f32
    %81 = vector.broadcast %cst_26 : f32 to vector<8x128xf32>
    %82 = arith.addf %81, %80 : vector<8x128xf32>
    %83 = arith.divf %81, %82 : vector<8x128xf32>
    %84 = vector.extract_strided_slice %71 {offsets = [0, 256], sizes = [8, 128], strides = [1, 1]} : vector<8x512xf32> to vector<8x128xf32>
    %85 = math.tanh %84 : vector<8x128xf32>
    %86 = vector.extract_strided_slice %71 {offsets = [0, 384], sizes = [8, 128], strides = [1, 1]} : vector<8x512xf32> to vector<8x128xf32>
    %87 = arith.negf %86 : vector<8x128xf32>
    %88 = math.exp %87 : vector<8x128xf32>
    %cst_27 = arith.constant 1.000000e+00 : f32
    %89 = vector.broadcast %cst_27 : f32 to vector<8x128xf32>
    %90 = arith.addf %89, %88 : vector<8x128xf32>
    %91 = arith.divf %89, %90 : vector<8x128xf32>
    %92 = arith.mulf %83, %57 : vector<8x128xf32>
    %93 = arith.mulf %77, %85 : vector<8x128xf32>
    %94 = arith.addf %92, %93 : vector<8x128xf32>
    %95 = math.tanh %94 : vector<8x128xf32>
    %96 = arith.mulf %91, %95 : vector<8x128xf32>
    %c1_i32 = arith.constant 1 : i32
    %97 = vector.broadcast %c1_i32 : i32 to vector<8x128xi32>
    %98 = arith.cmpi sle, %7, %97 : vector<8x128xi32>
    %c1_i32_28 = arith.constant 1 : i32
    %99 = vector.broadcast %c1_i32_28 : i32 to vector<8x128xi32>
    %100 = arith.cmpi sgt, %8, %99 : vector<8x128xi32>
    %101 = arith.andi %98, %100 : vector<8x128xi1>
    %102 = arith.select %101, %94, %57 : vector<8x128xi1>, vector<8x128xf32>
    %103 = arith.select %101, %96, %58 : vector<8x128xi1>, vector<8x128xf32>
    %104 = vector.extract_strided_slice %5 {offsets = [16, 0], sizes = [8, 512], strides = [1, 1]} : vector<80x512xf32> to vector<8x512xf32>
    %105 = vector.extract_strided_slice %5 {offsets = [56, 0], sizes = [8, 512], strides = [1, 1]} : vector<80x512xf32> to vector<8x512xf32>
    %106 = vector.extract_strided_slice %5 {offsets = [24, 0], sizes = [8, 512], strides = [1, 1]} : vector<80x512xf32> to vector<8x512xf32>
    %107 = vector.broadcast %9 : vector<1x512xf32> to vector<8x512xf32>
    %108 = arith.mulf %104, %107 : vector<8x512xf32>
    %109 = vector.broadcast %10 : vector<1x512xf32> to vector<8x512xf32>
    %110 = arith.mulf %105, %109 : vector<8x512xf32>
    %111 = arith.addf %108, %110 : vector<8x512xf32>
    %112 = vector.broadcast %11 : vector<1x512xf32> to vector<8x512xf32>
    %113 = arith.mulf %106, %112 : vector<8x512xf32>
    %114 = arith.addf %111, %113 : vector<8x512xf32>
    %cst_29 = arith.constant dense<0.000000e+00> : vector<8x512xf32>
    %115 = tpu.matmul %103, %6, %cst_29 {dimension_numbers = #tpu.dot_dimension_numbers<[1], [0], [0], [1], [0, 0, 1, 1], [], []>} : vector<8x128xf32>, vector<128x512xf32>, vector<8x512xf32> -> vector<8x512xf32>
    %116 = arith.addf %114, %115 : vector<8x512xf32>
    %117 = vector.extract_strided_slice %116 {offsets = [0, 0], sizes = [8, 128], strides = [1, 1]} : vector<8x512xf32> to vector<8x128xf32>
    %118 = arith.negf %117 : vector<8x128xf32>
    %119 = math.exp %118 : vector<8x128xf32>
    %cst_30 = arith.constant 1.000000e+00 : f32
    %120 = vector.broadcast %cst_30 : f32 to vector<8x128xf32>
    %121 = arith.addf %120, %119 : vector<8x128xf32>
    %122 = arith.divf %120, %121 : vector<8x128xf32>
    %123 = vector.extract_strided_slice %116 {offsets = [0, 128], sizes = [8, 128], strides = [1, 1]} : vector<8x512xf32> to vector<8x128xf32>
    %124 = arith.negf %123 : vector<8x128xf32>
    %125 = math.exp %124 : vector<8x128xf32>
    %cst_31 = arith.constant 1.000000e+00 : f32
    %126 = vector.broadcast %cst_31 : f32 to vector<8x128xf32>
    %127 = arith.addf %126, %125 : vector<8x128xf32>
    %128 = arith.divf %126, %127 : vector<8x128xf32>
    %129 = vector.extract_strided_slice %116 {offsets = [0, 256], sizes = [8, 128], strides = [1, 1]} : vector<8x512xf32> to vector<8x128xf32>
    %130 = math.tanh %129 : vector<8x128xf32>
    %131 = vector.extract_strided_slice %116 {offsets = [0, 384], sizes = [8, 128], strides = [1, 1]} : vector<8x512xf32> to vector<8x128xf32>
    %132 = arith.negf %131 : vector<8x128xf32>
    %133 = math.exp %132 : vector<8x128xf32>
    %cst_32 = arith.constant 1.000000e+00 : f32
    %134 = vector.broadcast %cst_32 : f32 to vector<8x128xf32>
    %135 = arith.addf %134, %133 : vector<8x128xf32>
    %136 = arith.divf %134, %135 : vector<8x128xf32>
    %137 = arith.mulf %128, %102 : vector<8x128xf32>
    %138 = arith.mulf %122, %130 : vector<8x128xf32>
    %139 = arith.addf %137, %138 : vector<8x128xf32>
    %140 = math.tanh %139 : vector<8x128xf32>
    %141 = arith.mulf %136, %140 : vector<8x128xf32>
    %c2_i32 = arith.constant 2 : i32
    %142 = vector.broadcast %c2_i32 : i32 to vector<8x128xi32>
    %143 = arith.cmpi sle, %7, %142 : vector<8x128xi32>
    %c2_i32_33 = arith.constant 2 : i32
    %144 = vector.broadcast %c2_i32_33 : i32 to vector<8x128xi32>
    %145 = arith.cmpi sgt, %8, %144 : vector<8x128xi32>
    %146 = arith.andi %143, %145 : vector<8x128xi1>
    %147 = arith.select %146, %139, %102 : vector<8x128xi1>, vector<8x128xf32>
    %148 = arith.select %146, %141, %103 : vector<8x128xi1>, vector<8x128xf32>
    %149 = vector.extract_strided_slice %5 {offsets = [24, 0], sizes = [8, 512], strides = [1, 1]} : vector<80x512xf32> to vector<8x512xf32>
    %150 = vector.extract_strided_slice %5 {offsets = [48, 0], sizes = [8, 512], strides = [1, 1]} : vector<80x512xf32> to vector<8x512xf32>
    %151 = vector.extract_strided_slice %5 {offsets = [16, 0], sizes = [8, 512], strides = [1, 1]} : vector<80x512xf32> to vector<8x512xf32>
    %152 = vector.broadcast %9 : vector<1x512xf32> to vector<8x512xf32>
    %153 = arith.mulf %149, %152 : vector<8x512xf32>
    %154 = vector.broadcast %10 : vector<1x512xf32> to vector<8x512xf32>
    %155 = arith.mulf %150, %154 : vector<8x512xf32>
    %156 = arith.addf %153, %155 : vector<8x512xf32>
    %157 = vector.broadcast %11 : vector<1x512xf32> to vector<8x512xf32>
    %158 = arith.mulf %151, %157 : vector<8x512xf32>
    %159 = arith.addf %156, %158 : vector<8x512xf32>
    %cst_34 = arith.constant dense<0.000000e+00> : vector<8x512xf32>
    %160 = tpu.matmul %148, %6, %cst_34 {dimension_numbers = #tpu.dot_dimension_numbers<[1], [0], [0], [1], [0, 0, 1, 1], [], []>} : vector<8x128xf32>, vector<128x512xf32>, vector<8x512xf32> -> vector<8x512xf32>
    %161 = arith.addf %159, %160 : vector<8x512xf32>
    %162 = vector.extract_strided_slice %161 {offsets = [0, 0], sizes = [8, 128], strides = [1, 1]} : vector<8x512xf32> to vector<8x128xf32>
    %163 = arith.negf %162 : vector<8x128xf32>
    %164 = math.exp %163 : vector<8x128xf32>
    %cst_35 = arith.constant 1.000000e+00 : f32
    %165 = vector.broadcast %cst_35 : f32 to vector<8x128xf32>
    %166 = arith.addf %165, %164 : vector<8x128xf32>
    %167 = arith.divf %165, %166 : vector<8x128xf32>
    %168 = vector.extract_strided_slice %161 {offsets = [0, 128], sizes = [8, 128], strides = [1, 1]} : vector<8x512xf32> to vector<8x128xf32>
    %169 = arith.negf %168 : vector<8x128xf32>
    %170 = math.exp %169 : vector<8x128xf32>
    %cst_36 = arith.constant 1.000000e+00 : f32
    %171 = vector.broadcast %cst_36 : f32 to vector<8x128xf32>
    %172 = arith.addf %171, %170 : vector<8x128xf32>
    %173 = arith.divf %171, %172 : vector<8x128xf32>
    %174 = vector.extract_strided_slice %161 {offsets = [0, 256], sizes = [8, 128], strides = [1, 1]} : vector<8x512xf32> to vector<8x128xf32>
    %175 = math.tanh %174 : vector<8x128xf32>
    %176 = vector.extract_strided_slice %161 {offsets = [0, 384], sizes = [8, 128], strides = [1, 1]} : vector<8x512xf32> to vector<8x128xf32>
    %177 = arith.negf %176 : vector<8x128xf32>
    %178 = math.exp %177 : vector<8x128xf32>
    %cst_37 = arith.constant 1.000000e+00 : f32
    %179 = vector.broadcast %cst_37 : f32 to vector<8x128xf32>
    %180 = arith.addf %179, %178 : vector<8x128xf32>
    %181 = arith.divf %179, %180 : vector<8x128xf32>
    %182 = arith.mulf %173, %147 : vector<8x128xf32>
    %183 = arith.mulf %167, %175 : vector<8x128xf32>
    %184 = arith.addf %182, %183 : vector<8x128xf32>
    %185 = math.tanh %184 : vector<8x128xf32>
    %186 = arith.mulf %181, %185 : vector<8x128xf32>
    %c3_i32 = arith.constant 3 : i32
    %187 = vector.broadcast %c3_i32 : i32 to vector<8x128xi32>
    %188 = arith.cmpi sle, %7, %187 : vector<8x128xi32>
    %c3_i32_38 = arith.constant 3 : i32
    %189 = vector.broadcast %c3_i32_38 : i32 to vector<8x128xi32>
    %190 = arith.cmpi sgt, %8, %189 : vector<8x128xi32>
    %191 = arith.andi %188, %190 : vector<8x128xi1>
    %192 = arith.select %191, %184, %147 : vector<8x128xi1>, vector<8x128xf32>
    %193 = arith.select %191, %186, %148 : vector<8x128xi1>, vector<8x128xf32>
    %194 = vector.extract_strided_slice %5 {offsets = [32, 0], sizes = [8, 512], strides = [1, 1]} : vector<80x512xf32> to vector<8x512xf32>
    %195 = vector.extract_strided_slice %5 {offsets = [40, 0], sizes = [8, 512], strides = [1, 1]} : vector<80x512xf32> to vector<8x512xf32>
    %196 = vector.extract_strided_slice %5 {offsets = [8, 0], sizes = [8, 512], strides = [1, 1]} : vector<80x512xf32> to vector<8x512xf32>
    %197 = vector.broadcast %9 : vector<1x512xf32> to vector<8x512xf32>
    %198 = arith.mulf %194, %197 : vector<8x512xf32>
    %199 = vector.broadcast %10 : vector<1x512xf32> to vector<8x512xf32>
    %200 = arith.mulf %195, %199 : vector<8x512xf32>
    %201 = arith.addf %198, %200 : vector<8x512xf32>
    %202 = vector.broadcast %11 : vector<1x512xf32> to vector<8x512xf32>
    %203 = arith.mulf %196, %202 : vector<8x512xf32>
    %204 = arith.addf %201, %203 : vector<8x512xf32>
    %cst_39 = arith.constant dense<0.000000e+00> : vector<8x512xf32>
    %205 = tpu.matmul %193, %6, %cst_39 {dimension_numbers = #tpu.dot_dimension_numbers<[1], [0], [0], [1], [0, 0, 1, 1], [], []>} : vector<8x128xf32>, vector<128x512xf32>, vector<8x512xf32> -> vector<8x512xf32>
    %206 = arith.addf %204, %205 : vector<8x512xf32>
    %207 = vector.extract_strided_slice %206 {offsets = [0, 0], sizes = [8, 128], strides = [1, 1]} : vector<8x512xf32> to vector<8x128xf32>
    %208 = arith.negf %207 : vector<8x128xf32>
    %209 = math.exp %208 : vector<8x128xf32>
    %cst_40 = arith.constant 1.000000e+00 : f32
    %210 = vector.broadcast %cst_40 : f32 to vector<8x128xf32>
    %211 = arith.addf %210, %209 : vector<8x128xf32>
    %212 = arith.divf %210, %211 : vector<8x128xf32>
    %213 = vector.extract_strided_slice %206 {offsets = [0, 128], sizes = [8, 128], strides = [1, 1]} : vector<8x512xf32> to vector<8x128xf32>
    %214 = arith.negf %213 : vector<8x128xf32>
    %215 = math.exp %214 : vector<8x128xf32>
    %cst_41 = arith.constant 1.000000e+00 : f32
    %216 = vector.broadcast %cst_41 : f32 to vector<8x128xf32>
    %217 = arith.addf %216, %215 : vector<8x128xf32>
    %218 = arith.divf %216, %217 : vector<8x128xf32>
    %219 = vector.extract_strided_slice %206 {offsets = [0, 256], sizes = [8, 128], strides = [1, 1]} : vector<8x512xf32> to vector<8x128xf32>
    %220 = math.tanh %219 : vector<8x128xf32>
    %221 = vector.extract_strided_slice %206 {offsets = [0, 384], sizes = [8, 128], strides = [1, 1]} : vector<8x512xf32> to vector<8x128xf32>
    %222 = arith.negf %221 : vector<8x128xf32>
    %223 = math.exp %222 : vector<8x128xf32>
    %cst_42 = arith.constant 1.000000e+00 : f32
    %224 = vector.broadcast %cst_42 : f32 to vector<8x128xf32>
    %225 = arith.addf %224, %223 : vector<8x128xf32>
    %226 = arith.divf %224, %225 : vector<8x128xf32>
    %227 = arith.mulf %218, %192 : vector<8x128xf32>
    %228 = arith.mulf %212, %220 : vector<8x128xf32>
    %229 = arith.addf %227, %228 : vector<8x128xf32>
    %230 = math.tanh %229 : vector<8x128xf32>
    %231 = arith.mulf %226, %230 : vector<8x128xf32>
    %c4_i32 = arith.constant 4 : i32
    %232 = vector.broadcast %c4_i32 : i32 to vector<8x128xi32>
    %233 = arith.cmpi sle, %7, %232 : vector<8x128xi32>
    %c4_i32_43 = arith.constant 4 : i32
    %234 = vector.broadcast %c4_i32_43 : i32 to vector<8x128xi32>
    %235 = arith.cmpi sgt, %8, %234 : vector<8x128xi32>
    %236 = arith.andi %233, %235 : vector<8x128xi1>
    %237 = arith.select %236, %229, %192 : vector<8x128xi1>, vector<8x128xf32>
    %238 = arith.select %236, %231, %193 : vector<8x128xi1>, vector<8x128xf32>
    %239 = vector.extract_strided_slice %5 {offsets = [40, 0], sizes = [8, 512], strides = [1, 1]} : vector<80x512xf32> to vector<8x512xf32>
    %240 = vector.extract_strided_slice %5 {offsets = [32, 0], sizes = [8, 512], strides = [1, 1]} : vector<80x512xf32> to vector<8x512xf32>
    %241 = vector.extract_strided_slice %5 {offsets = [0, 0], sizes = [8, 512], strides = [1, 1]} : vector<80x512xf32> to vector<8x512xf32>
    %242 = vector.broadcast %9 : vector<1x512xf32> to vector<8x512xf32>
    %243 = arith.mulf %239, %242 : vector<8x512xf32>
    %244 = vector.broadcast %10 : vector<1x512xf32> to vector<8x512xf32>
    %245 = arith.mulf %240, %244 : vector<8x512xf32>
    %246 = arith.addf %243, %245 : vector<8x512xf32>
    %247 = vector.broadcast %11 : vector<1x512xf32> to vector<8x512xf32>
    %248 = arith.mulf %241, %247 : vector<8x512xf32>
    %249 = arith.addf %246, %248 : vector<8x512xf32>
    %cst_44 = arith.constant dense<0.000000e+00> : vector<8x512xf32>
    %250 = tpu.matmul %238, %6, %cst_44 {dimension_numbers = #tpu.dot_dimension_numbers<[1], [0], [0], [1], [0, 0, 1, 1], [], []>} : vector<8x128xf32>, vector<128x512xf32>, vector<8x512xf32> -> vector<8x512xf32>
    %251 = arith.addf %249, %250 : vector<8x512xf32>
    %252 = vector.extract_strided_slice %251 {offsets = [0, 0], sizes = [8, 128], strides = [1, 1]} : vector<8x512xf32> to vector<8x128xf32>
    %253 = arith.negf %252 : vector<8x128xf32>
    %254 = math.exp %253 : vector<8x128xf32>
    %cst_45 = arith.constant 1.000000e+00 : f32
    %255 = vector.broadcast %cst_45 : f32 to vector<8x128xf32>
    %256 = arith.addf %255, %254 : vector<8x128xf32>
    %257 = arith.divf %255, %256 : vector<8x128xf32>
    %258 = vector.extract_strided_slice %251 {offsets = [0, 128], sizes = [8, 128], strides = [1, 1]} : vector<8x512xf32> to vector<8x128xf32>
    %259 = arith.negf %258 : vector<8x128xf32>
    %260 = math.exp %259 : vector<8x128xf32>
    %cst_46 = arith.constant 1.000000e+00 : f32
    %261 = vector.broadcast %cst_46 : f32 to vector<8x128xf32>
    %262 = arith.addf %261, %260 : vector<8x128xf32>
    %263 = arith.divf %261, %262 : vector<8x128xf32>
    %264 = vector.extract_strided_slice %251 {offsets = [0, 256], sizes = [8, 128], strides = [1, 1]} : vector<8x512xf32> to vector<8x128xf32>
    %265 = math.tanh %264 : vector<8x128xf32>
    %266 = vector.extract_strided_slice %251 {offsets = [0, 384], sizes = [8, 128], strides = [1, 1]} : vector<8x512xf32> to vector<8x128xf32>
    %267 = arith.negf %266 : vector<8x128xf32>
    %268 = math.exp %267 : vector<8x128xf32>
    %cst_47 = arith.constant 1.000000e+00 : f32
    %269 = vector.broadcast %cst_47 : f32 to vector<8x128xf32>
    %270 = arith.addf %269, %268 : vector<8x128xf32>
    %271 = arith.divf %269, %270 : vector<8x128xf32>
    %272 = arith.mulf %263, %237 : vector<8x128xf32>
    %273 = arith.mulf %257, %265 : vector<8x128xf32>
    %274 = arith.addf %272, %273 : vector<8x128xf32>
    %275 = math.tanh %274 : vector<8x128xf32>
    %276 = arith.mulf %271, %275 : vector<8x128xf32>
    %c5_i32 = arith.constant 5 : i32
    %277 = vector.broadcast %c5_i32 : i32 to vector<8x128xi32>
    %278 = arith.cmpi sle, %7, %277 : vector<8x128xi32>
    %c5_i32_48 = arith.constant 5 : i32
    %279 = vector.broadcast %c5_i32_48 : i32 to vector<8x128xi32>
    %280 = arith.cmpi sgt, %8, %279 : vector<8x128xi32>
    %281 = arith.andi %278, %280 : vector<8x128xi1>
    %282 = arith.select %281, %274, %237 : vector<8x128xi1>, vector<8x128xf32>
    %283 = arith.select %281, %276, %238 : vector<8x128xi1>, vector<8x128xf32>
    %284 = vector.extract_strided_slice %5 {offsets = [48, 0], sizes = [8, 512], strides = [1, 1]} : vector<80x512xf32> to vector<8x512xf32>
    %285 = vector.extract_strided_slice %5 {offsets = [24, 0], sizes = [8, 512], strides = [1, 1]} : vector<80x512xf32> to vector<8x512xf32>
    %286 = vector.extract_strided_slice %5 {offsets = [0, 0], sizes = [8, 512], strides = [1, 1]} : vector<80x512xf32> to vector<8x512xf32>
    %287 = vector.broadcast %9 : vector<1x512xf32> to vector<8x512xf32>
    %288 = arith.mulf %284, %287 : vector<8x512xf32>
    %289 = vector.broadcast %10 : vector<1x512xf32> to vector<8x512xf32>
    %290 = arith.mulf %285, %289 : vector<8x512xf32>
    %291 = arith.addf %288, %290 : vector<8x512xf32>
    %292 = vector.broadcast %11 : vector<1x512xf32> to vector<8x512xf32>
    %293 = arith.mulf %286, %292 : vector<8x512xf32>
    %294 = arith.addf %291, %293 : vector<8x512xf32>
    %cst_49 = arith.constant dense<0.000000e+00> : vector<8x512xf32>
    %295 = tpu.matmul %283, %6, %cst_49 {dimension_numbers = #tpu.dot_dimension_numbers<[1], [0], [0], [1], [0, 0, 1, 1], [], []>} : vector<8x128xf32>, vector<128x512xf32>, vector<8x512xf32> -> vector<8x512xf32>
    %296 = arith.addf %294, %295 : vector<8x512xf32>
    %297 = vector.extract_strided_slice %296 {offsets = [0, 0], sizes = [8, 128], strides = [1, 1]} : vector<8x512xf32> to vector<8x128xf32>
    %298 = arith.negf %297 : vector<8x128xf32>
    %299 = math.exp %298 : vector<8x128xf32>
    %cst_50 = arith.constant 1.000000e+00 : f32
    %300 = vector.broadcast %cst_50 : f32 to vector<8x128xf32>
    %301 = arith.addf %300, %299 : vector<8x128xf32>
    %302 = arith.divf %300, %301 : vector<8x128xf32>
    %303 = vector.extract_strided_slice %296 {offsets = [0, 128], sizes = [8, 128], strides = [1, 1]} : vector<8x512xf32> to vector<8x128xf32>
    %304 = arith.negf %303 : vector<8x128xf32>
    %305 = math.exp %304 : vector<8x128xf32>
    %cst_51 = arith.constant 1.000000e+00 : f32
    %306 = vector.broadcast %cst_51 : f32 to vector<8x128xf32>
    %307 = arith.addf %306, %305 : vector<8x128xf32>
    %308 = arith.divf %306, %307 : vector<8x128xf32>
    %309 = vector.extract_strided_slice %296 {offsets = [0, 256], sizes = [8, 128], strides = [1, 1]} : vector<8x512xf32> to vector<8x128xf32>
    %310 = math.tanh %309 : vector<8x128xf32>
    %311 = vector.extract_strided_slice %296 {offsets = [0, 384], sizes = [8, 128], strides = [1, 1]} : vector<8x512xf32> to vector<8x128xf32>
    %312 = arith.negf %311 : vector<8x128xf32>
    %313 = math.exp %312 : vector<8x128xf32>
    %cst_52 = arith.constant 1.000000e+00 : f32
    %314 = vector.broadcast %cst_52 : f32 to vector<8x128xf32>
    %315 = arith.addf %314, %313 : vector<8x128xf32>
    %316 = arith.divf %314, %315 : vector<8x128xf32>
    %317 = arith.mulf %308, %282 : vector<8x128xf32>
    %318 = arith.mulf %302, %310 : vector<8x128xf32>
    %319 = arith.addf %317, %318 : vector<8x128xf32>
    %320 = math.tanh %319 : vector<8x128xf32>
    %321 = arith.mulf %316, %320 : vector<8x128xf32>
    %c6_i32 = arith.constant 6 : i32
    %322 = vector.broadcast %c6_i32 : i32 to vector<8x128xi32>
    %323 = arith.cmpi sle, %7, %322 : vector<8x128xi32>
    %c6_i32_53 = arith.constant 6 : i32
    %324 = vector.broadcast %c6_i32_53 : i32 to vector<8x128xi32>
    %325 = arith.cmpi sgt, %8, %324 : vector<8x128xi32>
    %326 = arith.andi %323, %325 : vector<8x128xi1>
    %327 = arith.select %326, %319, %282 : vector<8x128xi1>, vector<8x128xf32>
    %328 = arith.select %326, %321, %283 : vector<8x128xi1>, vector<8x128xf32>
    %329 = vector.extract_strided_slice %5 {offsets = [56, 0], sizes = [8, 512], strides = [1, 1]} : vector<80x512xf32> to vector<8x512xf32>
    %330 = vector.extract_strided_slice %5 {offsets = [16, 0], sizes = [8, 512], strides = [1, 1]} : vector<80x512xf32> to vector<8x512xf32>
    %331 = vector.extract_strided_slice %5 {offsets = [0, 0], sizes = [8, 512], strides = [1, 1]} : vector<80x512xf32> to vector<8x512xf32>
    %332 = vector.broadcast %9 : vector<1x512xf32> to vector<8x512xf32>
    %333 = arith.mulf %329, %332 : vector<8x512xf32>
    %334 = vector.broadcast %10 : vector<1x512xf32> to vector<8x512xf32>
    %335 = arith.mulf %330, %334 : vector<8x512xf32>
    %336 = arith.addf %333, %335 : vector<8x512xf32>
    %337 = vector.broadcast %11 : vector<1x512xf32> to vector<8x512xf32>
    %338 = arith.mulf %331, %337 : vector<8x512xf32>
    %339 = arith.addf %336, %338 : vector<8x512xf32>
    %cst_54 = arith.constant dense<0.000000e+00> : vector<8x512xf32>
    %340 = tpu.matmul %328, %6, %cst_54 {dimension_numbers = #tpu.dot_dimension_numbers<[1], [0], [0], [1], [0, 0, 1, 1], [], []>} : vector<8x128xf32>, vector<128x512xf32>, vector<8x512xf32> -> vector<8x512xf32>
    %341 = arith.addf %339, %340 : vector<8x512xf32>
    %342 = vector.extract_strided_slice %341 {offsets = [0, 0], sizes = [8, 128], strides = [1, 1]} : vector<8x512xf32> to vector<8x128xf32>
    %343 = arith.negf %342 : vector<8x128xf32>
    %344 = math.exp %343 : vector<8x128xf32>
    %cst_55 = arith.constant 1.000000e+00 : f32
    %345 = vector.broadcast %cst_55 : f32 to vector<8x128xf32>
    %346 = arith.addf %345, %344 : vector<8x128xf32>
    %347 = arith.divf %345, %346 : vector<8x128xf32>
    %348 = vector.extract_strided_slice %341 {offsets = [0, 128], sizes = [8, 128], strides = [1, 1]} : vector<8x512xf32> to vector<8x128xf32>
    %349 = arith.negf %348 : vector<8x128xf32>
    %350 = math.exp %349 : vector<8x128xf32>
    %cst_56 = arith.constant 1.000000e+00 : f32
    %351 = vector.broadcast %cst_56 : f32 to vector<8x128xf32>
    %352 = arith.addf %351, %350 : vector<8x128xf32>
    %353 = arith.divf %351, %352 : vector<8x128xf32>
    %354 = vector.extract_strided_slice %341 {offsets = [0, 256], sizes = [8, 128], strides = [1, 1]} : vector<8x512xf32> to vector<8x128xf32>
    %355 = math.tanh %354 : vector<8x128xf32>
    %356 = vector.extract_strided_slice %341 {offsets = [0, 384], sizes = [8, 128], strides = [1, 1]} : vector<8x512xf32> to vector<8x128xf32>
    %357 = arith.negf %356 : vector<8x128xf32>
    %358 = math.exp %357 : vector<8x128xf32>
    %cst_57 = arith.constant 1.000000e+00 : f32
    %359 = vector.broadcast %cst_57 : f32 to vector<8x128xf32>
    %360 = arith.addf %359, %358 : vector<8x128xf32>
    %361 = arith.divf %359, %360 : vector<8x128xf32>
    %362 = arith.mulf %353, %327 : vector<8x128xf32>
    %363 = arith.mulf %347, %355 : vector<8x128xf32>
    %364 = arith.addf %362, %363 : vector<8x128xf32>
    %365 = math.tanh %364 : vector<8x128xf32>
    %366 = arith.mulf %361, %365 : vector<8x128xf32>
    %c7_i32 = arith.constant 7 : i32
    %367 = vector.broadcast %c7_i32 : i32 to vector<8x128xi32>
    %368 = arith.cmpi sle, %7, %367 : vector<8x128xi32>
    %c7_i32_58 = arith.constant 7 : i32
    %369 = vector.broadcast %c7_i32_58 : i32 to vector<8x128xi32>
    %370 = arith.cmpi sgt, %8, %369 : vector<8x128xi32>
    %371 = arith.andi %368, %370 : vector<8x128xi1>
    %372 = arith.select %371, %364, %327 : vector<8x128xi1>, vector<8x128xf32>
    %373 = arith.select %371, %366, %328 : vector<8x128xi1>, vector<8x128xf32>
    %374 = vector.extract_strided_slice %5 {offsets = [64, 0], sizes = [8, 512], strides = [1, 1]} : vector<80x512xf32> to vector<8x512xf32>
    %375 = vector.extract_strided_slice %5 {offsets = [8, 0], sizes = [8, 512], strides = [1, 1]} : vector<80x512xf32> to vector<8x512xf32>
    %376 = vector.extract_strided_slice %5 {offsets = [0, 0], sizes = [8, 512], strides = [1, 1]} : vector<80x512xf32> to vector<8x512xf32>
    %377 = vector.broadcast %9 : vector<1x512xf32> to vector<8x512xf32>
    %378 = arith.mulf %374, %377 : vector<8x512xf32>
    %379 = vector.broadcast %10 : vector<1x512xf32> to vector<8x512xf32>
    %380 = arith.mulf %375, %379 : vector<8x512xf32>
    %381 = arith.addf %378, %380 : vector<8x512xf32>
    %382 = vector.broadcast %11 : vector<1x512xf32> to vector<8x512xf32>
    %383 = arith.mulf %376, %382 : vector<8x512xf32>
    %384 = arith.addf %381, %383 : vector<8x512xf32>
    %cst_59 = arith.constant dense<0.000000e+00> : vector<8x512xf32>
    %385 = tpu.matmul %373, %6, %cst_59 {dimension_numbers = #tpu.dot_dimension_numbers<[1], [0], [0], [1], [0, 0, 1, 1], [], []>} : vector<8x128xf32>, vector<128x512xf32>, vector<8x512xf32> -> vector<8x512xf32>
    %386 = arith.addf %384, %385 : vector<8x512xf32>
    %387 = vector.extract_strided_slice %386 {offsets = [0, 0], sizes = [8, 128], strides = [1, 1]} : vector<8x512xf32> to vector<8x128xf32>
    %388 = arith.negf %387 : vector<8x128xf32>
    %389 = math.exp %388 : vector<8x128xf32>
    %cst_60 = arith.constant 1.000000e+00 : f32
    %390 = vector.broadcast %cst_60 : f32 to vector<8x128xf32>
    %391 = arith.addf %390, %389 : vector<8x128xf32>
    %392 = arith.divf %390, %391 : vector<8x128xf32>
    %393 = vector.extract_strided_slice %386 {offsets = [0, 128], sizes = [8, 128], strides = [1, 1]} : vector<8x512xf32> to vector<8x128xf32>
    %394 = arith.negf %393 : vector<8x128xf32>
    %395 = math.exp %394 : vector<8x128xf32>
    %cst_61 = arith.constant 1.000000e+00 : f32
    %396 = vector.broadcast %cst_61 : f32 to vector<8x128xf32>
    %397 = arith.addf %396, %395 : vector<8x128xf32>
    %398 = arith.divf %396, %397 : vector<8x128xf32>
    %399 = vector.extract_strided_slice %386 {offsets = [0, 256], sizes = [8, 128], strides = [1, 1]} : vector<8x512xf32> to vector<8x128xf32>
    %400 = math.tanh %399 : vector<8x128xf32>
    %401 = vector.extract_strided_slice %386 {offsets = [0, 384], sizes = [8, 128], strides = [1, 1]} : vector<8x512xf32> to vector<8x128xf32>
    %402 = arith.negf %401 : vector<8x128xf32>
    %403 = math.exp %402 : vector<8x128xf32>
    %cst_62 = arith.constant 1.000000e+00 : f32
    %404 = vector.broadcast %cst_62 : f32 to vector<8x128xf32>
    %405 = arith.addf %404, %403 : vector<8x128xf32>
    %406 = arith.divf %404, %405 : vector<8x128xf32>
    %407 = arith.mulf %398, %372 : vector<8x128xf32>
    %408 = arith.mulf %392, %400 : vector<8x128xf32>
    %409 = arith.addf %407, %408 : vector<8x128xf32>
    %410 = math.tanh %409 : vector<8x128xf32>
    %411 = arith.mulf %406, %410 : vector<8x128xf32>
    %c8_i32 = arith.constant 8 : i32
    %412 = vector.broadcast %c8_i32 : i32 to vector<8x128xi32>
    %413 = arith.cmpi sle, %7, %412 : vector<8x128xi32>
    %c8_i32_63 = arith.constant 8 : i32
    %414 = vector.broadcast %c8_i32_63 : i32 to vector<8x128xi32>
    %415 = arith.cmpi sgt, %8, %414 : vector<8x128xi32>
    %416 = arith.andi %413, %415 : vector<8x128xi1>
    %417 = arith.select %416, %409, %372 : vector<8x128xi1>, vector<8x128xf32>
    %418 = arith.select %416, %411, %373 : vector<8x128xi1>, vector<8x128xf32>
    %419 = vector.extract_strided_slice %5 {offsets = [72, 0], sizes = [8, 512], strides = [1, 1]} : vector<80x512xf32> to vector<8x512xf32>
    %420 = vector.extract_strided_slice %5 {offsets = [0, 0], sizes = [8, 512], strides = [1, 1]} : vector<80x512xf32> to vector<8x512xf32>
    %421 = vector.extract_strided_slice %5 {offsets = [0, 0], sizes = [8, 512], strides = [1, 1]} : vector<80x512xf32> to vector<8x512xf32>
    %422 = vector.broadcast %9 : vector<1x512xf32> to vector<8x512xf32>
    %423 = arith.mulf %419, %422 : vector<8x512xf32>
    %424 = vector.broadcast %10 : vector<1x512xf32> to vector<8x512xf32>
    %425 = arith.mulf %420, %424 : vector<8x512xf32>
    %426 = arith.addf %423, %425 : vector<8x512xf32>
    %427 = vector.broadcast %11 : vector<1x512xf32> to vector<8x512xf32>
    %428 = arith.mulf %421, %427 : vector<8x512xf32>
    %429 = arith.addf %426, %428 : vector<8x512xf32>
    %cst_64 = arith.constant dense<0.000000e+00> : vector<8x512xf32>
    %430 = tpu.matmul %418, %6, %cst_64 {dimension_numbers = #tpu.dot_dimension_numbers<[1], [0], [0], [1], [0, 0, 1, 1], [], []>} : vector<8x128xf32>, vector<128x512xf32>, vector<8x512xf32> -> vector<8x512xf32>
    %431 = arith.addf %429, %430 : vector<8x512xf32>
    %432 = vector.extract_strided_slice %431 {offsets = [0, 0], sizes = [8, 128], strides = [1, 1]} : vector<8x512xf32> to vector<8x128xf32>
    %433 = arith.negf %432 : vector<8x128xf32>
    %434 = math.exp %433 : vector<8x128xf32>
    %cst_65 = arith.constant 1.000000e+00 : f32
    %435 = vector.broadcast %cst_65 : f32 to vector<8x128xf32>
    %436 = arith.addf %435, %434 : vector<8x128xf32>
    %437 = arith.divf %435, %436 : vector<8x128xf32>
    %438 = vector.extract_strided_slice %431 {offsets = [0, 128], sizes = [8, 128], strides = [1, 1]} : vector<8x512xf32> to vector<8x128xf32>
    %439 = arith.negf %438 : vector<8x128xf32>
    %440 = math.exp %439 : vector<8x128xf32>
    %cst_66 = arith.constant 1.000000e+00 : f32
    %441 = vector.broadcast %cst_66 : f32 to vector<8x128xf32>
    %442 = arith.addf %441, %440 : vector<8x128xf32>
    %443 = arith.divf %441, %442 : vector<8x128xf32>
    %444 = vector.extract_strided_slice %431 {offsets = [0, 256], sizes = [8, 128], strides = [1, 1]} : vector<8x512xf32> to vector<8x128xf32>
    %445 = math.tanh %444 : vector<8x128xf32>
    %446 = vector.extract_strided_slice %431 {offsets = [0, 384], sizes = [8, 128], strides = [1, 1]} : vector<8x512xf32> to vector<8x128xf32>
    %447 = arith.negf %446 : vector<8x128xf32>
    %448 = math.exp %447 : vector<8x128xf32>
    %cst_67 = arith.constant 1.000000e+00 : f32
    %449 = vector.broadcast %cst_67 : f32 to vector<8x128xf32>
    %450 = arith.addf %449, %448 : vector<8x128xf32>
    %451 = arith.divf %449, %450 : vector<8x128xf32>
    %452 = arith.mulf %443, %417 : vector<8x128xf32>
    %453 = arith.mulf %437, %445 : vector<8x128xf32>
    %454 = arith.addf %452, %453 : vector<8x128xf32>
    %455 = math.tanh %454 : vector<8x128xf32>
    %456 = arith.mulf %451, %455 : vector<8x128xf32>
    %c9_i32 = arith.constant 9 : i32
    %457 = vector.broadcast %c9_i32 : i32 to vector<8x128xi32>
    %458 = arith.cmpi sle, %7, %457 : vector<8x128xi32>
    %c9_i32_68 = arith.constant 9 : i32
    %459 = vector.broadcast %c9_i32_68 : i32 to vector<8x128xi32>
    %460 = arith.cmpi sgt, %8, %459 : vector<8x128xi32>
    %461 = arith.andi %458, %460 : vector<8x128xi1>
    %462 = arith.select %461, %456, %418 : vector<8x128xi1>, vector<8x128xf32>
    %c0_69 = arith.constant 0 : index
    %c0_70 = arith.constant 0 : index
    %463 = vector.load %arg9[%c0_69, %c0_70] : memref<128x128xf32, #tpu.memory_space<vmem>>, vector<128x128xf32>
    %cst_71 = arith.constant dense<0.000000e+00> : vector<8x128xf32>
    %464 = tpu.matmul %462, %463, %cst_71 {dimension_numbers = #tpu.dot_dimension_numbers<[1], [0], [0], [1], [0, 0, 1, 1], [], []>} : vector<8x128xf32>, vector<128x128xf32>, vector<8x128xf32> -> vector<8x128xf32>
    %c0_72 = arith.constant 0 : index
    %c0_73 = arith.constant 0 : index
    %465 = vector.load %arg10[%c0_72, %c0_73] : memref<1x128xf32, #tpu.memory_space<vmem>>, vector<1x128xf32>
    %466 = vector.broadcast %465 : vector<1x128xf32> to vector<8x128xf32>
    %467 = arith.addf %464, %466 : vector<8x128xf32>
    %cst_74 = arith.constant 0.000000e+00 : f32
    %468 = vector.broadcast %cst_74 : f32 to vector<8x128xf32>
    %469 = arith.maximumf %467, %468 : vector<8x128xf32>
    %c0_75 = arith.constant 0 : index
    %c0_76 = arith.constant 0 : index
    %470 = vector.load %arg11[%c0_75, %c0_76] : memref<128x128xf32, #tpu.memory_space<vmem>>, vector<128x128xf32>
    %cst_77 = arith.constant dense<0.000000e+00> : vector<8x128xf32>
    %471 = tpu.matmul %469, %470, %cst_77 {dimension_numbers = #tpu.dot_dimension_numbers<[1], [0], [0], [1], [0, 0, 1, 1], [], []>} : vector<8x128xf32>, vector<128x128xf32>, vector<8x128xf32> -> vector<8x128xf32>
    %c0_78 = arith.constant 0 : index
    %c0_79 = arith.constant 0 : index
    %472 = vector.load %arg12[%c0_78, %c0_79] : memref<1x128xf32, #tpu.memory_space<vmem>>, vector<1x128xf32>
    %473 = vector.broadcast %472 : vector<1x128xf32> to vector<8x128xf32>
    %474 = arith.addf %471, %473 : vector<8x128xf32>
    %c0_80 = arith.constant 0 : index
    %c0_81 = arith.constant 0 : index
    %475 = vector.load %arg13[%c0_80, %c0_81] : memref<8x128xf32, #tpu.memory_space<vmem>>, vector<8x128xf32>
    tpu.vector_store %arg13[%c0_80, %c0_81], %474 {strides = array<i32>} : memref<8x128xf32, #tpu.memory_space<vmem>>, vector<8x128xf32>,
    return
  }
}

</mosaic_0001>

<bundles_post_ra>
// kernel: code_comm_classifier_forward.1
= control target key start
LH: loop header
LB: loop body
LE: loop exit
PB: predicated region body
PF: predicated region fallthrough
CT: control target
= control target key end

     0   :  { %v3689_v1 = vmov 0   ;;  %vm198_vm0 = vcmask 523264   ;;  %s5312_s1 = inlined_call_operand.vmem [shape: bf16[64,512], index: 1, kind: input, shape index: {}]   ;;  %s5313_s3 = inlined_call_operand.vmem [shape: f32[128,512], index: 3, kind: input, shape index: {}]   ;;  %s5314_s0 = inlined_call_operand.vmem [shape: bf16[80,64], index: 0, kind: input, shape index: {}]   ;;  %s5315_s2 = inlined_call_operand.vmem [shape: f32[1,512], index: 2, kind: input, shape index: {}]   ;;  %s5316_s5 = inlined_call_operand.vmem [shape: f32[1,512], index: 5, kind: input, shape index: {}]   ;;  %s5317_s6 = inlined_call_operand.vmem [shape: f32[1,512], index: 6, kind: input, shape index: {}]   ;;  %s5318_s4 = inlined_call_operand.vmem [shape: f32[1,512], index: 4, kind: input, shape index: {}]   ;;  %s5319_s7 = inlined_call_operand.vmem [shape: s32[8,128], index: 7, kind: input, shape index: {}]   ;;  %s5320_s8 = inlined_call_operand.vmem [shape: s32[8,128], index: 8, kind: input, shape index: {}]   ;;  %s5321_s9 = inlined_call_operand.vmem [shape: f32[128,128], index: 9, kind: input, shape index: {}]   ;;  %s5322_s11 = inlined_call_operand.vmem [shape: f32[128,128], index: 11, kind: input, shape index: {}]   ;;  %s5323_s10 = inlined_call_operand.vmem [shape: f32[1,128], index: 10, kind: input, shape index: {}]   ;;  %s5324_s12 = inlined_call_operand.vmem [shape: f32[1,128], index: 12, kind: input, shape index: {}]   ;;  %s5325_s13 = inlined_call_operand.vmem [shape: f32[8,128], index: 13, kind: output, shape index: {}]  }
   0x1   :  { %v3498_v0 = vld [vmem:[%s5312_s1 + $0x4] ss:$16 sps:$4 sm:$0xff]   ;;  %246 = vmatprep.mubr.bf16.mxu0 %v3689_v1  ;;  %329 = vmatprep.mubr.bf16.mxu1 %v3689_v1  ;;  %v3500_v2 = vld [vmem:[%s5312_s1 + $0xc] ss:$16 sps:$4 sm:$0xff]   ;;  %v3502_v3 = vld [vmem:[%s5312_s1] ss:$16 sps:$4 sm:$0xff]  }
   0x2   :  { %214 = vmatprep.subr.bf16.mxu0 %v3498_v0  ;;  %v3503_v4 = vld [vmem:[%s5312_s1 + $0x8] ss:$16 sps:$4 sm:$0xff]   ;;  %297 = vmatprep.subr.bf16.mxu1 %v3500_v2  ;;  %v3504_v5 = vld [vmem:[%s5312_s1 + $0x24] ss:$16 sps:$4 sm:$0xff]   ;;  %v3506_v6 = vld [vmem:[%s5312_s1 + $0x2c] ss:$16 sps:$4 sm:$0xff]  }
   0x3   :  { %215 = vmatpush1.bf16.msra.mxu0 %v3502_v3  ;;  %298 = vmatpush1.bf16.msra.mxu1 %v3503_v4  ;;  %v3508_v7 = vld [vmem:[%s5312_s1 + $0x20] ss:$16 sps:$4 sm:$0xff]   ;;  %v3509_v8 = vld [vmem:[%s5312_s1 + $0x28] ss:$16 sps:$4 sm:$0xff]   ;;  %v3510_v9 = vld [vmem:[%s5312_s1 + $0x44] ss:$16 sps:$4 sm:$0xff]  }
   0x4   :  { %216 = vmatprep.subr.bf16.mxu0 %v3504_v5  ;;  %299 = vmatprep.subr.bf16.mxu1 %v3506_v6  ;;  %v3512_v10 = vld [vmem:[%s5312_s1 + $0x4c] ss:$16 sps:$4 sm:$0xff]   ;;  %v3514_v11 = vld [vmem:[%s5312_s1 + $0x40] ss:$16 sps:$4 sm:$0xff]   ;;  %v3515_v12 = vld [vmem:[%s5312_s1 + $0x48] ss:$16 sps:$4 sm:$0xff]  }
   0x5   :  { %v3516_v13 = vld [vmem:[%s5312_s1 + $0x64] ss:$16 sps:$4 sm:$0xff]   ;;  %v3518_v14 = vld [vmem:[%s5312_s1 + $0x6c] ss:$16 sps:$4 sm:$0xff]   ;;  %v3520_v16 = vld [vmem:[%s5312_s1 + $0x60] ss:$16 sps:$4 sm:$0xff]  }
   0x6   :  { %v381_v15 = vld [vmem:[%s5313_s3 + $0x8] sm:$0xff]  ;;  %v380_v20 = vld [vmem:[%s5313_s3] sm:$0xff]  ;;  %v383_v25 = vld [vmem:[%s5313_s3 + $0x18] sm:$0xff] }
   0x7   :  { %217 = vmatpush1.bf16.msra.mxu0 %v3508_v7  ;;  %300 = vmatpush1.bf16.msra.mxu1 %v3509_v8  ;;  %v3521_v17 = vld [vmem:[%s5312_s1 + $0x68] ss:$16 sps:$4 sm:$0xff]   ;;  %v384_v21 = vld [vmem:[%s5313_s3 + $0x20] sm:$0xff]  ;;  %v382_v31 = vld [vmem:[%s5313_s3 + $0x10] sm:$0xff] }
   0x8   :  { %218 = vmatprep.subr.bf16.mxu0 %v3510_v9  ;;  %301 = vmatprep.subr.bf16.mxu1 %v3512_v10  ;;  %v385_v18 = vld [vmem:[%s5313_s3 + $0x28] sm:$0xff]  ;;  %v3522_v24 = vld [vmem:[%s5314_s0] sm:$0xff]   ;;  %v387_v26 = vld [vmem:[%s5313_s3 + $0x38] sm:$0xff]  ;;  %v3842_v27 = vpack.c.bf16 %v384_v21, %v380_v20 }
   0x9   :  { %v3819_v19 = vpack.c.bf16 %v385_v18, %v381_v15  ;;  %v389_v22 = vld [vmem:[%s5313_s3 + $0x48] sm:$0xff]  ;;  %v388_v28 = vld [vmem:[%s5313_s3 + $0x40] sm:$0xff]  ;;  %v3850_v30 = vpack.c.bf16 %v387_v26, %v383_v25  ;;  %v386_v35 = vld [vmem:[%s5313_s3 + $0x30] sm:$0xff] }
   0xa   :  { %v393_v23 = vld [vmem:[%s5313_s3 + $0x68] sm:$0xff]  ;;  %5401 = vst [vmem:[#allocation3_spill] sm:$0xff] %v3842_v27  ;;  %v392_v29 = vld [vmem:[%s5313_s3 + $0x60] sm:$0xff]  ;;  %v3868_v36 = vpack.c.bf16 %v386_v35, %v382_v31  ;;  %v391_v37 = vld [vmem:[%s5313_s3 + $0x58] sm:$0xff] }
   0xb   :  { %219 = vmatpush1.bf16.msra.mxu0 %v3514_v11  ;;  %302 = vmatpush1.bf16.msra.mxu1 %v3515_v12  ;;  %5400 = vst [vmem:[#allocation2_spill] sm:$0xff] %v3819_v19  ;;  %5402 = vst [vmem:[#allocation4_spill] sm:$0xff] %v3850_v30  ;;  %v3856_v32 = vpack.c.bf16 %v393_v23, %v389_v22  ;;  %v397_v33 = vld [vmem:[%s5313_s3 + $0x88] sm:$0xff]  ;;  %v395_v38 = vld [vmem:[%s5313_s3 + $0x78] sm:$0xff]  ;;  %v3888_v42 = vpack.c.bf16 %v392_v29, %v388_v28 }
   0xc   :  { %220 = vmatprep.subr.bf16.mxu0 %v3516_v13  ;;  %303 = vmatprep.subr.bf16.mxu1 %v3518_v14  ;;  %v401_v34 = vld [vmem:[%s5313_s3 + $0xa8] sm:$0xff]  ;;  %5404 = vst [vmem:[#allocation6_spill] sm:$0xff] %v3868_v36  ;;  %v390_v39 = vld [vmem:[%s5313_s3 + $0x50] sm:$0xff]  ;;  %v3881_v40 = vpack.c.bf16 %v395_v38, %v391_v37  ;;  %v396_v44 = vld [vmem:[%s5313_s3 + $0x80] sm:$0xff] }
   0xd   :  { %5403 = vst [vmem:[#allocation5_spill] sm:$0xff] %v3856_v32  ;;  %v394_v41 = vld [vmem:[%s5313_s3 + $0x70] sm:$0xff]  ;;  %5406 = vst [vmem:[#allocation8_spill] sm:$0xff] %v3888_v42  ;;  %v3892_v43 = vpack.c.bf16 %v401_v34, %v397_v33  ;;  %v400_v45 = vld [vmem:[%s5313_s3 + $0xa0] sm:$0xff] }
   0xe   :  { %5405 = vst [vmem:[#allocation7_spill] sm:$0xff] %v3881_v40  ;;  %v3523_v46 = vld [vmem:[%s5314_s0 + $0x8] sm:$0xff]   ;;  %v3904_v47 = vpack.c.bf16 %v394_v41, %v390_v39  ;;  %v404_v50 = vld [vmem:[%s5313_s3 + $0xc0] sm:$0xff]  ;;  %v399_v51 = vld [vmem:[%s5313_s3 + $0x98] sm:$0xff]  ;;  %v3923_v53 = vpack.c.bf16 %v400_v45, %v396_v44 }
   0xf   :  { %221 = vmatpush1.bf16.msra.mxu0 %v3520_v16  ;;  %304 = vmatpush1.bf16.msra.mxu1 %v3521_v17  ;;  %5407 = vst [vmem:[#allocation9_spill] sm:$0xff] %v3892_v43  ;;  %v405_v48 = vld [vmem:[%s5313_s3 + $0xc8] sm:$0xff]  ;;  %v403_v52 = vld [vmem:[%s5313_s3 + $0xb8] sm:$0xff]  ;;  %v408_v54 = vld [vmem:[%s5313_s3 + $0xe0] sm:$0xff] }
  0x10   :  { %2807 = vmatprep.subr.bf16.mxu0 %v3819_v19  ;;  %2839 = vmatprep.subr.bf16.mxu1 %v3850_v30  ;;  %5408 = vst [vmem:[#allocation10_spill] sm:$0xff] %v3904_v47  ;;  %v409_v49 = vld [vmem:[%s5313_s3 + $0xe8] sm:$0xff]  ;;  %5409 = vst [vmem:[#allocation11_spill] sm:$0xff] %v3923_v53  ;;  %v398_v55 = vld [vmem:[%s5313_s3 + $0x90] sm:$0xff]  ;;  %v3944_v60 = vpack.c.bf16 %v403_v52, %v399_v51  ;;  %v3958_v0 = vpack.c.bf16 %v408_v54, %v404_v50 }
  0x11   :  { %v402_v56 = vld [vmem:[%s5313_s3 + $0xb0] sm:$0xff]  ;;  %v3935_v57 = vpack.c.bf16 %v409_v49, %v405_v48  ;;  %v407_v58 = vld [vmem:[%s5313_s3 + $0xd8] sm:$0xff]  ;;  %v413_v61 = vld [vmem:[%s5313_s3 + $0x108] sm:$0xff] }
  0x12   :  { %2658 = vmatmul.mubr.msk.bf16.vlgmr.msra.gmra.mrb[0].mxu0 %vm198_vm0, %v3522_v24  ;;  %2663 = vmatmul.mubr.msk.bf16.vlgmr.msra.gmra.mrb[0].mxu1 %vm198_vm0, %v3522_v24  ;;  %v411_v59 = vld [vmem:[%s5313_s3 + $0xf8] sm:$0xff]  ;;  %5411 = vst [vmem:[#allocation13_spill] sm:$0xff] %v3944_v60  ;;  %v417_v62 = vld [vmem:[%s5313_s3 + $0x128] sm:$0xff]  ;;  %v3954_v63 = vpack.c.bf16 %v402_v56, %v398_v55  ;;  %5413 = vst [vmem:[#allocation15_spill] sm:$0xff] %v3958_v0 }
  0x13   :  { %2809 = vmatpush1.bf16.msra.mxu0 %v3842_v27  ;;  %256 = vmatprep.mubr.bf16.mxu0 %v3689_v1  ;;  %5410 = vst [vmem:[#allocation12_spill] sm:$0xff] %v3935_v57  ;;  %v412_v2 = vld [vmem:[%s5313_s3 + $0x100] sm:$0xff]  ;;  %v3963_v3 = vpack.c.bf16 %v411_v59, %v407_v58  ;;  %v3524_v4 = vld [vmem:[%s5314_s0 + $0x10] sm:$0xff]   ;;  %v3970_v5 = vpack.c.bf16 %v417_v62, %v413_v61  ;;  %v421_v9 = vld [vmem:[%s5313_s3 + $0x148] sm:$0xff] }
  0x14   :  { %2811 = vmatprep.subr.bf16.mxu0 %v3856_v32  ;;  %339 = vmatprep.mubr.bf16.mxu1 %v3689_v1  ;;  %5412 = vst [vmem:[#allocation14_spill] sm:$0xff] %v3954_v63  ;;  %v416_v6 = vld [vmem:[%s5313_s3 + $0x120] sm:$0xff]  ;;  %v406_v7 = vld [vmem:[%s5313_s3 + $0xd0] sm:$0xff]  ;;  %v425_v10 = vld [vmem:[%s5313_s3 + $0x168] sm:$0xff] }
  0x15   :  { %2841 = vmatpush1.bf16.msra.mxu1 %v3868_v36  ;;  %5414 = vst [vmem:[#allocation16_spill] sm:$0xff] %v3963_v3  ;;  %5415 = vst [vmem:[#allocation17_spill] sm:$0xff] %v3970_v5  ;;  %v410_v8 = vld [vmem:[%s5313_s3 + $0xf0] sm:$0xff]  ;;  %v415_v11 = vld [vmem:[%s5313_s3 + $0x118] sm:$0xff]  ;;  %v3996_v13 = vpack.c.bf16 %v416_v6, %v412_v2  ;;  %v4011_v18 = vpack.c.bf16 %v425_v10, %v421_v9 }
  0x16   :  { %2843 = vmatprep.subr.bf16.mxu1 %v3881_v40  ;;  %v419_v12 = vld [vmem:[%s5313_s3 + $0x138] sm:$0xff]  ;;  %v4000_v14 = vpack.c.bf16 %v410_v8, %v406_v7  ;;  %v420_v15 = vld [vmem:[%s5313_s3 + $0x140] sm:$0xff]  ;;  %v414_v17 = vld [vmem:[%s5313_s3 + $0x110] sm:$0xff]  ;;  %v5326_v7 = vmov 0.0   ;;  %v73_v8 = vlaneseq }
  0x17   :  { %2813 = vmatpush1.bf16.msra.mxu0 %v3888_v42  ;;  %5416 = vst [vmem:[#allocation18_spill] sm:$0xff] %v3996_v13  ;;  %v424_v16 = vld [vmem:[%s5313_s3 + $0x160] sm:$0xff]  ;;  %5418 = vst [vmem:[#allocation20_spill] sm:$0xff] %v4011_v18  ;;  %v4013_v20 = vpack.c.bf16 %v419_v12, %v415_v11  ;;  %v418_v21 = vld [vmem:[%s5313_s3 + $0x130] sm:$0xff] }
  0x18   :  { %2815 = vmatprep.subr.bf16.mxu0 %v3892_v43  ;;  %5417 = vst [vmem:[#allocation19_spill] sm:$0xff] %v4000_v14  ;;  %v429_v22 = vld [vmem:[%s5313_s3 + $0x188] sm:$0xff]  ;;  %v423_v24 = vld [vmem:[%s5313_s3 + $0x158] sm:$0xff]  ;;  %v4034_v26 = vpack.c.bf16 %v424_v16, %v420_v15  ;;  %v4041_v29 = vpack.c.bf16 %v418_v21, %v414_v17  ;;  %v422_v33 = vld [vmem:[%s5313_s3 + $0x150] sm:$0xff]  ;;  %v74_v9 = vshrl.u32 %v73_v8, 7 }
  0x19   :  { %2845 = vmatpush1.bf16.msra.mxu1 %v3904_v47  ;;  %5419 = vst [vmem:[#allocation21_spill] sm:$0xff] %v4013_v20  ;;  %v433_v23 = vld [vmem:[%s5313_s3 + $0x1a8] sm:$0xff]  ;;  %v427_v25 = vld [vmem:[%s5313_s3 + $0x178] sm:$0xff]  ;;  %v426_v34 = vld [vmem:[%s5313_s3 + $0x170] sm:$0xff] }
  0x1a   :  { %2659 = vmatmul.mubr.msk.bf16.gmra.mrb[4].mxu0 %vm198_vm0, %v3523_v46  ;;  %2664 = vmatmul.mubr.msk.bf16.gmra.mrb[4].mxu1 %vm198_vm0, %v3523_v46  ;;  %5420 = vst [vmem:[#allocation22_spill] sm:$0xff] %v4034_v26  ;;  %v3525_v28 = vld [vmem:[%s5314_s0 + $0x18] sm:$0xff]   ;;  %5421 = vst [vmem:[#allocation23_spill] sm:$0xff] %v4041_v29  ;;  %v4043_v31 = vpack.c.bf16 %v433_v23, %v429_v22  ;;  %v4053_v35 = vpack.c.bf16 %v427_v25, %v423_v24  ;;  %v428_v37 = vld [vmem:[%s5313_s3 + $0x180] sm:$0xff]  ;;  %v75_v10 = vsub.s32 0, %v74_v9 }
  0x1b   :  { %2817 = vmatpush1.bf16.msra.mxu0 %v3923_v53  ;;  %266 = vmatprep.mubr.bf16.mxu0 %v3689_v1  ;;  %v432_v38 = vld [vmem:[%s5313_s3 + $0x1a0] sm:$0xff]  ;;  %v431_v39 = vld [vmem:[%s5313_s3 + $0x198] sm:$0xff]  ;;  %v437_v44 = vld [vmem:[%s5313_s3 + $0x1c8] sm:$0xff]  ;;  %v4076_v46 = vpack.c.bf16 %v426_v34, %v422_v33  ;;  %v83_v11 = vsub.s32 2, %v74_v9  ;;  %v79_v15 = vsub.s32 1, %v74_v9  ;;  %v87_v16 = vsub.s32 3, %v74_v9 }
  0x1c   :  { %349 = vmatprep.mubr.bf16.mxu1 %v3689_v1  ;;  %2819 = vmatprep.subr.bf16.mxu0 %v3935_v57  ;;  %5422 = vst [vmem:[#allocation24_spill] sm:$0xff] %v4043_v31  ;;  %5423 = vst [vmem:[#allocation25_spill] sm:$0xff] %v4053_v35  ;;  %v435_v41 = vld [vmem:[%s5313_s3 + $0x1b8] sm:$0xff]  ;;  %v441_v45 = vld [vmem:[%s5313_s3 + $0x1e8] sm:$0xff]  ;;  %v4078_v48 = vpack.c.bf16 %v432_v38, %v428_v37 }
  0x1d   :  { %2847 = vmatprep.subr.bf16.mxu1 %v3944_v60  ;;  %5424 = vst [vmem:[#allocation26_spill] sm:$0xff] %v4076_v46  ;;  %v430_v49 = vld [vmem:[%s5313_s3 + $0x190] sm:$0xff]  ;;  %v4084_v50 = vpack.c.bf16 %v435_v41, %v431_v39  ;;  %v4089_v52 = vpack.c.bf16 %v441_v45, %v437_v44  ;;  %v436_v54 = vld [vmem:[%s5313_s3 + $0x1c0] sm:$0xff]  ;;  %v439_v56 = vld [vmem:[%s5313_s3 + $0x1d8] sm:$0xff] }
  0x1e   :  { %2849 = vmatpush1.bf16.msra.mxu1 %v3954_v63  ;;  %5425 = vst [vmem:[#allocation27_spill] sm:$0xff] %v4078_v48  ;;  %v434_v51 = vld [vmem:[%s5313_s3 + $0x1b0] sm:$0xff]  ;;  %v440_v55 = vld [vmem:[%s5313_s3 + $0x1e0] sm:$0xff]  ;;  %v443_v58 = vld [vmem:[%s5313_s3 + $0x1f8] sm:$0xff] }
  0x1f   :  { %2821 = vmatpush1.bf16.msra.mxu0 %v3958_v0  ;;  %2851 = vmatprep.subr.bf16.mxu1 %v3963_v3  ;;  %5426 = vst [vmem:[#allocation28_spill] sm:$0xff] %v4084_v50  ;;  %5427 = vst [vmem:[#allocation29_spill] sm:$0xff] %v4089_v52  ;;  %v4109_v59 = vpack.c.bf16 %v434_v51, %v430_v49  ;;  %v4111_v61 = vpack.c.bf16 %v440_v55, %v436_v54  ;;  %v438_v2 = vld [vmem:[%s5313_s3 + $0x1d0] sm:$0xff]  ;;  %v71_v12 = vld [vmem:[%s5315_s2] sm:$0xf] }
  0x20   :  { %2823 = vmatprep.subr.bf16.mxu0 %v3970_v5  ;;  %v4115_v62 = vpack.c.bf16 %v443_v58, %v439_v56  ;;  %v447_v17 = vld [vmem:[%s5316_s5] sm:$0xf]  ;;  %v4183_v22 = vrot.slane %v71_v12, %v75_v10  ;;  %v4188_v24 = vrot.slane %v71_v12, %v83_v11  ;;  %v4190_v25 = vrot.slane %v71_v12, %v79_v15 }
  0x21   :  { %5428 = vst [vmem:[#allocation30_spill] sm:$0xff] %v4109_v59  ;;  %5429 = vst [vmem:[#allocation31_spill] sm:$0xff] %v4111_v61  ;;  %v448_v21 = vld [vmem:[%s5317_s6] sm:$0xf]  ;;  %v4196_v34 = vrot.slane %v71_v12, %v87_v16  ;;  %v4202_v41 = vrot.slane %v447_v17, %v79_v15  ;;  %v4215_v8 = vrot.slane %v447_v17, %v87_v16 }
  0x22   :  { %2660 = vmatmul.mubr.msk.bf16.gmra.mrb[8].mxu0 %vm198_vm0, %v3524_v4  ;;  %2665 = vmatmul.mubr.msk.bf16.gmra.mrb[8].mxu1 %vm198_vm0, %v3524_v4  ;;  %5430 = vst [vmem:[#allocation32_spill] sm:$0xff] %v4115_v62  ;;  %v3526_v4 = vld [vmem:[%s5314_s0 + $0x20] sm:$0xff]   ;;  %v4194_v33 = vrot.slane %v448_v21, %v75_v10  ;;  %v4204_v44 = vrot.slane %v448_v21, %v79_v15 }
  0x23   :  { %2825 = vmatpush1.bf16.msra.mxu0 %v3996_v13  ;;  %276 = vmatprep.mubr.bf16.mxu0 %v3689_v1  ;;  %v446_v23 = vld [vmem:[%s5318_s4] sm:$0xf]  ;;  %v4210_v56 = vrot.slane %v448_v21, %v83_v11  ;;  %v4217_v9 = vrot.slane %v448_v21, %v87_v16 }
  0x24   :  { %359 = vmatprep.mubr.bf16.mxu1 %v3689_v1  ;;  %2853 = vmatpush1.bf16.msra.mxu1 %v4000_v14  ;;  %v4198_v38 = vrot.slane %v446_v23, %v75_v10  ;;  %v4200_v39 = vrot.slane %v446_v23, %v79_v15  ;;  %v4208_v55 = vrot.slane %v446_v23, %v83_v11 }
  0x25   :  { %2827 = vmatprep.subr.bf16.mxu0 %v4011_v18  ;;  %2855 = vmatprep.subr.bf16.mxu1 %v4013_v20  ;;  %5432 = vst [vmem:[#allocation34_spill] sm:$0xff] %v4210_v56  ;;  %5433 = vst [vmem:[#allocation35_spill] sm:$0xff] %v4217_v9 }
  0x27   :  { %2829 = vmatpush1.bf16.msra.mxu0 %v4034_v26 }
  0x28   :  { %2857 = vmatpush1.bf16.msra.mxu1 %v4041_v29  ;;  %2831 = vmatprep.subr.bf16.mxu0 %v4043_v31 }
  0x29   :  { %2859 = vmatprep.subr.bf16.mxu1 %v4053_v35 }
  0x2a   :  { %2661 = vmatmul.mubr.msk.bf16.gmra.mrb[12].mxu0 %vm198_vm0, %v3525_v28  ;;  %2666 = vmatmul.mubr.msk.bf16.gmra.mrb[12].mxu1 %vm198_vm0, %v3525_v28  ;;  %v4192_v28 = vrot.slane %v447_v17, %v75_v10 }
  0x2b   :  { %286 = vmatprep.mubr.bf16.mxu0 %v3689_v1  ;;  %369 = vmatprep.mubr.bf16.mxu1 %v3689_v1  ;;  %v442_v1 = vld [vmem:[%s5313_s3 + $0x1f0] sm:$0xff] }
  0x2c   :  { %2861 = vmatpush1.bf16.msra.mxu1 %v4076_v46  ;;  %2833 = vmatpush1.bf16.msra.mxu0 %v4078_v48  ;;  %v4128_v6 = vpack.c.bf16 %v442_v1, %v438_v2 }
  0x2d   :  { %2863 = vmatprep.subr.bf16.mxu1 %v4084_v50  ;;  %2835 = vmatprep.subr.bf16.mxu0 %v4089_v52 }
  0x2e   :  { %5431 = vst [vmem:[#allocation33_spill] sm:$0xff] %v4128_v6 }
  0x30   :  { %2865 = vmatpush1.bf16.msra.mxu1 %v4109_v59  ;;  %2837 = vmatpush1.bf16.msra.mxu0 %v4111_v61 }
  0x31   :  { %2867 = vmatprep.subr.bf16.mxu1 %v4115_v62  ;;  %2871 = vmatprep.subr.bf16.mxu0 %v3819_v19 }
  0x32   :  { %2662 = vmatmul.mubr.msk.bf16.gmra.mrb[16].mxu0 %vm198_vm0, %v3526_v4  ;;  %2667 = vmatmul.mubr.msk.bf16.gmra.mrb[16].mxu1 %vm198_vm0, %v3526_v4  ;;  %v4213_v4 = vrot.slane %v447_v17, %v83_v11 }
  0x33   :  { %596 = vmatprep.mubr.f32.mxu0 %v5326_v7  ;;  %667 = vmatprep.mubr.f32.mxu1 %v5326_v7 }
  0x34   :  { %2869 = vmatpush1.bf16.msra.mxu1 %v4128_v6 }
  0x35   :  { %2903 = vmatprep.subr.bf16.mxu1 %v3850_v30 }
  0x3a   :  { %597 = vmatmul.mubr.f32.vlgmr.msra.gmra.mrb[20].mxu0 %v5326_v7  ;;  %668 = vmatmul.mubr.f32.vlgmr.msra.gmra.mrb[20].mxu1 %v5326_v7 }
  0x3b   :  { %2873 = vmatpush1.bf16.msra.mxu0 %v3842_v27  ;;  %2905 = vmatpush1.bf16.msra.mxu1 %v3868_v36 }
  0x3c   :  { %2875 = vmatprep.subr.bf16.mxu0 %v3856_v32  ;;  %2907 = vmatprep.subr.bf16.mxu1 %v3881_v40 }
  0x3d   :  { %791 = vmatprep.mubr.f32.mxu0 %v5326_v7  ;;  %862 = vmatprep.mubr.f32.mxu1 %v5326_v7 }
  0x3f   :  { %2877 = vmatpush1.bf16.msra.mxu0 %v3888_v42  ;;  %2909 = vmatpush1.bf16.msra.mxu1 %v3904_v47 }
  0x40   :  { %2879 = vmatprep.subr.bf16.mxu0 %v3892_v43  ;;  %2911 = vmatprep.subr.bf16.mxu1 %v3944_v60 }
  0x43   :  { %2881 = vmatpush1.bf16.msra.mxu0 %v3923_v53  ;;  %2913 = vmatpush1.bf16.msra.mxu1 %v3954_v63 }
  0x44   :  { %2883 = vmatprep.subr.bf16.mxu0 %v3935_v57  ;;  %2915 = vmatprep.subr.bf16.mxu1 %v3963_v3 }
  0x47   :  { %2885 = vmatpush1.bf16.msra.mxu0 %v3958_v0  ;;  %2917 = vmatpush1.bf16.msra.mxu1 %v4000_v14 }
  0x48   :  { %2887 = vmatprep.subr.bf16.mxu0 %v3970_v5  ;;  %2919 = vmatprep.subr.bf16.mxu1 %v4013_v20 }
  0x4b   :  { %2889 = vmatpush1.bf16.msra.mxu0 %v3996_v13  ;;  %2921 = vmatpush1.bf16.msra.mxu1 %v4041_v29 }
  0x4c   :  { %2891 = vmatprep.subr.bf16.mxu0 %v4011_v18  ;;  %2923 = vmatprep.subr.bf16.mxu1 %v4053_v35 }
  0x4f   :  { %2893 = vmatpush1.bf16.msra.mxu0 %v4034_v26  ;;  %2925 = vmatpush1.bf16.msra.mxu1 %v4076_v46 }
  0x50   :  { %2895 = vmatprep.subr.bf16.mxu0 %v4043_v31  ;;  %2927 = vmatprep.subr.bf16.mxu1 %v4084_v50 }
  0x53   :  { %2897 = vmatpush1.bf16.msra.mxu0 %v4078_v48  ;;  %2929 = vmatpush1.bf16.msra.mxu1 %v4109_v59 }
  0x54   :  { %2899 = vmatprep.subr.bf16.mxu0 %v4089_v52  ;;  %2931 = vmatprep.subr.bf16.mxu1 %v4115_v62 }
  0x57   :  { %2901 = vmatpush1.bf16.msra.mxu0 %v4111_v61  ;;  %2933 = vmatpush1.bf16.msra.mxu1 %v4128_v6 }
  0x58   :  { %2935 = vmatprep.subr.bf16.mxu0 %v3819_v19  ;;  %2967 = vmatprep.subr.bf16.mxu1 %v3850_v30  ;;  %v4234_v30 = vrot.slane %v446_v23, %v87_v16 }
  0xe5   :  { %v248_v37 = vpop.f32.mrb[0].mxu0  ;;  %v331_v45 = vpop.f32.mrb[0].mxu1 }
  0xe6   :  { %v249_v49 = vadd.f32 %v248_v37, %v4183_v22  ;;  %v250_v51 = vpop.f32.mrb[1].mxu0  ;;  %v332_v54 = vadd.f32 %v331_v45, %v4188_v24  ;;  %v333_v58 = vpop.f32.mrb[1].mxu1 }
  0xe7   :  { %v251_v2 = vadd.f32 %v250_v51, %v4190_v25  ;;  %v252_v1 = vpop.f32.mrb[2].mxu0  ;;  %v335_v10 = vpop.f32.mrb[2].mxu1  ;;  %v334_v7 = vadd.f32 %v333_v58, %v4196_v34 }
  0xe8   :  { %v4220_v12 = vmul.f32 %v4194_v33, %v249_v49  ;;  %v4223_v15 = vmul.f32 %v4192_v28, %v249_v49  ;;  %v253_v37 = vadd.f32 %v252_v1, %v4183_v22  ;;  %v254_v45 = vpop.f32.mrb[3].mxu0  ;;  %v337_v51 = vpop.f32.mrb[3].mxu1  ;;  %v4237_v19 = vmul.f32 %v4198_v38, %v249_v49 }
  0xe9   :  { %v4228_v11 = vmul.f32 %v4204_v44, %v251_v2  ;;  %v4231_v17 = vmul.f32 %v4202_v41, %v251_v2  ;;  %v255_v21 = vadd.f32 %v254_v45, %v4190_v25  ;;  %v4246_v58 = vmul.f32 %v4210_v56, %v332_v54 }
  0xea   :  { %5434 = vst [vmem:[#allocation36_spill] sm:$0xff] %v4220_v12  ;;  %5435 = vst [vmem:[#allocation37_spill] sm:$0xff] %v4223_v15  ;;  %v4240_v6 = vmul.f32 %v4198_v38, %v253_v37  ;;  %v4243_v1 = vmul.f32 %v4192_v28, %v253_v37  ;;  %v4249_v61 = vmul.f32 %v4200_v39, %v251_v2 }
  0xeb   :  { %5436 = vst [vmem:[#allocation38_spill] sm:$0xff] %v4228_v11  ;;  %5437 = vst [vmem:[#allocation39_spill] sm:$0xff] %v4231_v17  ;;  %v4252_v62 = vmul.f32 %v4200_v39, %v255_v21  ;;  %v4255_v16 = vmul.f32 %v4202_v41, %v255_v21  ;;  %v4258_v23 = vmul.f32 %v4213_v4, %v332_v54 }
  0xec   :  { %5438 = vst [vmem:[#allocation40_spill] sm:$0xff] %v4243_v1  ;;  %5439 = vst [vmem:[#allocation41_spill] sm:$0xff] %v4246_v58  ;;  %v4261_v49 = vmul.f32 %v4217_v9, %v334_v7  ;;  %v4264_v45 = vmul.f32 %v4215_v8, %v334_v7  ;;  %v4267_v52 = vadd.f32 %v335_v10, %v4188_v24 }
  0xed   :  { %5440 = vst [vmem:[#allocation42_spill] sm:$0xff] %v4255_v16  ;;  %5441 = vst [vmem:[#allocation43_spill] sm:$0xff] %v4258_v23  ;;  %v4270_v2 = vadd.f32 %v337_v51, %v4196_v34  ;;  %v258_v59 = vpop.f32.mrb[4].mxu0  ;;  %v4273_v48 = vmul.f32 %v4208_v55, %v332_v54  ;;  %v4276_v50 = vmul.f32 %v4234_v30, %v334_v7  ;;  %v341_v31 = vpop.f32.mrb[4].mxu1 }
  0xee   :  { %5442 = vst [vmem:[#allocation44_spill] sm:$0xff] %v4261_v49  ;;  %5443 = vst [vmem:[#allocation45_spill] sm:$0xff] %v4264_v45  ;;  %v4279_v46 = vmul.f32 %v4194_v33, %v253_v37  ;;  %v4282_v26 = vmul.f32 %v4204_v44, %v255_v21  ;;  %v259_v10 = vadd.f32 %v258_v59, %v4183_v22  ;;  %v260_v35 = vpop.f32.mrb[5].mxu0  ;;  %v343_v37 = vpop.f32.mrb[5].mxu1 }
  0xef   :  { %5444 = vst [vmem:[#allocation46_spill] sm:$0xff] %v4267_v52  ;;  %5445 = vst [vmem:[#allocation47_spill] sm:$0xff] %v4270_v2  ;;  %v4287_v51 = vmul.f32 %v4208_v55, %v4267_v52  ;;  %v4291_v54 = vmul.f32 %v4213_v4, %v4267_v52  ;;  %v4295_v7 = vmul.f32 %v4234_v30, %v4270_v2  ;;  %v262_v21 = vpop.f32.mrb[6].mxu0  ;;  %v345_v20 = vpop.f32.mrb[6].mxu1 }
  0xf0   :  { %5446 = vst [vmem:[#allocation48_spill] sm:$0xff] %v4279_v46  ;;  %5447 = vst [vmem:[#allocation49_spill] sm:$0xff] %v4282_v26  ;;  %v261_v18 = vadd.f32 %v260_v35, %v4190_v25  ;;  %v4300_v59 = vmul.f32 %v4215_v8, %v4270_v2  ;;  %v342_v29 = vadd.f32 %v341_v31, %v4188_v24  ;;  %v264_v3 = vpop.f32.mrb[7].mxu0  ;;  %v347_v57 = vpop.f32.mrb[7].mxu1 }
  0xf1   :  { %5448 = vst [vmem:[#allocation50_spill] sm:$0xff] %v4291_v54  ;;  %v344_v13 = vadd.f32 %v343_v37, %v4196_v34  ;;  %v4305_v5 = vmul.f32 %v4198_v38, %v259_v10  ;;  %v4308_v14 = vmul.f32 %v4192_v28, %v259_v10  ;;  %v263_v0 = vadd.f32 %v262_v21, %v4183_v22 }
  0xf2   :  { %5449 = vst [vmem:[#allocation51_spill] sm:$0xff] %v4300_v59  ;;  %v346_v35 = vadd.f32 %v345_v20, %v4188_v24  ;;  %v4313_v63 = vmul.f32 %v4200_v39, %v261_v18  ;;  %v4316_v31 = vmul.f32 %v4202_v41, %v261_v18  ;;  %v265_v37 = vadd.f32 %v264_v3, %v4190_v25 }
  0xf3   :  { %5450 = vst [vmem:[#allocation52_spill] sm:$0xff] %v4308_v14  ;;  %v4320_v53 = vmul.f32 %v4208_v55, %v342_v29  ;;  %v4323_v60 = vmul.f32 %v4198_v38, %v263_v0  ;;  %v4326_v21 = vmul.f32 %v4192_v28, %v263_v0  ;;  %v4329_v20 = vmul.f32 %v4213_v4, %v342_v29 }
  0xf4   :  { %5451 = vst [vmem:[#allocation53_spill] sm:$0xff] %v4316_v31  ;;  %v4332_v43 = vmul.f32 %v4234_v30, %v344_v13  ;;  %v4335_v47 = vmul.f32 %v4200_v39, %v265_v37  ;;  %v4338_v3 = vmul.f32 %v4202_v41, %v265_v37  ;;  %v4341_v42 = vmul.f32 %v4215_v8, %v344_v13 }
  0xf5   :  { %5452 = vst [vmem:[#allocation54_spill] sm:$0xff] %v4326_v21  ;;  %5453 = vst [vmem:[#allocation55_spill] sm:$0xff] %v4329_v20  ;;  %v4344_v40 = vmul.f32 %v4208_v55, %v346_v35  ;;  %v4347_v32 = vmul.f32 %v4213_v4, %v346_v35  ;;  %v348_v36 = vadd.f32 %v347_v57, %v4196_v34  ;;  %v268_v17 = vpop.f32.mrb[8].mxu0  ;;  %v351_v23 = vpop.f32.mrb[8].mxu1 }
  0xf6   :  { %5454 = vst [vmem:[#allocation56_spill] sm:$0xff] %v4338_v3  ;;  %5455 = vst [vmem:[#allocation57_spill] sm:$0xff] %v4341_v42  ;;  %v4351_v27 = vmul.f32 %v4194_v33, %v263_v0  ;;  %v4354_v45 = vmul.f32 %v4210_v56, %v346_v35  ;;  %v4357_v15 = vmul.f32 %v4204_v44, %v265_v37  ;;  %v270_v1 = vpop.f32.mrb[9].mxu0  ;;  %v353_v42 = vpop.f32.mrb[9].mxu1 }
  0xf7   :  { %5456 = vst [vmem:[#allocation58_spill] sm:$0xff] %v4347_v32  ;;  %v4360_v59 = vmul.f32 %v4194_v33, %v259_v10  ;;  %v4363_v16 = vmul.f32 %v4210_v56, %v342_v29  ;;  %v4366_v54 = vmul.f32 %v4204_v44, %v261_v18  ;;  %v4369_v57 = vmul.f32 %v4234_v30, %v348_v36  ;;  %v272_v31 = vpop.f32.mrb[10].mxu0  ;;  %v355_v20 = vpop.f32.mrb[10].mxu1 }
  0xf8   :  { %v4372_v0 = vmul.f32 %v4215_v8, %v348_v36  ;;  %v269_v35 = vadd.f32 %v268_v17, %v4183_v22  ;;  %v352_v37 = vadd.f32 %v351_v23, %v4188_v24  ;;  %v271_v10 = vadd.f32 %v270_v1, %v4190_v25 }
  0xf9   :  { %v354_v29 = vadd.f32 %v353_v42, %v4196_v34  ;;  %v4379_v18 = vmul.f32 %v4217_v9, %v348_v36  ;;  %v4382_v14 = vmul.f32 %v4217_v9, %v344_v13  ;;  %v274_v42 = vpop.f32.mrb[11].mxu0  ;;  %v273_v58 = vadd.f32 %v272_v31, %v4183_v22 }
  0xfa   :  { %5457 = vst [vmem:[#allocation59_spill] sm:$0xff] %v4372_v0  ;;  %v4385_v49 = vmul.f32 %v4198_v38, %v269_v35  ;;  %v4388_v17 = vmul.f32 %v4192_v28, %v269_v35  ;;  %v4391_v23 = vmul.f32 %v4208_v55, %v352_v37  ;;  %v4394_v1 = vmul.f32 %v4213_v4, %v352_v37  ;;  %v357_v0 = vpop.f32.mrb[11].mxu1 }
  0xfb   :  { %v4397_v36 = vmul.f32 %v4200_v39, %v271_v10  ;;  %v4400_v13 = vmul.f32 %v4202_v41, %v271_v10  ;;  %v4403_v3 = vmul.f32 %v4234_v30, %v354_v29  ;;  %v4406_v11 = vmul.f32 %v4215_v8, %v354_v29 }
  0xfc   :  { %5458 = vst [vmem:[#allocation60_spill] sm:$0xff] %v4388_v17  ;;  %5459 = vst [vmem:[#allocation61_spill] sm:$0xff] %v4391_v23  ;;  %v356_v32 = vadd.f32 %v355_v20, %v4188_v24  ;;  %v275_v21 = vadd.f32 %v274_v42, %v4190_v25  ;;  %v358_v12 = vadd.f32 %v357_v0, %v4196_v34 }
  0xfd   :  { %5460 = vst [vmem:[#allocation62_spill] sm:$0xff] %v4394_v1  ;;  %5461 = vst [vmem:[#allocation63_spill] sm:$0xff] %v4397_v36  ;;  %v4413_v1 = vmul.f32 %v4194_v33, %v269_v35  ;;  %v4416_v17 = vmul.f32 %v4210_v56, %v352_v37  ;;  %v4422_v26 = vmul.f32 %v4217_v9, %v354_v29 }
  0xfe   :  { %5462 = vst [vmem:[#allocation64_spill] sm:$0xff] %v4400_v13  ;;  %5463 = vst [vmem:[#allocation65_spill] sm:$0xff] %v4403_v3  ;;  %v4419_v13 = vmul.f32 %v4204_v44, %v271_v10  ;;  %v4425_v31 = vmul.f32 %v4192_v28, %v273_v58  ;;  %v4428_v20 = vmul.f32 %v4198_v38, %v273_v58 }
  0xff   :  { %5464 = vst [vmem:[#allocation66_spill] sm:$0xff] %v4406_v11  ;;  %v4431_v0 = vmul.f32 %v4213_v4, %v356_v32  ;;  %v4434_v35 = vmul.f32 %v4208_v55, %v356_v32  ;;  %v4437_v37 = vmul.f32 %v4202_v41, %v275_v21  ;;  %v4440_v10 = vmul.f32 %v4200_v39, %v275_v21  ;;  %v278_v11 = vpop.f32.mrb[12].mxu0 }
 0x100   :  { %5465 = vst [vmem:[#allocation67_spill] sm:$0xff] %v4425_v31  ;;  %5466 = vst [vmem:[#allocation68_spill] sm:$0xff] %v4428_v20  ;;  %v4443_v29 = vmul.f32 %v4215_v8, %v358_v12  ;;  %v4446_v42 = vmul.f32 %v4234_v30, %v358_v12  ;;  %v361_v20 = vpop.f32.mrb[12].mxu1  ;;  %v279_v2 = vadd.f32 %v278_v11, %v4183_v22  ;;  %v280_v46 = vpop.f32.mrb[13].mxu0 }
 0x101   :  { %5467 = vst [vmem:[#allocation69_spill] sm:$0xff] %v4431_v0  ;;  %5468 = vst [vmem:[#allocation70_spill] sm:$0xff] %v4434_v35  ;;  %v362_v3 = vadd.f32 %v361_v20, %v4188_v24  ;;  %v363_v35 = vpop.f32.mrb[13].mxu1  ;;  %v4451_v36 = vmul.f32 %v4194_v33, %v273_v58  ;;  %v282_v52 = vpop.f32.mrb[14].mxu0  ;;  %v4459_v0 = vmul.f32 %v4210_v56, %v356_v32 }
 0x102   :  { %5469 = vst [vmem:[#allocation71_spill] sm:$0xff] %v4437_v37  ;;  %5470 = vst [vmem:[#allocation72_spill] sm:$0xff] %v4440_v10  ;;  %v4454_v37 = vmul.f32 %v4204_v44, %v275_v21  ;;  %v281_v10 = vadd.f32 %v280_v46, %v4190_v25  ;;  %v4462_v11 = vmul.f32 %v4217_v9, %v358_v12  ;;  %v284_v46 = vpop.f32.mrb[15].mxu0 }
 0x103   :  { %5471 = vst [vmem:[#allocation73_spill] sm:$0xff] %v4443_v29  ;;  %5472 = vst [vmem:[#allocation74_spill] sm:$0xff] %v4446_v42  ;;  %v364_v29 = vadd.f32 %v363_v35, %v4196_v34  ;;  %v365_v42 = vpop.f32.mrb[14].mxu1  ;;  %v1101_v20 = vmul.f32 %v4192_v28, %v279_v2  ;;  %v4466_v33 = vmul.f32 %v4198_v38, %v279_v2 }
 0x104   :  { %v1103_v44 = vmul.f32 %v4213_v4, %v362_v3  ;;  %v4470_v58 = vmul.f32 %v4208_v55, %v362_v3  ;;  %v367_v21 = vpop.f32.mrb[15].mxu1  ;;  %v1102_v35 = vmul.f32 %v4202_v41, %v281_v10  ;;  %v4474_v32 = vmul.f32 %v4200_v39, %v281_v10 }
 0x105   :  { %5473 = vst [vmem:[#allocation75_spill] sm:$0xff] %v4466_v33  ;;  %v1104_v12 = vmul.f32 %v4215_v8, %v364_v29  ;;  %v4478_v9 = vmul.f32 %v4234_v30, %v364_v29  ;;  %v283_v2 = vadd.f32 %v282_v52, %v4183_v22  ;;  %v366_v33 = vadd.f32 %v365_v42, %v4188_v24 }
 0x106   :  { %5474 = vst [vmem:[#allocation76_spill] sm:$0xff] %v4470_v58  ;;  %5475 = vst [vmem:[#allocation77_spill] sm:$0xff] %v4474_v32  ;;  %v285_v56 = vadd.f32 %v284_v46, %v4190_v25  ;;  %v368_v3 = vadd.f32 %v367_v21, %v4196_v34  ;;  %v4485_v58 = vadd.f32 %v1101_v20, %v4323_v60  ;;  %v288_v20 = vpop.f32.mrb[16].mxu0 }
 0x107   :  { %5476 = vst [vmem:[#allocation78_spill] sm:$0xff] %v4478_v9  ;;  %v4488_v23 = vadd.f32 %v1103_v44, %v4344_v40  ;;  %v4491_v10 = vadd.f32 %v1102_v35, %v4335_v47  ;;  %v4494_v29 = vadd.f32 %v1104_v12, %v4369_v57  ;;  %v906_v52 = vmul.f32 %v4192_v28, %v283_v2  ;;  %v371_v44 = vpop.f32.mrb[16].mxu1 }
 0x108   :  { %v4498_v42 = vmul.f32 %v4198_v38, %v283_v2  ;;  %v908_v46 = vmul.f32 %v4213_v4, %v366_v33  ;;  %v4502_v21 = vmul.f32 %v4208_v55, %v366_v33  ;;  %v907_v60 = vmul.f32 %v4202_v41, %v285_v56  ;;  %v290_v2 = vpop.f32.mrb[17].mxu0 }
 0x109   :  { %v4506_v40 = vmul.f32 %v4200_v39, %v285_v56  ;;  %v909_v47 = vmul.f32 %v4215_v8, %v368_v3  ;;  %v4510_v57 = vmul.f32 %v4234_v30, %v368_v3  ;;  %v289_v35 = vadd.f32 %v288_v20, %v4183_v22  ;;  %v292_v9 = vpop.f32.mrb[18].mxu0 }
 0x10a   :  { %5477 = vst [vmem:[#allocation79_spill] sm:$0xff] %v4498_v42  ;;  %5478 = vst [vmem:[#allocation80_spill] sm:$0xff] %v4502_v21  ;;  %v372_v12 = vadd.f32 %v371_v44, %v4188_v24  ;;  %v373_v42 = vpop.f32.mrb[17].mxu1  ;;  %v910_v33 = vadd.f32 %v906_v52, %v4305_v5  ;;  %v912_v21 = vadd.f32 %v908_v46, %v4320_v53  ;;  %v294_v53 = vpop.f32.mrb[19].mxu0 }
 0x10b   :  { %5479 = vst [vmem:[#allocation81_spill] sm:$0xff] %v4506_v40  ;;  %5480 = vst [vmem:[#allocation82_spill] sm:$0xff] %v4510_v57  ;;  %v291_v56 = vadd.f32 %v290_v2, %v4190_v25  ;;  %v374_v40 = vadd.f32 %v373_v42, %v4196_v34  ;;  %v375_v32 = vpop.f32.mrb[18].mxu1  ;;  %v911_v3 = vadd.f32 %v907_v60, %v4313_v63 }
 0x10c   :  { %v913_v57 = vadd.f32 %v909_v47, %v4332_v43  ;;  %v711_v20 = vmul.f32 %v4192_v28, %v289_v35  ;;  %v4522_v44 = vmul.f32 %v4198_v38, %v289_v35  ;;  %v713_v31 = vmul.f32 %v4213_v4, %v372_v12  ;;  %v377_v52 = vpop.f32.mrb[19].mxu1 }
 0x10d   :  { %v4526_v5 = vmul.f32 %v4208_v55, %v372_v12  ;;  %v712_v42 = vmul.f32 %v4202_v41, %v291_v56  ;;  %v4530_v46 = vmul.f32 %v4200_v39, %v291_v56  ;;  %v714_v63 = vmul.f32 %v4215_v8, %v374_v40 }
 0x10e   :  { %5481 = vst [vmem:[#allocation83_spill] sm:$0xff] %v4522_v44  ;;  %v4534_v43 = vmul.f32 %v4234_v30, %v374_v40  ;;  %v293_v60 = vadd.f32 %v292_v9, %v4183_v22  ;;  %v376_v47 = vadd.f32 %v375_v32, %v4188_v24  ;;  %v295_v35 = vadd.f32 %v294_v53, %v4190_v25  ;;  %v598_v9 = vpop.f32.mrb[20].mxu0 }
 0x10f   :  { %5482 = vst [vmem:[#allocation84_spill] sm:$0xff] %v4526_v5  ;;  %5483 = vst [vmem:[#allocation85_spill] sm:$0xff] %v4530_v46  ;;  %v378_v12 = vadd.f32 %v377_v52, %v4196_v34  ;;  %v715_v2 = vadd.f32 %v711_v20, %v4240_v6  ;;  %v717_v5 = vadd.f32 %v713_v31, %v4287_v51  ;;  %v600_v51 = vpop.f32.mrb[21].mxu0 }
 0x110   :  { %v716_v56 = vadd.f32 %v712_v42, %v4252_v62  ;;  %v718_v46 = vadd.f32 %v714_v63, %v4295_v7  ;;  %v495_v44 = vmul.f32 %v4192_v28, %v293_v60  ;;  %v4546_v40 = vmul.f32 %v4198_v38, %v293_v60  ;;  %v669_v28 = vpop.f32.mrb[20].mxu1  ;;  %v5496_v42 = vld [vmem:[#allocation47_spill] sm:$0xff]  ;;  %v5499_v60 = vld [vmem:[#allocation49_spill] sm:$0xff] }
 0x111   :  { %v497_v22 = vmul.f32 %v4213_v4, %v376_v47  ;;  %v4550_v24 = vmul.f32 %v4208_v55, %v376_v47  ;;  %v496_v25 = vmul.f32 %v4202_v41, %v295_v35  ;;  %v4554_v6 = vmul.f32 %v4200_v39, %v295_v35  ;;  %v671_v7 = vpop.f32.mrb[21].mxu1  ;;  %v5501_v35 = vld [vmem:[#allocation68_spill] sm:$0xff] }
 0x112   :  { %v498_v34 = vmul.f32 %v4215_v8, %v378_v12  ;;  %v4558_v62 = vmul.f32 %v4234_v30, %v378_v12  ;;  %v499_v38 = vadd.f32 %v495_v44, %v4237_v19  ;;  %v4563_v55 = vadd.f32 %v4413_v1, %v715_v2  ;;  %v5490_v44 = vld [vmem:[#allocation63_spill] sm:$0xff]  ;;  %v5502_v12 = vld [vmem:[#allocation60_spill] sm:$0xff] }
 0x113   :  { %v501_v4 = vadd.f32 %v497_v22, %v4273_v48  ;;  %v4566_v41 = vadd.f32 %v4416_v17, %v717_v5  ;;  %v500_v39 = vadd.f32 %v496_v25, %v4249_v61  ;;  %v4571_v30 = vadd.f32 %v4419_v13, %v716_v56  ;;  %v5491_v5 = vld [vmem:[#allocation71_spill] sm:$0xff]  ;;  %v5504_v25 = vld [vmem:[#allocation70_spill] sm:$0xff] }
 0x114   :  { %v502_v8 = vadd.f32 %v498_v34, %v4276_v50  ;;  %v4574_v31 = vadd.f32 %v4422_v26, %v718_v46  ;;  %v528_v19 = vadd.f32 %v4451_v36, %v499_v38  ;;  %v4579_v1 = vadd.f32 %v4351_v27, %v910_v33  ;;  %v5497_v46 = vld [vmem:[#allocation35_spill] sm:$0xff]  ;;  %v5505_v34 = vld [vmem:[#allocation62_spill] sm:$0xff]  ;;  %v5507_v38 = vld [vmem:[#allocation64_spill] sm:$0xff] }
 0x115   :  { %v530_v48 = vadd.f32 %v4459_v0, %v501_v4  ;;  %v4582_v17 = vadd.f32 %v4354_v45, %v912_v21  ;;  %v529_v61 = vadd.f32 %v4454_v37, %v500_v39  ;;  %v4587_v13 = vadd.f32 %v4357_v15, %v911_v3  ;;  %v5485_v21 = vld [vmem:[#allocation67_spill] sm:$0xff]  ;;  %v5508_v4 = vld [vmem:[#allocation36_spill] sm:$0xff]  ;;  %v5510_v39 = vld [vmem:[#allocation74_spill] sm:$0xff] }
 0x116   :  { %v531_v50 = vadd.f32 %v4462_v11, %v502_v8  ;;  %v4590_v26 = vadd.f32 %v4379_v18, %v913_v57  ;;  %v674_v32 = vadd.f32 %v598_v9, %v528_v19  ;;  %v4596_v27 = vadd.f32 %v4360_v59, %v4485_v58  ;;  %v5486_v59 = vld [vmem:[#allocation61_spill] sm:$0xff]  ;;  %v5511_v8 = vld [vmem:[#allocation66_spill] sm:$0xff] }
 0x117   :  { %v4592_v36 = vadd.f32 %v669_v28, %v530_v48  ;;  %v4600_v45 = vadd.f32 %v4363_v16, %v4488_v23  ;;  %v675_v0 = vadd.f32 %v600_v51, %v529_v61  ;;  %v4604_v15 = vadd.f32 %v4366_v54, %v4491_v10  ;;  %v5487_v58 = vld [vmem:[#allocation69_spill] sm:$0xff]  ;;  %v5488_v16 = vld [vmem:[#allocation46_spill] sm:$0xff]  ;;  %v5492_v54 = vld [vmem:[#allocation48_spill] sm:$0xff] }
 0x118   :  { %v677_v37 = vadd.f32 %v671_v7, %v531_v50  ;;  %v4608_v18 = vadd.f32 %v4382_v14, %v4494_v29  ;;  %v2668_v11 = vmul.f32 -1.442695, %v674_v32  ;;  %v1300_v57 = vadd.f32 %v5485_v21, %v4385_v49  ;;  %v5489_v23 = vld [vmem:[#allocation34_spill] sm:$0xff]  ;;  %v5494_v14 = vld [vmem:[#allocation65_spill] sm:$0xff]  ;;  %v5506_v28 = vld [vmem:[#allocation72_spill] sm:$0xff] }
 0x119   :  { %v1302_v33 = vadd.f32 %v5487_v58, %v5486_v59  ;;  %v2669_v3 = vmul.f32 -1.442695, %v675_v0  ;;  %v1306_v20 = vmul.f32 %v5489_v23, %v5488_v16  ;;  %v1301_v53 = vadd.f32 %v5491_v5, %v5490_v44  ;;  %v5495_v29 = vld [vmem:[#allocation73_spill] sm:$0xff]  ;;  %v5512_v48 = vld [vmem:[#allocation75_spill] sm:$0xff]  ;;  %v5513_v61 = vld [vmem:[#allocation54_spill] sm:$0xff] }
 0x11a   :  { %5484 = vst [vmem:[#allocation86_spill] sm:$0xff] %v4608_v18  ;;  %3527 = vpow2.f32 %v2668_v11  ;;  %v4619_v10 = vadd.f32 %v5492_v54, %v1300_v57  ;;  %v1303_v52 = vadd.f32 %v5495_v29, %v5494_v14  ;;  %v1307_v49 = vmul.f32 %v5497_v46, %v5496_v42  ;;  %v5514_v32 = vld [vmem:[#allocation76_spill] sm:$0xff]  ;;  %v5515_v0 = vld [vmem:[#allocation58_spill] sm:$0xff]  ;;  %v5516_v11 = vld [vmem:[#allocation41_spill] sm:$0xff] }
 0x11b   :  { %3529 = vpow2.f32 %v2669_v3  ;;  %v4625_v63 = vadd.f32 %v1306_v20, %v1302_v33  ;;  %v4628_v47 = vadd.f32 %v5499_v60, %v1301_v53  ;;  %v1495_v2 = vadd.f32 %v5502_v12, %v5501_v35  ;;  %v5518_v57 = vld [vmem:[#allocation38_spill] sm:$0xff]  ;;  %v5520_v58 = vld [vmem:[#allocation77_spill] sm:$0xff]  ;;  %v5521_v33 = vld [vmem:[#allocation56_spill] sm:$0xff] }
 0x11c   :  { %5493 = vst [vmem:[#allocation67_spill] sm:$0xff] %v4619_v10  ;;  %v2670_v56 = vmul.f32 -1.442695, %v677_v37  ;;  %v4632_v22 = vadd.f32 %v1307_v49, %v1303_v52  ;;  %v1497_v9 = vadd.f32 %v5505_v34, %v5504_v25  ;;  %v1496_v51 = vadd.f32 %v5507_v38, %v5506_v28  ;;  %v5522_v16 = vld [vmem:[#allocation78_spill] sm:$0xff]  ;;  %v5523_v23 = vld [vmem:[#allocation59_spill] sm:$0xff]  ;;  %v5524_v44 = vld [vmem:[#allocation44_spill] sm:$0xff] }
 0x11d   :  { %5498 = vst [vmem:[#allocation61_spill] sm:$0xff] %v4625_v63  ;;  %5500 = vst [vmem:[#allocation69_spill] sm:$0xff] %v4628_v47  ;;  %v4639_v7 = vadd.f32 %v5508_v4, %v1495_v2  ;;  %v1498_v19 = vadd.f32 %v5511_v8, %v5510_v39  ;;  %v1690_v50 = vadd.f32 %v5513_v61, %v5512_v48  ;;  %v5528_v14 = vld [vmem:[#allocation79_spill] sm:$0xff]  ;;  %v5529_v29 = vld [vmem:[#allocation52_spill] sm:$0xff] }
 0x11e   :  { %5503 = vst [vmem:[#allocation46_spill] sm:$0xff] %v4632_v22  ;;  %v1692_v37 = vadd.f32 %v5515_v0, %v5514_v32  ;;  %v4648_v21 = vadd.f32 %v5516_v11, %v1497_v9  ;;  %v4651_v59 = vadd.f32 %v5518_v57, %v1496_v51  ;;  %v1691_v3 = vadd.f32 %v5521_v33, %v5520_v58  ;;  %v5532_v49 = vld [vmem:[#allocation80_spill] sm:$0xff]  ;;  %v5533_v60 = vld [vmem:[#allocation55_spill] sm:$0xff]  ;;  %v5534_v12 = vld [vmem:[#allocation81_spill] sm:$0xff] }
 0x11f   :  { %5509 = vst [vmem:[#allocation34_spill] sm:$0xff] %v4639_v7  ;;  %v1693_v20 = vadd.f32 %v5523_v23, %v5522_v16  ;;  %v4658_v5 = vadd.f32 %v5524_v44, %v1498_v19  ;;  %v4661_v53 = vadd.f32 %v1690_v50, %v5508_v4  ;;  %v1881_v52 = vadd.f32 %v5529_v29, %v5528_v14  ;;  %v5535_v2 = vld [vmem:[#allocation53_spill] sm:$0xff]  ;;  %v5537_v9 = vld [vmem:[#allocation82_spill] sm:$0xff]  ;;  %v5539_v51 = vld [vmem:[#allocation83_spill] sm:$0xff] }
 0x120   :  { %5517 = vst [vmem:[#allocation63_spill] sm:$0xff] %v4648_v21  ;;  %5519 = vst [vmem:[#allocation71_spill] sm:$0xff] %v4651_v59  ;;  %v4664_v54 = vadd.f32 %v1692_v37, %v5516_v11  ;;  %v4669_v42 = vadd.f32 %v1691_v3, %v5518_v57  ;;  %v1883_v35 = vadd.f32 %v5533_v60, %v5532_v49  ;;  %v5538_v28 = vld [vmem:[#allocation57_spill] sm:$0xff]  ;;  %v5540_v39 = vld [vmem:[#allocation40_spill] sm:$0xff]  ;;  %3531 = vpow2.f32 %v2670_v56 }
 0x121   :  { %5525 = vst [vmem:[#allocation48_spill] sm:$0xff] %v4658_v5  ;;  %5526 = vst [vmem:[#allocation65_spill] sm:$0xff] %v4661_v53  ;;  %v4672_v46 = vadd.f32 %v1693_v20, %v5524_v44  ;;  %v1882_v25 = vadd.f32 %v5535_v2, %v5534_v12  ;;  %v4679_v34 = vadd.f32 %v1881_v52, %v5508_v4  ;;  %v5541_v19 = vld [vmem:[#allocation84_spill] sm:$0xff]  ;;  %v5542_v48 = vld [vmem:[#allocation50_spill] sm:$0xff]  ;;  %3533 = vtanh.f32 %v4592_v36 }
 0x122   :  { %5527 = vst [vmem:[#allocation73_spill] sm:$0xff] %v4664_v54  ;;  %5530 = vst [vmem:[#allocation47_spill] sm:$0xff] %v4669_v42  ;;  %v1884_v38 = vadd.f32 %v5538_v28, %v5537_v9  ;;  %v2072_v8 = vadd.f32 %v5540_v39, %v5539_v51  ;;  %v2074_v61 = vadd.f32 %v5542_v48, %v5541_v19  ;;  %v5545_v0 = vld [vmem:[#allocation85_spill] sm:$0xff]  ;;  %v5546_v37 = vld [vmem:[#allocation42_spill] sm:$0xff] }
 0x123   :  { %5531 = vst [vmem:[#allocation35_spill] sm:$0xff] %v4672_v46  ;;  %5536 = vst [vmem:[#allocation49_spill] sm:$0xff] %v4679_v34  ;;  %v4688_v50 = vadd.f32 %v1883_v35, %v5516_v11  ;;  %v4691_v32 = vadd.f32 %v1882_v25, %v5518_v57  ;;  %v2073_v58 = vadd.f32 %v5546_v37, %v5545_v0  ;;  %v5547_v33 = vld [vmem:[#allocation51_spill] sm:$0xff]  ;;  %v5551_v14 = vld [vmem:[#allocation37_spill] sm:$0xff] }
 0x124   :  { %v2075_v3 = vadd.f32 %v5547_v33, %v4534_v43  ;;  %v4698_v16 = vadd.f32 %v1884_v38, %v5524_v44  ;;  %v4701_v23 = vadd.f32 %v2072_v8, %v5508_v4  ;;  %v4704_v20 = vadd.f32 %v2074_v61, %v5516_v11  ;;  %v3528_v52 = vpop.eup %3527  ;;  %v5554_v43 = vld [vmem:[#allocation43_spill] sm:$0xff]  ;;  %v4736_v56 = vld [vmem:[%s5319_s7] sm:$0xff] }
 0x125   :  { %5543 = vst [vmem:[#allocation68_spill] sm:$0xff] %v4688_v50  ;;  %5544 = vst [vmem:[#allocation60_spill] sm:$0xff] %v4691_v32  ;;  %v2263_v29 = vadd.f32 %v5551_v14, %v4546_v40  ;;  %v4709_v49 = vadd.f32 %v2073_v58, %v5518_v57  ;;  %v2265_v35 = vadd.f32 %v5554_v43, %v4550_v24  ;;  %v5555_v12 = vld [vmem:[#allocation39_spill] sm:$0xff]  ;;  %v3530_v25 = vpop.eup %3529  ;;  %v681_v9 = vadd.f32 1.0, %v3528_v52  ;;  %v5557_v40 = vld [vmem:[#allocation45_spill] sm:$0xff] }
 0x126   :  { %5548 = vst [vmem:[#allocation70_spill] sm:$0xff] %v4698_v16  ;;  %5549 = vst [vmem:[#allocation62_spill] sm:$0xff] %v4701_v23  ;;  %v4712_v60 = vadd.f32 %v2075_v3, %v5524_v44  ;;  %v2264_v2 = vadd.f32 %v5555_v12, %v4554_v6  ;;  %v2266_v38 = vadd.f32 %v5557_v40, %v4558_v62  ;;  %v687_v51 = vadd.f32 1.0, %v3530_v25  ;;  %v4741_v62 = vld [vmem:[%s5320_s8] sm:$0xff]  ;;  %v5563_v14 = vld [vmem:[#allocation3_spill] sm:$0xff] }
 0x127   :  { %5550 = vst [vmem:[#allocation72_spill] sm:$0xff] %v4704_v20  ;;  %5552 = vst [vmem:[#allocation64_spill] sm:$0xff] %v4709_v49  ;;  %v4719_v28 = vadd.f32 %v2263_v29, %v5508_v4  ;;  %v4725_v39 = vadd.f32 %v2265_v35, %v5516_v11  ;;  %3535 = vrcp.f32 %v681_v9  ;;  %vm702_vm1 = vcmp.le.s32.totalorder %v4736_v56, 0  ;;  %v5564_v29 = vld [vmem:[#allocation6_spill] sm:$0xff]  ;;  %v5565_v52 = vld [vmem:[#allocation5_spill] sm:$0xff] }
 0x128   :  { %5553 = vst [vmem:[#allocation36_spill] sm:$0xff] %v4712_v60  ;;  %v4728_v24 = vadd.f32 %v2264_v2, %v5518_v57  ;;  %v4731_v6 = vadd.f32 %v2266_v38, %v5524_v44  ;;  %3537 = vrcp.f32 %v687_v51  ;;  %vm703_vm2 = vcmp.gt.s32.totalorder %v4741_v62, 0  ;;  %v5566_v43 = vld [vmem:[#allocation7_spill] sm:$0xff]  ;;  %v5568_v12 = vld [vmem:[#allocation8_spill] sm:$0xff]  ;;  %v5569_v2 = vld [vmem:[#allocation10_spill] sm:$0xff] }
 0x129   :  { %5556 = vst [vmem:[#allocation74_spill] sm:$0xff] %v4719_v28  ;;  %5558 = vst [vmem:[#allocation66_spill] sm:$0xff] %v4725_v39  ;;  %v5567_v35 = vmov 0.0   ;;  %v5570_v25 = vld [vmem:[#allocation9_spill] sm:$0xff]  ;;  %v5572_v40 = vld [vmem:[#allocation11_spill] sm:$0xff]  ;;  %vm897_vm4 = vcmp.le.s32.totalorder %v4736_v56, 1 }
 0x12a   :  { %5559 = vst [vmem:[#allocation75_spill] sm:$0xff] %v4728_v24  ;;  %5560 = vst [vmem:[#allocation54_spill] sm:$0xff] %v4731_v6  ;;  %v3532_v36 = vpop.eup %3531  ;;  %v5571_v9 = vld [vmem:[#allocation13_spill] sm:$0xff]  ;;  %v5573_v38 = vld [vmem:[#allocation14_spill] sm:$0xff]  ;;  %vm898_vm5 = vcmp.gt.s32.totalorder %v4741_v62, 1  ;;  %vm1092_vm7 = vcmp.le.s32.totalorder %v4736_v56, 2 }
 0x12b   :  { %v3534_v4 = vpop.eup %3533  ;;  %v694_v8 = vadd.f32 1.0, %v3532_v36  ;;  %vm4745_vm3 = vmand %vm702_vm1, %vm703_vm2  ;;  %v5574_v51 = vld [vmem:[#allocation12_spill] sm:$0xff]  ;;  %v5585_v3 = vld [vmem:[#allocation26_spill] sm:$0xff]  ;;  %vm1093_vm8 = vcmp.gt.s32.totalorder %v4741_v62, 2  ;;  %vm1287_vm10 = vcmp.le.s32.totalorder %v4736_v56, 3  ;;  %vm1288_vm11 = vcmp.gt.s32.totalorder %v4741_v62, 3 }
 0x12c   :  { %v5575_v36 = vld [vmem:[#allocation16_spill] sm:$0xff]  ;;  %v5588_v39 = vld [vmem:[#allocation27_spill] sm:$0xff]  ;;  %v5589_v28 = vld [vmem:[#allocation30_spill] sm:$0xff]  ;;  %vm1482_vm13 = vcmp.le.s32.totalorder %v4736_v56, 4  ;;  %vm1483_vm14 = vcmp.gt.s32.totalorder %v4741_v62, 4  ;;  %vm1677_vm0 = vcmp.le.s32.totalorder %v4736_v56, 5 }
 0x12d   :  { %3539 = vrcp.f32 %v694_v8  ;;  %v5580_v8 = vld [vmem:[#allocation18_spill] sm:$0xff]  ;;  %v5586_v6 = vld [vmem:[#allocation24_spill] sm:$0xff]  ;;  %v5590_v60 = vld [vmem:[#allocation29_spill] sm:$0xff]  ;;  %vm1678_vm1 = vcmp.gt.s32.totalorder %v4741_v62, 5 }
 0x12e   :  { %v5587_v24 = vld [vmem:[#allocation28_spill] sm:$0xff]  ;;  %v5592_v20 = vld [vmem:[#allocation31_spill] sm:$0xff]  ;;  %v5593_v23 = vld [vmem:[#allocation33_spill] sm:$0xff] }
 0x12f   :  { %v5591_v49 = vld [vmem:[#allocation32_spill] sm:$0xff]  ;;  %v5594_v16 = vld [vmem:[#allocation2_spill] sm:$0xff]  ;;  %vm899_vm6 = vmand %vm897_vm4, %vm898_vm5  ;;  %vm1869_vm4 = vcmp.gt.s32.totalorder %v4741_v62, 6 }
 0x130   :  { %v5595_v32 = vld [vmem:[#allocation4_spill] sm:$0xff]  ;;  %vm1094_vm9 = vmand %vm1092_vm7, %vm1093_vm8 }
 0x131   :  { %v3536_v11 = vpop.eup %3535  ;;  %vm1289_vm12 = vmand %vm1287_vm10, %vm1288_vm11 }
 0x132   :  { %v3538_v57 = vpop.eup %3537  ;;  %v698_v44 = vmul.f32 %v3536_v11, %v3534_v4  ;;  %v5576_v4 = vld [vmem:[#allocation15_spill] sm:$0xff]  ;;  %vm1484_vm15 = vmand %vm1482_vm13, %vm1483_vm14 }
 0x133   :  { %v697_v19 = vmul.f32 0.0, %v3538_v57  ;;  %v5577_v11 = vld [vmem:[#allocation19_spill] sm:$0xff]  ;;  %v5578_v57 = vld [vmem:[#allocation17_spill] sm:$0xff]  ;;  %vm1679_vm2 = vmand %vm1677_vm0, %vm1678_vm1 }
 0x135   :  { %v699_v61 = vadd.f32 %v698_v44, %v697_v19  ;;  %v5579_v44 = vld [vmem:[#allocation21_spill] sm:$0xff]  ;;  %v5581_v19 = vld [vmem:[#allocation23_spill] sm:$0xff] }
 0x137   :  { %3541 = vtanh.f32 %v699_v61  ;;  %v4751_v0 = vsel %vm4745_vm3, %v699_v61, 0.0  ;;  %v3540_v37 = vpop.eup %3539  ;;  %v5582_v61 = vld [vmem:[#allocation20_spill] sm:$0xff] }
 0x141   :  { %v3542_v58 = vpop.eup %3541 }
 0x142   :  { %v4753_v33 = vmul.f32 %v3542_v58, %v3540_v37  ;;  %v5583_v37 = vld [vmem:[#allocation25_spill] sm:$0xff]  ;;  %v5584_v58 = vld [vmem:[#allocation22_spill] sm:$0xff] }
 0x144   :  { %2671 = vmatmul.mubr.msk.f32.vlgmr.msra.gmra.mrb[22].mxu0 %vm4745_vm3, %v4753_v33  ;;  %2672 = vmatmul.mubr.msk.f32.vlgmr.msra.gmra.mrb[22].mxu1 %vm4745_vm3, %v4753_v33 }
 0x145   :  { %2937 = vmatpush1.bf16.msra.mxu0 %v5563_v14  ;;  %2969 = vmatpush1.bf16.msra.mxu1 %v5564_v29 }
 0x146   :  { %2939 = vmatprep.subr.bf16.mxu0 %v5565_v52  ;;  %2971 = vmatprep.subr.bf16.mxu1 %v5566_v43 }
 0x147   :  { %986 = vmatprep.mubr.f32.mxu0 %v5567_v35  ;;  %1057 = vmatprep.mubr.f32.mxu1 %v5567_v35 }
 0x149   :  { %2941 = vmatpush1.bf16.msra.mxu0 %v5568_v12  ;;  %2973 = vmatpush1.bf16.msra.mxu1 %v5569_v2 }
 0x14a   :  { %2943 = vmatprep.subr.bf16.mxu0 %v5570_v25  ;;  %2975 = vmatprep.subr.bf16.mxu1 %v5571_v9 }
 0x14d   :  { %2945 = vmatpush1.bf16.msra.mxu0 %v5572_v40  ;;  %2977 = vmatpush1.bf16.msra.mxu1 %v5573_v38 }
 0x14e   :  { %2947 = vmatprep.subr.bf16.mxu0 %v5574_v51  ;;  %2979 = vmatprep.subr.bf16.mxu1 %v5575_v36 }
 0x151   :  { %2949 = vmatpush1.bf16.msra.mxu0 %v5576_v4  ;;  %2981 = vmatpush1.bf16.msra.mxu1 %v5577_v11 }
 0x152   :  { %2951 = vmatprep.subr.bf16.mxu0 %v5578_v57  ;;  %2983 = vmatprep.subr.bf16.mxu1 %v5579_v44 }
 0x155   :  { %2953 = vmatpush1.bf16.msra.mxu0 %v5580_v8  ;;  %2985 = vmatpush1.bf16.msra.mxu1 %v5581_v19 }
 0x156   :  { %2955 = vmatprep.subr.bf16.mxu0 %v5582_v61  ;;  %2987 = vmatprep.subr.bf16.mxu1 %v5583_v37 }
 0x159   :  { %2957 = vmatpush1.bf16.msra.mxu0 %v5584_v58  ;;  %2989 = vmatpush1.bf16.msra.mxu1 %v5585_v3 }
 0x15a   :  { %2959 = vmatprep.subr.bf16.mxu0 %v5586_v6  ;;  %2991 = vmatprep.subr.bf16.mxu1 %v5587_v24 }
 0x15d   :  { %2961 = vmatpush1.bf16.msra.mxu0 %v5588_v39  ;;  %2993 = vmatpush1.bf16.msra.mxu1 %v5589_v28 }
 0x15e   :  { %2963 = vmatprep.subr.bf16.mxu0 %v5590_v60  ;;  %2995 = vmatprep.subr.bf16.mxu1 %v5591_v49 }
 0x161   :  { %2965 = vmatpush1.bf16.msra.mxu0 %v5592_v20  ;;  %2997 = vmatpush1.bf16.msra.mxu1 %v5593_v23 }
 0x162   :  { %2999 = vmatprep.subr.bf16.mxu0 %v5594_v16  ;;  %3031 = vmatprep.subr.bf16.mxu1 %v5595_v32 }
 0x217   :  { %v793_v50 = vpop.f32.mrb[22].mxu0  ;;  %v864_v34 = vpop.f32.mrb[22].mxu1 }
 0x218   :  { %v869_v46 = vadd.f32 %v793_v50, %v4563_v55  ;;  %v871_v42 = vadd.f32 %v864_v34, %v4566_v41  ;;  %v795_v54 = vpop.f32.mrb[23].mxu0  ;;  %v866_v53 = vpop.f32.mrb[23].mxu1 }
 0x219   :  { %v870_v5 = vadd.f32 %v795_v54, %v4571_v30  ;;  %v872_v59 = vadd.f32 %v866_v53, %v4574_v31 }
 0x21a   :  { %v2673_v21 = vmul.f32 -1.442695, %v869_v46 }
 0x21b   :  { %v2674_v7 = vmul.f32 -1.442695, %v870_v5  ;;  %v2675_v22 = vmul.f32 -1.442695, %v872_v59 }
 0x21c   :  { %3543 = vpow2.f32 %v2673_v21 }
 0x21d   :  { %3545 = vpow2.f32 %v2674_v7 }
 0x21e   :  { %3547 = vpow2.f32 %v2675_v22  ;;  %v5596_v22 = vsel %vm4745_vm3, %v4753_v33, 0.0  ;;  %vm1868_vm3 = vcmp.le.s32.totalorder %v4736_v56, 6 }
 0x21f   :  { %3549 = vtanh.f32 %v871_v42  ;;  %vm1870_vm5 = vmand %vm1868_vm3, %vm1869_vm4 }
 0x226   :  { %v3544_v47 = vpop.eup %3543 }
 0x227   :  { %v3546_v63 = vpop.eup %3545  ;;  %v876_v10 = vadd.f32 1.0, %v3544_v47 }
 0x228   :  { %v882_v18 = vadd.f32 1.0, %v3546_v63  ;;  %v3548_v55 = vpop.eup %3547 }
 0x229   :  { %3551 = vrcp.f32 %v876_v10  ;;  %v3550_v41 = vpop.eup %3549  ;;  %v889_v21 = vadd.f32 1.0, %v3548_v55 }
 0x22a   :  { %3553 = vrcp.f32 %v882_v18 }
 0x22b   :  { %3555 = vrcp.f32 %v889_v21 }
 0x233   :  { %v3552_v34 = vpop.eup %3551 }
 0x234   :  { %v3554_v30 = vpop.eup %3553  ;;  %v893_v31 = vmul.f32 %v3552_v34, %v3550_v41 }
 0x235   :  { %v892_v7 = vmul.f32 %v3554_v30, %v4751_v0  ;;  %v3556_v18 = vpop.eup %3555 }
 0x237   :  { %v894_v59 = vadd.f32 %v893_v31, %v892_v7 }
 0x239   :  { %3557 = vtanh.f32 %v894_v59  ;;  %v4806_v63 = vsel %vm899_vm6, %v894_v59, %v4751_v0 }
 0x243   :  { %v3558_v10 = vpop.eup %3557 }
 0x244   :  { %v896_v47 = vmul.f32 %v3558_v10, %v3556_v18 }
 0x246   :  { %v4812_v5 = vsel %vm899_vm6, %v896_v47, %v5596_v22 }
 0x247   :  { %987 = vmatmul.mubr.f32.vlgmr.msra.gmra.mrb[24].mxu0 %v4812_v5  ;;  %1058 = vmatmul.mubr.f32.vlgmr.msra.gmra.mrb[24].mxu1 %v4812_v5 }
 0x248   :  { %3001 = vmatpush1.bf16.msra.mxu0 %v5563_v14  ;;  %3033 = vmatpush1.bf16.msra.mxu1 %v5564_v29 }
 0x249   :  { %3003 = vmatprep.subr.bf16.mxu0 %v5565_v52  ;;  %3035 = vmatprep.subr.bf16.mxu1 %v5566_v43 }
 0x24a   :  { %1181 = vmatprep.mubr.f32.mxu0 %v5567_v35  ;;  %1252 = vmatprep.mubr.f32.mxu1 %v5567_v35 }
 0x24c   :  { %3005 = vmatpush1.bf16.msra.mxu0 %v5568_v12  ;;  %3037 = vmatpush1.bf16.msra.mxu1 %v5569_v2 }
 0x24d   :  { %3007 = vmatprep.subr.bf16.mxu0 %v5570_v25  ;;  %3039 = vmatprep.subr.bf16.mxu1 %v5571_v9 }
 0x250   :  { %3009 = vmatpush1.bf16.msra.mxu0 %v5572_v40  ;;  %3041 = vmatpush1.bf16.msra.mxu1 %v5573_v38 }
 0x251   :  { %3011 = vmatprep.subr.bf16.mxu0 %v5574_v51  ;;  %3043 = vmatprep.subr.bf16.mxu1 %v5575_v36 }
 0x254   :  { %3013 = vmatpush1.bf16.msra.mxu0 %v5576_v4  ;;  %3045 = vmatpush1.bf16.msra.mxu1 %v5577_v11 }
 0x255   :  { %3015 = vmatprep.subr.bf16.mxu0 %v5578_v57  ;;  %3047 = vmatprep.subr.bf16.mxu1 %v5579_v44 }
 0x258   :  { %3017 = vmatpush1.bf16.msra.mxu0 %v5580_v8  ;;  %3049 = vmatpush1.bf16.msra.mxu1 %v5581_v19 }
 0x259   :  { %3019 = vmatprep.subr.bf16.mxu0 %v5582_v61  ;;  %3051 = vmatprep.subr.bf16.mxu1 %v5583_v37 }
 0x25c   :  { %3021 = vmatpush1.bf16.msra.mxu0 %v5584_v58  ;;  %3053 = vmatpush1.bf16.msra.mxu1 %v5585_v3 }
 0x25d   :  { %3023 = vmatprep.subr.bf16.mxu0 %v5586_v6  ;;  %3055 = vmatprep.subr.bf16.mxu1 %v5587_v24 }
 0x260   :  { %3025 = vmatpush1.bf16.msra.mxu0 %v5588_v39  ;;  %3057 = vmatpush1.bf16.msra.mxu1 %v5589_v28 }
 0x261   :  { %3027 = vmatprep.subr.bf16.mxu0 %v5590_v60  ;;  %3059 = vmatprep.subr.bf16.mxu1 %v5591_v49 }
 0x264   :  { %3029 = vmatpush1.bf16.msra.mxu0 %v5592_v20  ;;  %3061 = vmatpush1.bf16.msra.mxu1 %v5593_v23 }
 0x265   :  { %3063 = vmatprep.subr.bf16.mxu0 %v5594_v16  ;;  %3095 = vmatprep.subr.bf16.mxu1 %v5595_v32 }
 0x31a   :  { %v988_v53 = vpop.f32.mrb[24].mxu0  ;;  %v1059_v54 = vpop.f32.mrb[24].mxu1 }
 0x31b   :  { %v1064_v42 = vadd.f32 %v988_v53, %v4579_v1  ;;  %v1066_v46 = vadd.f32 %v1059_v54, %v4582_v17  ;;  %v990_v50 = vpop.f32.mrb[25].mxu0  ;;  %v1061_v48 = vpop.f32.mrb[25].mxu1 }
 0x31c   :  { %v1065_v0 = vadd.f32 %v990_v50, %v4587_v13  ;;  %v1067_v33 = vadd.f32 %v1061_v48, %v4590_v26 }
 0x31d   :  { %v2676_v55 = vmul.f32 -1.442695, %v1064_v42 }
 0x31e   :  { %v2677_v41 = vmul.f32 -1.442695, %v1065_v0  ;;  %v2678_v34 = vmul.f32 -1.442695, %v1067_v33 }
 0x31f   :  { %3559 = vpow2.f32 %v2676_v55 }
 0x320   :  { %3561 = vpow2.f32 %v2677_v41  ;;  %v5597_v41 = vld [vmem:[#allocation86_spill] sm:$0xff] }
 0x321   :  { %3563 = vpow2.f32 %v2678_v34 }
 0x322   :  { %3565 = vtanh.f32 %v1066_v46 }
 0x329   :  { %v3560_v30 = vpop.eup %3559 }
 0x32a   :  { %v3562_v31 = vpop.eup %3561  ;;  %v1071_v21 = vadd.f32 1.0, %v3560_v30 }
 0x32b   :  { %v1077_v7 = vadd.f32 1.0, %v3562_v31  ;;  %v3564_v1 = vpop.eup %3563 }
 0x32c   :  { %3567 = vrcp.f32 %v1071_v21  ;;  %v3566_v17 = vpop.eup %3565  ;;  %v1084_v18 = vadd.f32 1.0, %v3564_v1 }
 0x32d   :  { %3569 = vrcp.f32 %v1077_v7 }
 0x32e   :  { %3571 = vrcp.f32 %v1084_v18 }
 0x336   :  { %v3568_v59 = vpop.eup %3567 }
 0x337   :  { %v3570_v13 = vpop.eup %3569  ;;  %v1088_v26 = vmul.f32 %v3568_v59, %v3566_v17 }
 0x338   :  { %v1087_v10 = vmul.f32 %v3570_v13, %v4806_v63  ;;  %v3572_v53 = vpop.eup %3571 }
 0x33a   :  { %v1089_v47 = vadd.f32 %v1088_v26, %v1087_v10 }
 0x33c   :  { %3573 = vtanh.f32 %v1089_v47  ;;  %v4858_v22 = vsel %vm1094_vm9, %v1089_v47, %v4806_v63 }
 0x346   :  { %v3574_v54 = vpop.eup %3573 }
 0x347   :  { %v1091_v42 = vmul.f32 %v3574_v54, %v3572_v53 }
 0x349   :  { %v4861_v46 = vsel %vm1094_vm9, %v1091_v42, %v4812_v5 }
 0x34a   :  { %1182 = vmatmul.mubr.f32.vlgmr.msra.gmra.mrb[26].mxu0 %v4861_v46  ;;  %1253 = vmatmul.mubr.f32.vlgmr.msra.gmra.mrb[26].mxu1 %v4861_v46 }
 0x34b   :  { %3065 = vmatpush1.bf16.msra.mxu0 %v5563_v14  ;;  %3097 = vmatpush1.bf16.msra.mxu1 %v5564_v29 }
 0x34c   :  { %3067 = vmatprep.subr.bf16.mxu0 %v5565_v52  ;;  %3099 = vmatprep.subr.bf16.mxu1 %v5566_v43 }
 0x34d   :  { %1376 = vmatprep.mubr.f32.mxu0 %v5567_v35  ;;  %1447 = vmatprep.mubr.f32.mxu1 %v5567_v35 }
 0x34f   :  { %3069 = vmatpush1.bf16.msra.mxu0 %v5568_v12  ;;  %3101 = vmatpush1.bf16.msra.mxu1 %v5569_v2 }
 0x350   :  { %3071 = vmatprep.subr.bf16.mxu0 %v5570_v25  ;;  %3103 = vmatprep.subr.bf16.mxu1 %v5571_v9 }
 0x353   :  { %3073 = vmatpush1.bf16.msra.mxu0 %v5572_v40  ;;  %3105 = vmatpush1.bf16.msra.mxu1 %v5573_v38 }
 0x354   :  { %3075 = vmatprep.subr.bf16.mxu0 %v5574_v51  ;;  %3107 = vmatprep.subr.bf16.mxu1 %v5575_v36 }
 0x357   :  { %3077 = vmatpush1.bf16.msra.mxu0 %v5576_v4  ;;  %3109 = vmatpush1.bf16.msra.mxu1 %v5577_v11 }
 0x358   :  { %3079 = vmatprep.subr.bf16.mxu0 %v5578_v57  ;;  %3111 = vmatprep.subr.bf16.mxu1 %v5579_v44 }
 0x35b   :  { %3081 = vmatpush1.bf16.msra.mxu0 %v5580_v8  ;;  %3113 = vmatpush1.bf16.msra.mxu1 %v5581_v19 }
 0x35c   :  { %3083 = vmatprep.subr.bf16.mxu0 %v5582_v61  ;;  %3115 = vmatprep.subr.bf16.mxu1 %v5583_v37 }
 0x35f   :  { %3085 = vmatpush1.bf16.msra.mxu0 %v5584_v58  ;;  %3117 = vmatpush1.bf16.msra.mxu1 %v5585_v3 }
 0x360   :  { %3087 = vmatprep.subr.bf16.mxu0 %v5586_v6  ;;  %3119 = vmatprep.subr.bf16.mxu1 %v5587_v24 }
 0x363   :  { %3089 = vmatpush1.bf16.msra.mxu0 %v5588_v39  ;;  %3121 = vmatpush1.bf16.msra.mxu1 %v5589_v28 }
 0x364   :  { %3091 = vmatprep.subr.bf16.mxu0 %v5590_v60  ;;  %3123 = vmatprep.subr.bf16.mxu1 %v5591_v49 }
 0x367   :  { %3093 = vmatpush1.bf16.msra.mxu0 %v5592_v20  ;;  %3125 = vmatpush1.bf16.msra.mxu1 %v5593_v23 }
 0x368   :  { %3127 = vmatprep.subr.bf16.mxu0 %v5594_v16  ;;  %3159 = vmatprep.subr.bf16.mxu1 %v5595_v32 }
 0x41d   :  { %v1183_v63 = vpop.f32.mrb[26].mxu0  ;;  %v1254_v5 = vpop.f32.mrb[26].mxu1 }
 0x41e   :  { %v1259_v50 = vadd.f32 %v1183_v63, %v4596_v27  ;;  %v1261_v48 = vadd.f32 %v1254_v5, %v4600_v45  ;;  %v1185_v0 = vpop.f32.mrb[27].mxu0  ;;  %v1256_v33 = vpop.f32.mrb[27].mxu1 }
 0x41f   :  { %v1260_v55 = vadd.f32 %v1185_v0, %v4604_v15  ;;  %v1262_v34 = vadd.f32 %v1256_v33, %v5597_v41  ;;  %v5599_v0 = vld [vmem:[#allocation61_spill] sm:$0xff] }
 0x420   :  { %v2679_v30 = vmul.f32 -1.442695, %v1259_v50  ;;  %v5598_v50 = vld [vmem:[#allocation67_spill] sm:$0xff] }
 0x421   :  { %v2680_v31 = vmul.f32 -1.442695, %v1260_v55  ;;  %v2681_v21 = vmul.f32 -1.442695, %v1262_v34  ;;  %v5600_v34 = vld [vmem:[#allocation69_spill] sm:$0xff] }
 0x422   :  { %3575 = vpow2.f32 %v2679_v30 }
 0x423   :  { %3577 = vpow2.f32 %v2680_v31  ;;  %v5601_v31 = vld [vmem:[#allocation46_spill] sm:$0xff] }
 0x424   :  { %3579 = vpow2.f32 %v2681_v21 }
 0x425   :  { %3581 = vtanh.f32 %v1261_v48 }
 0x42c   :  { %v3576_v7 = vpop.eup %3575 }
 0x42d   :  { %v3578_v1 = vpop.eup %3577  ;;  %v1266_v17 = vadd.f32 1.0, %v3576_v7 }
 0x42e   :  { %v1272_v59 = vadd.f32 1.0, %v3578_v1  ;;  %v3580_v27 = vpop.eup %3579 }
 0x42f   :  { %3583 = vrcp.f32 %v1266_v17  ;;  %v3582_v45 = vpop.eup %3581  ;;  %v1279_v18 = vadd.f32 1.0, %v3580_v27 }
 0x430   :  { %3585 = vrcp.f32 %v1272_v59 }
 0x431   :  { %3587 = vrcp.f32 %v1279_v18 }
 0x439   :  { %v3584_v13 = vpop.eup %3583 }
 0x43a   :  { %v3586_v15 = vpop.eup %3585  ;;  %v1283_v26 = vmul.f32 %v3584_v13, %v3582_v45 }
 0x43b   :  { %v1282_v10 = vmul.f32 %v3586_v15, %v4858_v22  ;;  %v3588_v54 = vpop.eup %3587 }
 0x43d   :  { %v1284_v47 = vadd.f32 %v1283_v26, %v1282_v10 }
 0x43f   :  { %3589 = vtanh.f32 %v1284_v47  ;;  %v4907_v53 = vsel %vm1289_vm12, %v1284_v47, %v4858_v22 }
 0x449   :  { %v3590_v42 = vpop.eup %3589 }
 0x44a   :  { %v1286_v63 = vmul.f32 %v3590_v42, %v3588_v54 }
 0x44c   :  { %v4910_v5 = vsel %vm1289_vm12, %v1286_v63, %v4861_v46  ;;  %vm3692_vm12 = vmmov 0  }
 0x44d   :  { %1377 = vmatmul.mubr.f32.vlgmr.msra.gmra.mrb[28].mxu0 %v4910_v5  ;;  %1448 = vmatmul.mubr.f32.vlgmr.msra.gmra.mrb[28].mxu1 %v4910_v5 }
 0x44e   :  { %3129 = vmatpush1.bf16.msra.mxu0 %v5563_v14  ;;  %3161 = vmatpush1.bf16.msra.mxu1 %v5564_v29 }
 0x44f   :  { %3131 = vmatprep.subr.bf16.mxu0 %v5565_v52  ;;  %3163 = vmatprep.subr.bf16.mxu1 %v5566_v43 }
 0x450   :  { %1571 = vmatprep.mubr.f32.mxu0 %v5567_v35  ;;  %1642 = vmatprep.mubr.f32.mxu1 %v5567_v35 }
 0x452   :  { %3133 = vmatpush1.bf16.msra.mxu0 %v5568_v12  ;;  %3165 = vmatpush1.bf16.msra.mxu1 %v5569_v2 }
 0x453   :  { %3135 = vmatprep.subr.bf16.mxu0 %v5570_v25  ;;  %3167 = vmatprep.subr.bf16.mxu1 %v5571_v9 }
 0x456   :  { %3137 = vmatpush1.bf16.msra.mxu0 %v5572_v40  ;;  %3169 = vmatpush1.bf16.msra.mxu1 %v5573_v38 }
 0x457   :  { %3139 = vmatprep.subr.bf16.mxu0 %v5574_v51  ;;  %3171 = vmatprep.subr.bf16.mxu1 %v5575_v36 }
 0x45a   :  { %3141 = vmatpush1.bf16.msra.mxu0 %v5576_v4  ;;  %3173 = vmatpush1.bf16.msra.mxu1 %v5577_v11 }
 0x45b   :  { %3143 = vmatprep.subr.bf16.mxu0 %v5578_v57  ;;  %3175 = vmatprep.subr.bf16.mxu1 %v5579_v44 }
 0x45e   :  { %3145 = vmatpush1.bf16.msra.mxu0 %v5580_v8  ;;  %3177 = vmatpush1.bf16.msra.mxu1 %v5581_v19 }
 0x45f   :  { %3147 = vmatprep.subr.bf16.mxu0 %v5582_v61  ;;  %3179 = vmatprep.subr.bf16.mxu1 %v5583_v37 }
 0x462   :  { %3149 = vmatpush1.bf16.msra.mxu0 %v5584_v58  ;;  %3181 = vmatpush1.bf16.msra.mxu1 %v5585_v3 }
 0x463   :  { %3151 = vmatprep.subr.bf16.mxu0 %v5586_v6  ;;  %3183 = vmatprep.subr.bf16.mxu1 %v5587_v24 }
 0x466   :  { %3153 = vmatpush1.bf16.msra.mxu0 %v5588_v39  ;;  %3185 = vmatpush1.bf16.msra.mxu1 %v5589_v28 }
 0x467   :  { %3155 = vmatprep.subr.bf16.mxu0 %v5590_v60  ;;  %3187 = vmatprep.subr.bf16.mxu1 %v5591_v49 }
 0x46a   :  { %3157 = vmatpush1.bf16.msra.mxu0 %v5592_v20  ;;  %3189 = vmatpush1.bf16.msra.mxu1 %v5593_v23 }
 0x46b   :  { %3191 = vmatprep.subr.bf16.mxu0 %v5594_v16  ;;  %3223 = vmatprep.subr.bf16.mxu1 %v5595_v32 }
 0x520   :  { %v1378_v22 = vpop.f32.mrb[28].mxu0  ;;  %v1449_v46 = vpop.f32.mrb[28].mxu1 }
 0x521   :  { %v1454_v48 = vadd.f32 %v1378_v22, %v5598_v50  ;;  %v1456_v33 = vadd.f32 %v1449_v46, %v5599_v0  ;;  %v1380_v55 = vpop.f32.mrb[29].mxu0  ;;  %v1451_v41 = vpop.f32.mrb[29].mxu1 }
 0x522   :  { %v1455_v30 = vadd.f32 %v1380_v55, %v5600_v34  ;;  %v1457_v21 = vadd.f32 %v1451_v41, %v5601_v31  ;;  %v5603_v41 = vld [vmem:[#allocation63_spill] sm:$0xff] }
 0x523   :  { %v2682_v7 = vmul.f32 -1.442695, %v1454_v48 }
 0x524   :  { %v2683_v1 = vmul.f32 -1.442695, %v1455_v30  ;;  %v2684_v17 = vmul.f32 -1.442695, %v1457_v21  ;;  %v5604_v21 = vld [vmem:[#allocation71_spill] sm:$0xff] }
 0x525   :  { %3591 = vpow2.f32 %v2682_v7 }
 0x526   :  { %3593 = vpow2.f32 %v2683_v1  ;;  %v5605_v1 = vld [vmem:[#allocation48_spill] sm:$0xff] }
 0x527   :  { %3595 = vpow2.f32 %v2684_v17 }
 0x528   :  { %3597 = vtanh.f32 %v1456_v33  ;;  %v5602_v33 = vld [vmem:[#allocation34_spill] sm:$0xff] }
 0x52f   :  { %v3592_v59 = vpop.eup %3591 }
 0x530   :  { %v3594_v27 = vpop.eup %3593  ;;  %v1461_v45 = vadd.f32 1.0, %v3592_v59 }
 0x531   :  { %v1467_v13 = vadd.f32 1.0, %v3594_v27  ;;  %v3596_v15 = vpop.eup %3595 }
 0x532   :  { %3599 = vrcp.f32 %v1461_v45  ;;  %v3598_v26 = vpop.eup %3597  ;;  %v1474_v54 = vadd.f32 1.0, %v3596_v15 }
 0x533   :  { %3601 = vrcp.f32 %v1467_v13 }
 0x534   :  { %3603 = vrcp.f32 %v1474_v54 }
 0x53c   :  { %v3600_v18 = vpop.eup %3599 }
 0x53d   :  { %v3602_v10 = vpop.eup %3601  ;;  %v1478_v47 = vmul.f32 %v3600_v18, %v3598_v26 }
 0x53e   :  { %v1477_v42 = vmul.f32 %v3602_v10, %v4907_v53  ;;  %v3604_v46 = vpop.eup %3603 }
 0x540   :  { %v1479_v63 = vadd.f32 %v1478_v47, %v1477_v42 }
 0x542   :  { %3605 = vtanh.f32 %v1479_v63  ;;  %v4956_v22 = vsel %vm1484_vm15, %v1479_v63, %v4907_v53 }
 0x54c   :  { %v3606_v50 = vpop.eup %3605 }
 0x54d   :  { %v1481_v48 = vmul.f32 %v3606_v50, %v3604_v46 }
 0x54f   :  { %v4959_v0 = vsel %vm1484_vm15, %v1481_v48, %v4910_v5 }
 0x550   :  { %1572 = vmatmul.mubr.f32.vlgmr.msra.gmra.mrb[30].mxu0 %v4959_v0  ;;  %1643 = vmatmul.mubr.f32.vlgmr.msra.gmra.mrb[30].mxu1 %v4959_v0 }
 0x551   :  { %3193 = vmatpush1.bf16.msra.mxu0 %v5563_v14  ;;  %3225 = vmatpush1.bf16.msra.mxu1 %v5564_v29 }
 0x552   :  { %3195 = vmatprep.subr.bf16.mxu0 %v5565_v52  ;;  %3227 = vmatprep.subr.bf16.mxu1 %v5566_v43 }
 0x553   :  { %1762 = vmatprep.mubr.f32.mxu0 %v5567_v35  ;;  %1833 = vmatprep.mubr.f32.mxu1 %v5567_v35 }
 0x555   :  { %3197 = vmatpush1.bf16.msra.mxu0 %v5568_v12  ;;  %3229 = vmatpush1.bf16.msra.mxu1 %v5569_v2 }
 0x556   :  { %3199 = vmatprep.subr.bf16.mxu0 %v5570_v25  ;;  %3231 = vmatprep.subr.bf16.mxu1 %v5571_v9 }
 0x559   :  { %3201 = vmatpush1.bf16.msra.mxu0 %v5572_v40  ;;  %3233 = vmatpush1.bf16.msra.mxu1 %v5573_v38 }
 0x55a   :  { %3203 = vmatprep.subr.bf16.mxu0 %v5574_v51  ;;  %3235 = vmatprep.subr.bf16.mxu1 %v5575_v36 }
 0x55d   :  { %3205 = vmatpush1.bf16.msra.mxu0 %v5576_v4  ;;  %3237 = vmatpush1.bf16.msra.mxu1 %v5577_v11 }
 0x55e   :  { %3207 = vmatprep.subr.bf16.mxu0 %v5578_v57  ;;  %3239 = vmatprep.subr.bf16.mxu1 %v5579_v44 }
 0x561   :  { %3209 = vmatpush1.bf16.msra.mxu0 %v5580_v8  ;;  %3241 = vmatpush1.bf16.msra.mxu1 %v5581_v19 }
 0x562   :  { %3211 = vmatprep.subr.bf16.mxu0 %v5582_v61  ;;  %3243 = vmatprep.subr.bf16.mxu1 %v5583_v37 }
 0x565   :  { %3213 = vmatpush1.bf16.msra.mxu0 %v5584_v58  ;;  %3245 = vmatpush1.bf16.msra.mxu1 %v5585_v3 }
 0x566   :  { %3215 = vmatprep.subr.bf16.mxu0 %v5586_v6  ;;  %3247 = vmatprep.subr.bf16.mxu1 %v5587_v24 }
 0x569   :  { %3217 = vmatpush1.bf16.msra.mxu0 %v5588_v39  ;;  %3249 = vmatpush1.bf16.msra.mxu1 %v5589_v28 }
 0x56a   :  { %3219 = vmatprep.subr.bf16.mxu0 %v5590_v60  ;;  %3251 = vmatprep.subr.bf16.mxu1 %v5591_v49 }
 0x56d   :  { %3221 = vmatpush1.bf16.msra.mxu0 %v5592_v20  ;;  %3253 = vmatpush1.bf16.msra.mxu1 %v5593_v23 }
 0x56e   :  { %3255 = vmatprep.subr.bf16.mxu0 %v5594_v16  ;;  %3287 = vmatprep.subr.bf16.mxu1 %v5595_v32 }
 0x623   :  { %v1573_v53 = vpop.f32.mrb[30].mxu0  ;;  %v1644_v5 = vpop.f32.mrb[30].mxu1 }
 0x624   :  { %v1649_v55 = vadd.f32 %v1573_v53, %v5602_v33  ;;  %v1651_v34 = vadd.f32 %v1644_v5, %v5603_v41  ;;  %v1575_v30 = vpop.f32.mrb[31].mxu0  ;;  %v1646_v31 = vpop.f32.mrb[31].mxu1 }
 0x625   :  { %v1650_v7 = vadd.f32 %v1575_v30, %v5604_v21  ;;  %v1652_v17 = vadd.f32 %v1646_v31, %v5605_v1  ;;  %v5607_v31 = vld [vmem:[#allocation73_spill] sm:$0xff] }
 0x626   :  { %v2685_v59 = vmul.f32 -1.442695, %v1649_v55 }
 0x627   :  { %v2686_v27 = vmul.f32 -1.442695, %v1650_v7  ;;  %v2687_v45 = vmul.f32 -1.442695, %v1652_v17  ;;  %v5608_v17 = vld [vmem:[#allocation47_spill] sm:$0xff] }
 0x628   :  { %3607 = vpow2.f32 %v2685_v59 }
 0x629   :  { %3609 = vpow2.f32 %v2686_v27  ;;  %v5609_v27 = vld [vmem:[#allocation35_spill] sm:$0xff] }
 0x62a   :  { %3611 = vpow2.f32 %v2687_v45 }
 0x62b   :  { %3613 = vtanh.f32 %v1651_v34  ;;  %v5606_v34 = vld [vmem:[#allocation65_spill] sm:$0xff] }
 0x632   :  { %v3608_v13 = vpop.eup %3607 }
 0x633   :  { %v3610_v15 = vpop.eup %3609  ;;  %v1656_v26 = vadd.f32 1.0, %v3608_v13 }
 0x634   :  { %v1662_v18 = vadd.f32 1.0, %v3610_v15  ;;  %v3612_v10 = vpop.eup %3611 }
 0x635   :  { %3615 = vrcp.f32 %v1656_v26  ;;  %v3614_v47 = vpop.eup %3613  ;;  %v1669_v46 = vadd.f32 1.0, %v3612_v10 }
 0x636   :  { %3617 = vrcp.f32 %v1662_v18 }
 0x637   :  { %3619 = vrcp.f32 %v1669_v46 }
 0x63f   :  { %v3616_v54 = vpop.eup %3615 }
 0x640   :  { %v3618_v42 = vpop.eup %3617  ;;  %v1673_v63 = vmul.f32 %v3616_v54, %v3614_v47 }
 0x641   :  { %v1672_v50 = vmul.f32 %v3618_v42, %v4956_v22  ;;  %v3620_v5 = vpop.eup %3619 }
 0x643   :  { %v1674_v48 = vadd.f32 %v1673_v63, %v1672_v50 }
 0x645   :  { %3621 = vtanh.f32 %v1674_v48  ;;  %v5005_v53 = vsel %vm1679_vm2, %v1674_v48, %v4956_v22 }
 0x64f   :  { %v3622_v33 = vpop.eup %3621 }
 0x650   :  { %v1676_v55 = vmul.f32 %v3622_v33, %v3620_v5 }
 0x652   :  { %v5008_v41 = vsel %vm1679_vm2, %v1676_v55, %v4959_v0 }
 0x653   :  { %1763 = vmatmul.mubr.f32.vlgmr.msra.gmra.mrb[32].mxu0 %v5008_v41  ;;  %1834 = vmatmul.mubr.f32.vlgmr.msra.gmra.mrb[32].mxu1 %v5008_v41 }
 0x654   :  { %3257 = vmatpush1.bf16.msra.mxu0 %v5563_v14  ;;  %3289 = vmatpush1.bf16.msra.mxu1 %v5564_v29 }
 0x655   :  { %3259 = vmatprep.subr.bf16.mxu0 %v5565_v52  ;;  %3291 = vmatprep.subr.bf16.mxu1 %v5566_v43 }
 0x656   :  { %1953 = vmatprep.mubr.f32.mxu0 %v5567_v35  ;;  %2024 = vmatprep.mubr.f32.mxu1 %v5567_v35 }
 0x658   :  { %3261 = vmatpush1.bf16.msra.mxu0 %v5568_v12  ;;  %3293 = vmatpush1.bf16.msra.mxu1 %v5569_v2 }
 0x659   :  { %3263 = vmatprep.subr.bf16.mxu0 %v5570_v25  ;;  %3295 = vmatprep.subr.bf16.mxu1 %v5571_v9 }
 0x65c   :  { %3265 = vmatpush1.bf16.msra.mxu0 %v5572_v40  ;;  %3297 = vmatpush1.bf16.msra.mxu1 %v5573_v38 }
 0x65d   :  { %3267 = vmatprep.subr.bf16.mxu0 %v5574_v51  ;;  %3299 = vmatprep.subr.bf16.mxu1 %v5575_v36 }
 0x660   :  { %3269 = vmatpush1.bf16.msra.mxu0 %v5576_v4  ;;  %3301 = vmatpush1.bf16.msra.mxu1 %v5577_v11 }
 0x661   :  { %3271 = vmatprep.subr.bf16.mxu0 %v5578_v57  ;;  %3303 = vmatprep.subr.bf16.mxu1 %v5579_v44 }
 0x664   :  { %3273 = vmatpush1.bf16.msra.mxu0 %v5580_v8  ;;  %3305 = vmatpush1.bf16.msra.mxu1 %v5581_v19 }
 0x665   :  { %3275 = vmatprep.subr.bf16.mxu0 %v5582_v61  ;;  %3307 = vmatprep.subr.bf16.mxu1 %v5583_v37 }
 0x668   :  { %3277 = vmatpush1.bf16.msra.mxu0 %v5584_v58  ;;  %3309 = vmatpush1.bf16.msra.mxu1 %v5585_v3 }
 0x669   :  { %3279 = vmatprep.subr.bf16.mxu0 %v5586_v6  ;;  %3311 = vmatprep.subr.bf16.mxu1 %v5587_v24 }
 0x66c   :  { %3281 = vmatpush1.bf16.msra.mxu0 %v5588_v39  ;;  %3313 = vmatpush1.bf16.msra.mxu1 %v5589_v28 }
 0x66d   :  { %3283 = vmatprep.subr.bf16.mxu0 %v5590_v60  ;;  %3315 = vmatprep.subr.bf16.mxu1 %v5591_v49 }
 0x670   :  { %3285 = vmatpush1.bf16.msra.mxu0 %v5592_v20  ;;  %3317 = vmatpush1.bf16.msra.mxu1 %v5593_v23 }
 0x671   :  { %3319 = vmatprep.subr.bf16.mxu0 %v5594_v16  ;;  %3351 = vmatprep.subr.bf16.mxu1 %v5595_v32 }
 0x726   :  { %v1764_v22 = vpop.f32.mrb[32].mxu0  ;;  %v1835_v0 = vpop.f32.mrb[32].mxu1 }
 0x727   :  { %v1840_v30 = vadd.f32 %v1764_v22, %v5606_v34  ;;  %v1842_v21 = vadd.f32 %v1835_v0, %v5607_v31  ;;  %v1766_v7 = vpop.f32.mrb[33].mxu0  ;;  %v1837_v1 = vpop.f32.mrb[33].mxu1 }
 0x728   :  { %v1841_v59 = vadd.f32 %v1766_v7, %v5608_v17  ;;  %v1843_v45 = vadd.f32 %v1837_v1, %v5609_v27 }
 0x729   :  { %v2688_v13 = vmul.f32 -1.442695, %v1840_v30 }
 0x72a   :  { %v2689_v15 = vmul.f32 -1.442695, %v1841_v59  ;;  %v2690_v26 = vmul.f32 -1.442695, %v1843_v45  ;;  %v5612_v59 = vld [vmem:[#allocation60_spill] sm:$0xff]  ;;  %v5613_v45 = vld [vmem:[#allocation70_spill] sm:$0xff] }
 0x72b   :  { %3623 = vpow2.f32 %v2688_v13 }
 0x72c   :  { %3625 = vpow2.f32 %v2689_v15 }
 0x72d   :  { %3627 = vpow2.f32 %v2690_v26 }
 0x72e   :  { %3629 = vtanh.f32 %v1842_v21  ;;  %v5611_v21 = vld [vmem:[#allocation68_spill] sm:$0xff] }
 0x735   :  { %v3624_v18 = vpop.eup %3623 }
 0x736   :  { %v3626_v10 = vpop.eup %3625  ;;  %v1847_v47 = vadd.f32 1.0, %v3624_v18 }
 0x737   :  { %v1853_v54 = vadd.f32 1.0, %v3626_v10  ;;  %v3628_v42 = vpop.eup %3627 }
 0x738   :  { %3631 = vrcp.f32 %v1847_v47  ;;  %v3630_v63 = vpop.eup %3629  ;;  %v1860_v5 = vadd.f32 1.0, %v3628_v42 }
 0x739   :  { %3633 = vrcp.f32 %v1853_v54 }
 0x73a   :  { %3635 = vrcp.f32 %v1860_v5 }
 0x742   :  { %v3632_v46 = vpop.eup %3631 }
 0x743   :  { %v3634_v50 = vpop.eup %3633  ;;  %v1864_v48 = vmul.f32 %v3632_v46, %v3630_v63  ;;  %v5102_v46 = vld [vmem:[%s5319_s7] sm:$0xff] }
 0x744   :  { %v1863_v33 = vmul.f32 %v3634_v50, %v5005_v53  ;;  %v3636_v0 = vpop.eup %3635  ;;  %vm2059_vm6 = vcmp.le.s32.totalorder %v5102_v46, 7  ;;  %v5108_v50 = vld [vmem:[%s5320_s8] sm:$0xff]  ;;  %vm2250_vm9 = vcmp.le.s32.totalorder %v5102_v46, 8  ;;  %vm2441_vm13 = vcmp.le.s32.totalorder %v5102_v46, 9 }
 0x745   :  { %vm2060_vm7 = vcmp.gt.s32.totalorder %v5108_v50, 7  ;;  %vm2251_vm10 = vcmp.gt.s32.totalorder %v5108_v50, 8  ;;  %vm2442_vm14 = vcmp.gt.s32.totalorder %v5108_v50, 9  ;;  %v2700_v46 = vld [vmem:[%s5323_s10] ss:$0 sm:$0xff] }
 0x746   :  { %v1865_v55 = vadd.f32 %v1864_v48, %v1863_v33  ;;  %vm2061_vm8 = vmand %vm2059_vm6, %vm2060_vm7 }
 0x747   :  { %vm5159_vm11 = vmand %vm2250_vm9, %vm2251_vm10 }
 0x748   :  { %3637 = vtanh.f32 %v1865_v55  ;;  %v5054_v22 = vsel %vm1870_vm5, %v1865_v55, %v5005_v53  ;;  %v5610_v53 = vld [vmem:[#allocation49_spill] sm:$0xff]  ;;  %vm2443_vm15 = vmand %vm2441_vm13, %vm2442_vm14 }
 0x752   :  { %v3638_v34 = vpop.eup %3637 }
 0x753   :  { %v1867_v30 = vmul.f32 %v3638_v34, %v3636_v0 }
 0x755   :  { %v5057_v31 = vsel %vm1870_vm5, %v1867_v30, %v5008_v41 }
 0x756   :  { %1954 = vmatmul.mubr.f32.vlgmr.msra.gmra.mrb[34].mxu0 %v5057_v31  ;;  %2025 = vmatmul.mubr.f32.vlgmr.msra.gmra.mrb[34].mxu1 %v5057_v31 }
 0x757   :  { %3321 = vmatpush1.bf16.msra.mxu0 %v5563_v14  ;;  %3353 = vmatpush1.bf16.msra.mxu1 %v5564_v29 }
 0x758   :  { %3323 = vmatprep.subr.bf16.mxu0 %v5565_v52  ;;  %3355 = vmatprep.subr.bf16.mxu1 %v5566_v43 }
 0x759   :  { %2144 = vmatprep.mubr.f32.mxu0 %v5567_v35  ;;  %2215 = vmatprep.mubr.f32.mxu1 %v5567_v35 }
 0x75b   :  { %3325 = vmatpush1.bf16.msra.mxu0 %v5568_v12  ;;  %3357 = vmatpush1.bf16.msra.mxu1 %v5569_v2 }
 0x75c   :  { %3327 = vmatprep.subr.bf16.mxu0 %v5570_v25  ;;  %3359 = vmatprep.subr.bf16.mxu1 %v5571_v9 }
 0x75f   :  { %3329 = vmatpush1.bf16.msra.mxu0 %v5572_v40  ;;  %3361 = vmatpush1.bf16.msra.mxu1 %v5573_v38 }
 0x760   :  { %3331 = vmatprep.subr.bf16.mxu0 %v5574_v51  ;;  %3363 = vmatprep.subr.bf16.mxu1 %v5575_v36 }
 0x763   :  { %3333 = vmatpush1.bf16.msra.mxu0 %v5576_v4  ;;  %3365 = vmatpush1.bf16.msra.mxu1 %v5577_v11 }
 0x764   :  { %3335 = vmatprep.subr.bf16.mxu0 %v5578_v57  ;;  %3367 = vmatprep.subr.bf16.mxu1 %v5579_v44 }
 0x767   :  { %3337 = vmatpush1.bf16.msra.mxu0 %v5580_v8  ;;  %3369 = vmatpush1.bf16.msra.mxu1 %v5581_v19 }
 0x768   :  { %3339 = vmatprep.subr.bf16.mxu0 %v5582_v61  ;;  %3371 = vmatprep.subr.bf16.mxu1 %v5583_v37 }
 0x76b   :  { %3341 = vmatpush1.bf16.msra.mxu0 %v5584_v58  ;;  %3373 = vmatpush1.bf16.msra.mxu1 %v5585_v3 }
 0x76c   :  { %3343 = vmatprep.subr.bf16.mxu0 %v5586_v6  ;;  %3375 = vmatprep.subr.bf16.mxu1 %v5587_v24 }
 0x76f   :  { %3345 = vmatpush1.bf16.msra.mxu0 %v5588_v39  ;;  %3377 = vmatpush1.bf16.msra.mxu1 %v5589_v28 }
 0x770   :  { %3347 = vmatprep.subr.bf16.mxu0 %v5590_v60  ;;  %3379 = vmatprep.subr.bf16.mxu1 %v5591_v49 }
 0x773   :  { %3349 = vmatpush1.bf16.msra.mxu0 %v5592_v20  ;;  %3381 = vmatpush1.bf16.msra.mxu1 %v5593_v23 }
 0x774   :  { %3383 = vmatprep.subr.bf16.mxu0 %v5594_v16  ;;  %3415 = vmatprep.subr.bf16.mxu1 %v5595_v32 }
 0x829   :  { %v1955_v56 = vpop.f32.mrb[34].mxu0  ;;  %v2026_v62 = vpop.f32.mrb[34].mxu1 }
 0x82a   :  { %v2031_v41 = vadd.f32 %v1955_v56, %v5610_v53  ;;  %v2033_v7 = vadd.f32 %v2026_v62, %v5611_v21  ;;  %v1957_v1 = vpop.f32.mrb[35].mxu0  ;;  %v2028_v17 = vpop.f32.mrb[35].mxu1  ;;  %v3691_v21 = vmov 0.0|0.0  }
 0x82b   :  { %v2032_v27 = vadd.f32 %v1957_v1, %v5612_v59  ;;  %v2034_v13 = vadd.f32 %v2028_v17, %v5613_v45  ;;  %v2446_v1 = vld [vmem:[%s5321_s9 + $0x8] sm:$0xff]  ;;  %v2447_v17 = vld [vmem:[%s5321_s9 + $0x10] sm:$0xff] }
 0x82c   :  { %v2691_v15 = vmul.f32 -1.442695, %v2031_v41 }
 0x82d   :  { %v2692_v26 = vmul.f32 -1.442695, %v2032_v27  ;;  %v2693_v18 = vmul.f32 -1.442695, %v2034_v13  ;;  %v2448_v27 = vld [vmem:[%s5321_s9 + $0x18] sm:$0xff]  ;;  %v2449_v13 = vld [vmem:[%s5321_s9 + $0x20] sm:$0xff] }
 0x82e   :  { %3639 = vpow2.f32 %v2691_v15  ;;  %v3450_v45 = vpack.c.bf16 %v2448_v27, %v2447_v17  ;;  %v2450_v15 = vld [vmem:[%s5321_s9 + $0x28] sm:$0xff] }
 0x82f   :  { %3641 = vpow2.f32 %v2692_v26  ;;  %v3453_v26 = vpack.c.bf16 %v2450_v15, %v2449_v13 }
 0x830   :  { %3643 = vpow2.f32 %v2693_v18  ;;  %v2452_v18 = vld [vmem:[%s5321_s9 + $0x38] sm:$0xff] }
 0x831   :  { %3645 = vtanh.f32 %v2033_v7  ;;  %v2445_v7 = vld [vmem:[%s5321_s9] sm:$0xff] }
 0x832   :  { %v3447_v59 = vpack.c.bf16 %v2446_v1, %v2445_v7 }
 0x838   :  { %v3640_v16 = vpop.eup %3639 }
 0x839   :  { %v3642_v10 = vpop.eup %3641  ;;  %v2038_v32 = vadd.f32 1.0, %v3640_v16 }
 0x83a   :  { %v2044_v47 = vadd.f32 1.0, %v3642_v10  ;;  %v3644_v54 = vpop.eup %3643  ;;  %v2453_v10 = vld [vmem:[%s5321_s9 + $0x40] sm:$0xff] }
 0x83b   :  { %3647 = vrcp.f32 %v2038_v32  ;;  %v3646_v42 = vpop.eup %3645  ;;  %v2051_v33 = vadd.f32 1.0, %v3644_v54  ;;  %v2454_v32 = vld [vmem:[%s5321_s9 + $0x48] sm:$0xff] }
 0x83c   :  { %3649 = vrcp.f32 %v2044_v47  ;;  %v2539_v47 = vld [vmem:[%s5322_s11] sm:$0xff]  ;;  %v2540_v54 = vld [vmem:[%s5322_s11 + $0x8] sm:$0xff] }
 0x83d   :  { %3651 = vrcp.f32 %v2051_v33  ;;  %v2455_v33 = vld [vmem:[%s5321_s9 + $0x50] sm:$0xff] }
 0x845   :  { %v3648_v63 = vpop.eup %3647 }
 0x846   :  { %v3650_v48 = vpop.eup %3649  ;;  %v2055_v5 = vmul.f32 %v3648_v63, %v3646_v42  ;;  %v2541_v42 = vld [vmem:[%s5322_s11 + $0x10] sm:$0xff]  ;;  %v3459_v63 = vpack.c.bf16 %v2454_v32, %v2453_v10 }
 0x847   :  { %v2054_v55 = vmul.f32 %v3650_v48, %v5054_v22  ;;  %v3652_v30 = vpop.eup %3651  ;;  %v3471_v48 = vpack.c.bf16 %v2540_v54, %v2539_v47 }
 0x849   :  { %v2056_v0 = vadd.f32 %v2055_v5, %v2054_v55  ;;  %v2542_v5 = vld [vmem:[%s5322_s11 + $0x18] sm:$0xff] }
 0x84a   :  { %v2456_v55 = vld [vmem:[%s5321_s9 + $0x58] sm:$0xff] }
 0x84b   :  { %3653 = vtanh.f32 %v2056_v0  ;;  %v5113_v34 = vsel %vm2061_vm8, %v2056_v0, %v5054_v22  ;;  %v3474_v0 = vpack.c.bf16 %v2542_v5, %v2541_v42 }
 0x855   :  { %v3654_v56 = vpop.eup %3653 }
 0x856   :  { %v2058_v62 = vmul.f32 %v3654_v56, %v3652_v30  ;;  %v2543_v30 = vld [vmem:[%s5322_s11 + $0x20] sm:$0xff]  ;;  %v2544_v56 = vld [vmem:[%s5322_s11 + $0x28] sm:$0xff] }
 0x858   :  { %v5116_v53 = vsel %vm2061_vm8, %v2058_v62, %v5057_v31  ;;  %v3462_v62 = vpack.c.bf16 %v2456_v55, %v2455_v33 }
 0x859   :  { %2145 = vmatmul.mubr.f32.vlgmr.msra.gmra.mrb[36].mxu0 %v5116_v53  ;;  %2216 = vmatmul.mubr.f32.vlgmr.msra.gmra.mrb[36].mxu1 %v5116_v53 }
 0x85a   :  { %3385 = vmatpush1.bf16.msra.mxu0 %v5563_v14  ;;  %3417 = vmatpush1.bf16.msra.mxu1 %v5564_v29 }
 0x85b   :  { %3387 = vmatprep.subr.bf16.mxu0 %v5565_v52  ;;  %3419 = vmatprep.subr.bf16.mxu1 %v5566_v43  ;;  %v5614_v52 = vld [vmem:[#allocation62_spill] sm:$0xff]  ;;  %v5615_v43 = vld [vmem:[#allocation72_spill] sm:$0xff] }
 0x85c   :  { %2335 = vmatprep.mubr.f32.mxu0 %v5567_v35  ;;  %2406 = vmatprep.mubr.f32.mxu1 %v5567_v35 }
 0x85e   :  { %3389 = vmatpush1.bf16.msra.mxu0 %v5568_v12  ;;  %3421 = vmatpush1.bf16.msra.mxu1 %v5569_v2  ;;  %v5616_v2 = vld [vmem:[#allocation64_spill] sm:$0xff] }
 0x85f   :  { %3391 = vmatprep.subr.bf16.mxu0 %v5570_v25  ;;  %3423 = vmatprep.subr.bf16.mxu1 %v5571_v9  ;;  %v5617_v25 = vld [vmem:[#allocation36_spill] sm:$0xff] }
 0x862   :  { %3393 = vmatpush1.bf16.msra.mxu0 %v5572_v40  ;;  %3425 = vmatpush1.bf16.msra.mxu1 %v5573_v38 }
 0x863   :  { %3395 = vmatprep.subr.bf16.mxu0 %v5574_v51  ;;  %3427 = vmatprep.subr.bf16.mxu1 %v5575_v36 }
 0x866   :  { %3397 = vmatpush1.bf16.msra.mxu0 %v5576_v4  ;;  %3429 = vmatpush1.bf16.msra.mxu1 %v5577_v11 }
 0x867   :  { %3399 = vmatprep.subr.bf16.mxu0 %v5578_v57  ;;  %3431 = vmatprep.subr.bf16.mxu1 %v5579_v44 }
 0x86a   :  { %3401 = vmatpush1.bf16.msra.mxu0 %v5580_v8  ;;  %3433 = vmatpush1.bf16.msra.mxu1 %v5581_v19  ;;  %v2553_v19 = vld [vmem:[%s5322_s11 + $0x70] sm:$0xff] }
 0x86b   :  { %3403 = vmatprep.subr.bf16.mxu0 %v5582_v61  ;;  %3435 = vmatprep.subr.bf16.mxu1 %v5583_v37 }
 0x86e   :  { %3405 = vmatpush1.bf16.msra.mxu0 %v5584_v58  ;;  %3437 = vmatpush1.bf16.msra.mxu1 %v5585_v3 }
 0x86f   :  { %3407 = vmatprep.subr.bf16.mxu0 %v5586_v6  ;;  %3439 = vmatprep.subr.bf16.mxu1 %v5587_v24 }
 0x872   :  { %3409 = vmatpush1.bf16.msra.mxu0 %v5588_v39  ;;  %3441 = vmatpush1.bf16.msra.mxu1 %v5589_v28 }
 0x873   :  { %3411 = vmatprep.subr.bf16.mxu0 %v5590_v60  ;;  %3443 = vmatprep.subr.bf16.mxu1 %v5591_v49 }
 0x876   :  { %3413 = vmatpush1.bf16.msra.mxu0 %v5592_v20  ;;  %3445 = vmatpush1.bf16.msra.mxu1 %v5593_v23 }
 0x877   :  { %3446 = vmatprep.subr.bf16.mxu0 %v3691_v21  ;;  %3470 = vmatprep.subr.bf16.mxu1 %v3691_v21 }
 0x92c   :  { %v2146_v14 = vpop.f32.mrb[36].mxu0  ;;  %v2217_v29 = vpop.f32.mrb[36].mxu1 }
 0x92d   :  { %v2222_v3 = vadd.f32 %v2146_v14, %v5614_v52  ;;  %v2224_v6 = vadd.f32 %v2217_v29, %v5615_v43  ;;  %v2148_v12 = vpop.f32.mrb[37].mxu0  ;;  %v2219_v24 = vpop.f32.mrb[37].mxu1  ;;  %v2458_v14 = vld [vmem:[%s5321_s9 + $0x68] sm:$0xff]  ;;  %v3477_v29 = vpack.c.bf16 %v2544_v56, %v2543_v30  ;;  %v2545_v52 = vld [vmem:[%s5322_s11 + $0x30] sm:$0xff] }
 0x92e   :  { %v2223_v39 = vadd.f32 %v2148_v12, %v5616_v2  ;;  %v2225_v28 = vadd.f32 %v2219_v24, %v5617_v25  ;;  %v2460_v12 = vld [vmem:[%s5321_s9 + $0x78] sm:$0xff]  ;;  %v2547_v2 = vld [vmem:[%s5322_s11 + $0x40] sm:$0xff] }
 0x92f   :  { %v2694_v9 = vmul.f32 -1.442695, %v2222_v3  ;;  %v2546_v3 = vld [vmem:[%s5322_s11 + $0x38] sm:$0xff] }
 0x930   :  { %v2695_v60 = vmul.f32 -1.442695, %v2223_v39  ;;  %v2696_v49 = vmul.f32 -1.442695, %v2225_v28  ;;  %v3480_v24 = vpack.c.bf16 %v2546_v3, %v2545_v52  ;;  %v2548_v39 = vld [vmem:[%s5322_s11 + $0x48] sm:$0xff] }
 0x931   :  { %3655 = vpow2.f32 %v2694_v9  ;;  %v3483_v28 = vpack.c.bf16 %v2548_v39, %v2547_v2  ;;  %v2549_v9 = vld [vmem:[%s5322_s11 + $0x50] sm:$0xff] }
 0x932   :  { %3657 = vpow2.f32 %v2695_v60  ;;  %v2550_v60 = vld [vmem:[%s5322_s11 + $0x58] sm:$0xff] }
 0x933   :  { %3659 = vpow2.f32 %v2696_v49  ;;  %v3486_v49 = vpack.c.bf16 %v2550_v60, %v2549_v9 }
 0x934   :  { %3661 = vtanh.f32 %v2224_v6  ;;  %v2459_v6 = vld [vmem:[%s5321_s9 + $0x70] sm:$0xff] }
 0x935   :  { %v3468_v25 = vpack.c.bf16 %v2460_v12, %v2459_v6 }
 0x93b   :  { %v3656_v20 = vpop.eup %3655 }
 0x93c   :  { %v3658_v40 = vpop.eup %3657  ;;  %v2229_v23 = vadd.f32 1.0, %v3656_v20  ;;  %v2551_v20 = vld [vmem:[%s5322_s11 + $0x60] sm:$0xff] }
 0x93d   :  { %v2235_v38 = vadd.f32 1.0, %v3658_v40  ;;  %v3660_v51 = vpop.eup %3659  ;;  %v2552_v40 = vld [vmem:[%s5322_s11 + $0x68] sm:$0xff] }
 0x93e   :  { %3663 = vrcp.f32 %v2229_v23  ;;  %v3662_v36 = vpop.eup %3661  ;;  %v2242_v44 = vadd.f32 1.0, %v3660_v51  ;;  %v3489_v23 = vpack.c.bf16 %v2552_v40, %v2551_v20 }
 0x93f   :  { %3665 = vrcp.f32 %v2235_v38 }
 0x940   :  { %3667 = vrcp.f32 %v2242_v44 }
 0x948   :  { %v3664_v4 = vpop.eup %3663 }
 0x949   :  { %v3666_v11 = vpop.eup %3665  ;;  %v2246_v57 = vmul.f32 %v3664_v4, %v3662_v36  ;;  %v5620_v36 = vld [vmem:[#allocation74_spill] sm:$0xff] }
 0x94a   :  { %v2245_v8 = vmul.f32 %v3666_v11, %v5113_v34  ;;  %v3668_v58 = vpop.eup %3667  ;;  %v5621_v11 = vld [vmem:[#allocation66_spill] sm:$0xff] }
 0x94c   :  { %v5163_v61 = vadd.f32 %v2246_v57, %v2245_v8 }
 0x94e   :  { %3669 = vtanh.f32 %v5163_v61  ;;  %v2253_v37 = vsel %vm5159_vm11, %v5163_v61, %v5113_v34  ;;  %v2554_v34 = vld [vmem:[%s5322_s11 + $0x78] sm:$0xff] }
 0x94f   :  { %v3492_v61 = vpack.c.bf16 %v2554_v34, %v2553_v19 }
 0x958   :  { %v3670_v22 = vpop.eup %3669 }
 0x959   :  { %v2249_v31 = vmul.f32 %v3670_v22, %v3668_v58  ;;  %v5622_v58 = vld [vmem:[#allocation75_spill] sm:$0xff] }
 0x95b   :  { %v5173_v41 = vsel %vm5159_vm11, %v2249_v31, %v5116_v53  ;;  %v2457_v53 = vld [vmem:[%s5321_s9 + $0x60] sm:$0xff] }
 0x95c   :  { %2336 = vmatmul.mubr.f32.vlgmr.msra.gmra.mrb[38].mxu0 %v5173_v41  ;;  %2407 = vmatmul.mubr.f32.vlgmr.msra.gmra.mrb[38].mxu1 %v5173_v41  ;;  %v3465_v43 = vpack.c.bf16 %v2458_v14, %v2457_v53  ;;  %v5623_v31 = vld [vmem:[#allocation54_spill] sm:$0xff] }
 0x95d   :  { %2768 = vmatprep.mubr.msk.f32.mxu0 %vm3692_vm12, %v5567_v35  ;;  %2803 = vmatprep.mubr.msk.f32.mxu1 %vm3692_vm12, %v5567_v35  ;;  %v2451_v35 = vld [vmem:[%s5321_s9 + $0x30] sm:$0xff] }
 0x95e   :  { %3448 = vmatpush3.bf16.msra.mxu0 %v3447_v59  ;;  %v3456_v16 = vpack.c.bf16 %v2452_v18, %v2451_v35  ;;  %3472 = vmatpush3.bf16.msra.mxu1 %v3471_v48 }
 0x95f   :  { %3449 = vmatprep.subr.bf16.mxu0 %v3691_v21  ;;  %3473 = vmatprep.subr.bf16.mxu1 %v3691_v21 }
 0x962   :  { %3451 = vmatpush3.bf16.msra.mxu0 %v3450_v45  ;;  %3475 = vmatpush3.bf16.msra.mxu1 %v3474_v0 }
 0x963   :  { %3452 = vmatprep.subr.bf16.mxu0 %v3691_v21  ;;  %3476 = vmatprep.subr.bf16.mxu1 %v3691_v21 }
 0x966   :  { %3454 = vmatpush3.bf16.msra.mxu0 %v3453_v26  ;;  %3478 = vmatpush3.bf16.msra.mxu1 %v3477_v29 }
 0x967   :  { %3455 = vmatprep.subr.bf16.mxu0 %v3691_v21  ;;  %3479 = vmatprep.subr.bf16.mxu1 %v3691_v21 }
 0x96a   :  { %3457 = vmatpush3.bf16.msra.mxu0 %v3456_v16  ;;  %3481 = vmatpush3.bf16.msra.mxu1 %v3480_v24 }
 0x96b   :  { %3458 = vmatprep.subr.bf16.mxu0 %v3691_v21  ;;  %3482 = vmatprep.subr.bf16.mxu1 %v3691_v21 }
 0x96e   :  { %3460 = vmatpush3.bf16.msra.mxu0 %v3459_v63  ;;  %3484 = vmatpush3.bf16.msra.mxu1 %v3483_v28 }
 0x96f   :  { %3461 = vmatprep.subr.bf16.mxu0 %v3691_v21  ;;  %3485 = vmatprep.subr.bf16.mxu1 %v3691_v21 }
 0x972   :  { %3463 = vmatpush3.bf16.msra.mxu0 %v3462_v62  ;;  %3487 = vmatpush3.bf16.msra.mxu1 %v3486_v49 }
 0x973   :  { %3464 = vmatprep.subr.bf16.mxu0 %v3691_v21  ;;  %3488 = vmatprep.subr.bf16.mxu1 %v3691_v21 }
 0x976   :  { %3466 = vmatpush3.bf16.msra.mxu0 %v3465_v43  ;;  %3490 = vmatpush3.bf16.msra.mxu1 %v3489_v23 }
 0x977   :  { %3467 = vmatprep.subr.bf16.mxu0 %v3691_v21  ;;  %3491 = vmatprep.subr.bf16.mxu1 %v3691_v21 }
 0x97a   :  { %3469 = vmatpush3.bf16.msra.mxu0 %v3468_v25  ;;  %3493 = vmatpush3.bf16.msra.mxu1 %v3492_v61 }
 0xa2f   :  { %v2337_v38 = vpop.f32.mrb[38].mxu0  ;;  %v2408_v51 = vpop.f32.mrb[38].mxu1 }
 0xa30   :  { %v2413_v4 = vadd.f32 %v2337_v38, %v5620_v36  ;;  %v2415_v57 = vadd.f32 %v2408_v51, %v5621_v11  ;;  %v2339_v44 = vpop.f32.mrb[39].mxu0  ;;  %v2410_v8 = vpop.f32.mrb[39].mxu1 }
 0xa31   :  { %v2414_v22 = vadd.f32 %v2339_v44, %v5622_v58  ;;  %v2416_v7 = vadd.f32 %v2410_v8, %v5623_v31 }
 0xa32   :  { %v2697_v1 = vmul.f32 -1.442695, %v2413_v4 }
 0xa33   :  { %v2698_v17 = vmul.f32 -1.442695, %v2414_v22  ;;  %v2699_v59 = vmul.f32 -1.442695, %v2416_v7 }
 0xa34   :  { %3671 = vpow2.f32 %v2697_v1 }
 0xa35   :  { %3673 = vpow2.f32 %v2698_v17 }
 0xa36   :  { %3675 = vpow2.f32 %v2699_v59 }
 0xa37   :  { %3677 = vtanh.f32 %v2415_v57 }
 0xa3e   :  { %v3672_v27 = vpop.eup %3671 }
 0xa3f   :  { %v3674_v45 = vpop.eup %3673  ;;  %v2420_v21 = vadd.f32 1.0, %v3672_v27 }
 0xa40   :  { %v2426_v13 = vadd.f32 1.0, %v3674_v45  ;;  %v3676_v15 = vpop.eup %3675 }
 0xa41   :  { %3679 = vrcp.f32 %v2420_v21  ;;  %v3678_v26 = vpop.eup %3677  ;;  %v2433_v10 = vadd.f32 1.0, %v3676_v15 }
 0xa42   :  { %3681 = vrcp.f32 %v2426_v13 }
 0xa43   :  { %3683 = vrcp.f32 %v2433_v10 }
 0xa4b   :  { %v3680_v35 = vpop.eup %3679 }
 0xa4c   :  { %v3682_v18 = vpop.eup %3681  ;;  %v2437_v16 = vmul.f32 %v3680_v35, %v3678_v26 }
 0xa4d   :  { %v2436_v32 = vmul.f32 %v3682_v18, %v2253_v37  ;;  %v3684_v54 = vpop.eup %3683 }
 0xa4f   :  { %v2438_v47 = vadd.f32 %v2437_v16, %v2436_v32 }
 0xa51   :  { %3685 = vtanh.f32 %v2438_v47 }
 0xa5b   :  { %v3686_v42 = vpop.eup %3685 }
 0xa5c   :  { %v2440_v63 = vmul.f32 %v3686_v42, %v3684_v54 }
 0xa5e   :  { %v2444_v48 = vsel %vm2443_vm15, %v2440_v63, %v5173_v41  ;;  %v2701_v41 = vld [vmem:[%s5324_s12] ss:$0 sm:$0xff] }
 0xa5f   :  { %2769 = vmatmul.mubr.f32.vlgmr.msra.gmra.mrb[40].mxu0 %v2444_v48 }
 0xb32   :  { %v2534_v50 = vpop.f32.mrb[40].mxu0 }
 0xb33   :  { %v2535_v37 = vadd.f32 %v2700_v46, %v2534_v50  ;;  %v2770_v5 = vpop.f32.mrb[41].mxu0 }
 0xb35   :  { %v2538_v33 = vmax.f32 %v2535_v37, 0.0 }
 0xb37   :  { %2804 = vmatmul.mubr.f32.vlgmr.msra.gmra.mrb[40].mxu1 %v2538_v33 }
 0xc0a   :  { %v2628_v55 = vpop.f32.mrb[40].mxu1 }
 0xc0b   :  { %v2629_v0 = vadd.f32 %v2701_v41, %v2628_v55  ;;  %v2805_v30 = vpop.f32.mrb[41].mxu1 }
 0xc0d   :  { %2632 = vst [vmem:[%s5325_s13] sm:$0xff] %v2629_v0 }

</bundles_post_ra>
